<compile_context>
chip_gen: v7x
topology: tpu7x:2x2x1
jax: 0.10.0
libtpu: 0.0.40
codegen_flags: <defaults>
</compile_context>

<pallas_src>
import jax
import jax.numpy as jnp
from jax.experimental import pallas as pl
from jax.experimental.pallas import tpu as pltpu

LATENT_DIM = 16
STYLE_DIM = 64
NUM_DOMAINS = 2
HIDDEN = 512
PARAM_DTYPE = jnp.bfloat16                       # weight storage dtype
# bias slab rows: 4 trunk + 3*D hidden-head + 1 final, padded to multiple of 8
_BIAS_ROWS = ((4 + 3 * NUM_DOMAINS + 1 + 7) // 8) * 8


def _layer(x_bf16, w_bf16, b_row_bf16):
    """bf16 x bf16 MXU matmul, f32 accumulate + bias + ReLU, single cast back."""
    y = jnp.dot(x_bf16, w_bf16, preferred_element_type=jnp.float32)
    y = jnp.maximum(y + b_row_bf16.astype(jnp.float32), 0.0)
    return y.astype(jnp.bfloat16)


def mapping_kernel(
    z_ref, y_ref,                        # (N, latent) f32, (N, 1) int32
    w_s0_ref, w_trunk_ref, b_ref,        # trunk weights + packed bias slab (VMEM)
    wh0_hbm, wh12_hbm, wh3_hbm,          # head weights (HBM, manual overlapped DMA)
    out_ref,                             # (N, STYLE_DIM) f32
    wh0_v, wh12_v, wh3_v, sem,           # VMEM scratch + DMA semaphores
):
    # Kick off the ~3 MiB head-weight DMA so it overlaps the trunk compute.
    cp0 = pltpu.make_async_copy(wh0_hbm, wh0_v, sem.at[0])
    cp1 = pltpu.make_async_copy(wh12_hbm, wh12_v, sem.at[1])
    cp2 = pltpu.make_async_copy(wh3_hbm, wh3_v, sem.at[2])
    cp0.start()
    cp1.start()
    cp2.start()

    # Shared trunk: 16->512, then 3x 512->512 (bf16 activations between layers).
    h = _layer(z_ref[...].astype(jnp.bfloat16), w_s0_ref[...], b_ref[0:1, :])
    for i in range(3):
        h = _layer(h, w_trunk_ref[i], b_ref[i + 1:i + 2, :])

    # Head weights must be resident before the unshared stacks run.
    cp0.wait()
    cp1.wait()
    cp2.wait()

    # Head layer 0, fused across domains: one (512, 512*D) matmul from shared h.
    b_h0 = jnp.concatenate(
        [b_ref[4 + d:5 + d, :] for d in range(NUM_DOMAINS)], axis=-1)
    t_all = _layer(h, wh0_v[...], b_h0)            # (N, D*HIDDEN) bf16

    # Head layers 1 & 2 per domain.
    t_list = []
    for d in range(NUM_DOMAINS):
        t = t_all[:, d * HIDDEN:(d + 1) * HIDDEN]
        t = _layer(t, wh12_v[d],
                   b_ref[4 + NUM_DOMAINS + d:5 + NUM_DOMAINS + d, :])
        t = _layer(t, wh12_v[NUM_DOMAINS + d],
                   b_ref[4 + 2 * NUM_DOMAINS + d:5 + 2 * NUM_DOMAINS + d, :])
        t_list.append(t)

    # Final layer: single lane-dense block-diagonal matmul -> (N, D*STYLE_DIM).
    t_cat = jnp.concatenate(t_list, axis=-1)       # (N, D*HIDDEN) bf16
    o_both = jnp.dot(t_cat, wh3_v[...], preferred_element_type=jnp.float32)
    brow = 4 + 3 * NUM_DOMAINS
    o_both = o_both + b_ref[brow:brow + 1, :NUM_DOMAINS * STYLE_DIM].astype(
        jnp.float32)

    # In-kernel per-sample domain select (replaces the external XLA gather).
    y_col = y_ref[...]                             # (N, 1) int32
    sel = jnp.zeros(out_ref.shape, jnp.float32)
    for d in range(NUM_DOMAINS):
        sel = jnp.where(y_col == d,
                        o_both[:, d * STYLE_DIM:(d + 1) * STYLE_DIM], sel)
    out_ref[...] = sel.astype(out_ref.dtype)


def mapping_network_forward(z, y, packed):
    """z: (N, latent_dim) f32, y: (N,) int -> style s: (N, style_dim) f32."""
    N = z.shape[0]
    w_s0, w_trunk, biases, w_head0, w_head12, w_final = packed
    y2d = y.astype(jnp.int32).reshape(N, 1)

    vmem = pl.BlockSpec(memory_space=pltpu.MemorySpace.VMEM)
    hbm = pl.BlockSpec(memory_space=pl.ANY)

    flops = 2 * N * (LATENT_DIM * HIDDEN + 3 * HIDDEN * HIDDEN
                     + NUM_DOMAINS * (3 * HIDDEN * HIDDEN + HIDDEN * STYLE_DIM))
    bytes_accessed = (sum(int(a.nbytes) for a in packed)
                      + int(z.nbytes) + int(y2d.nbytes) + N * STYLE_DIM * 4)

    return pl.pallas_call(
        mapping_kernel,
        out_shape=jax.ShapeDtypeStruct((N, STYLE_DIM), jnp.float32),
        in_specs=[vmem, vmem, vmem, vmem, vmem, hbm, hbm, hbm],
        out_specs=vmem,
        scratch_shapes=[
            pltpu.VMEM(w_head0.shape, PARAM_DTYPE),
            pltpu.VMEM(w_head12.shape, PARAM_DTYPE),
            pltpu.VMEM(w_final.shape, PARAM_DTYPE),
            pltpu.SemaphoreType.DMA((3,)),
        ],
        cost_estimate=pl.CostEstimate(
            flops=flops, transcendentals=0, bytes_accessed=bytes_accessed),
    )(z, y2d, w_s0, w_trunk, biases, w_head0, w_head12, w_final)


def init_params(key):
    """Deterministic init mirroring nn.Linear; weights stored (in, out), bf16."""
    ks = jax.random.split(key, 8)

    def lin(k, fan_in, fan_out):
        kw, kb = jax.random.split(k)
        bound = 1.0 / (fan_in ** 0.5)
        w = jax.random.uniform(kw, (fan_in, fan_out), jnp.float32, -bound, bound)
        b = jax.random.uniform(kb, (fan_out,), jnp.float32, -bound, bound)
        return w.astype(PARAM_DTYPE), b.astype(PARAM_DTYPE)

    # Shared trunk: 16->512, then 3x 512->512.
    ws0, bs0 = lin(ks[0], LATENT_DIM, HIDDEN)
    ws1, bs1 = lin(ks[1], HIDDEN, HIDDEN)
    ws2, bs2 = lin(ks[2], HIDDEN, HIDDEN)
    ws3, bs3 = lin(ks[3], HIDDEN, HIDDEN)

    def stacked(k, fan_in, fan_out):
        ws, bs = zip(*[lin(kk, fan_in, fan_out)
                       for kk in jax.random.split(k, NUM_DOMAINS)])
        return jnp.stack(ws), jnp.stack(bs)

    # Unshared heads: per domain 3x 512->512 + 512->style_dim.
    wu0, bu0 = stacked(ks[4], HIDDEN, HIDDEN)
    wu1, bu1 = stacked(ks[5], HIDDEN, HIDDEN)
    wu2, bu2 = stacked(ks[6], HIDDEN, HIDDEN)
    wu3, bu3 = stacked(ks[7], HIDDEN, STYLE_DIM)

    return (ws0, bs0, ws1, bs1, ws2, bs2, ws3, bs3,
            wu0, bu0, wu1, bu1, wu2, bu2, wu3, bu3)


def pack_params(raw):
    """Rearrange per-layer params into the few large kernel inputs."""
    (ws0, bs0, ws1, bs1, ws2, bs2, ws3, bs3,
     wu0, bu0, wu1, bu1, wu2, bu2, wu3, bu3) = raw

    w_s0 = ws0                                              # (16, 512)
    w_trunk = jnp.stack([ws1, ws2, ws3])                    # (3, 512, 512)

    # Single bias slab (rows: trunk 0-3, head L0, L1, L2, final-concat, pad).
    rows = [bs0, bs1, bs2, bs3]
    rows += [bu0[d] for d in range(NUM_DOMAINS)]
    rows += [bu1[d] for d in range(NUM_DOMAINS)]
    rows += [bu2[d] for d in range(NUM_DOMAINS)]
    b_final = jnp.zeros((HIDDEN,), PARAM_DTYPE).at[:NUM_DOMAINS * STYLE_DIM].set(
        jnp.concatenate([bu3[d] for d in range(NUM_DOMAINS)]))
    rows += [b_final]
    rows += [jnp.zeros((HIDDEN,), PARAM_DTYPE)] * (_BIAS_ROWS - len(rows))
    biases = jnp.stack(rows)                                # (16, 512)

    # Head layer 0 fused across domains: (512, 512*D).
    w_head0 = jnp.concatenate([wu0[d] for d in range(NUM_DOMAINS)], axis=-1)
    # Head layers 1 & 2: (2*D, 512, 512); layer1 at [d], layer2 at [D+d].
    w_head12 = jnp.concatenate([wu1, wu2], axis=0)
    # Final layer as block-diagonal (D*512, D*STYLE) for one lane-dense matmul.
    w_final = jnp.zeros((NUM_DOMAINS * HIDDEN, NUM_DOMAINS * STYLE_DIM),
                        PARAM_DTYPE)
    for d in range(NUM_DOMAINS):
        w_final = w_final.at[d * HIDDEN:(d + 1) * HIDDEN,
                             d * STYLE_DIM:(d + 1) * STYLE_DIM].set(wu3[d])

    return w_s0, w_trunk, biases, w_head0, w_head12, w_final


def reference_forward(z, y, raw):
    """Pure-JAX reference: same bf16 params, bf16 activations, f32 math."""
    p = [x.astype(jnp.float32) for x in raw]
    (ws0, bs0, ws1, bs1, ws2, bs2, ws3, bs3,
     wu0, bu0, wu1, bu1, wu2, bu2, wu3, bu3) = p

    def layer(x_bf16, w, b):
        o = jnp.maximum(x_bf16.astype(jnp.float32) @ w + b, 0.0)
        return o.astype(jnp.bfloat16)

    h = layer(z.astype(jnp.bfloat16), ws0, bs0)
    h = layer(h, ws1, bs1)
    h = layer(h, ws2, bs2)
    h = layer(h, ws3, bs3)
    outs = []
    for d in range(NUM_DOMAINS):
        t = layer(h, wu0[d], bu0[d])
        t = layer(t, wu1[d], bu1[d])
        t = layer(t, wu2[d], bu2[d])
        outs.append(t.astype(jnp.float32) @ wu3[d] + bu3[d])
    out = jnp.stack(outs, axis=1)                 # (N, num_domains, style_dim)
    return out[jnp.arange(z.shape[0]), y]


if __name__ == "__main__":
    key = jax.random.PRNGKey(0)
    kp, kz, ky = jax.random.split(key, 3)

    raw_params = init_params(kp)
    packed_params = pack_params(raw_params)

    N = 8
    z = jax.random.normal(kz, (N, LATENT_DIM), jnp.float32)
    y = jax.random.randint(ky, (N,), 0, NUM_DOMAINS, jnp.int32)

    s = jax.block_until_ready(mapping_network_forward(z, y, packed_params))
    s_ref = reference_forward(z, y, raw_params)

    assert s.shape == (N, STYLE_DIM), s.shape
    # bf16 weights + bf16 inter-layer activations (matched in the reference).
    assert jnp.allclose(s, s_ref, atol=2e-2, rtol=2e-2), float(
        jnp.max(jnp.abs(s - s_ref)))
    print("KERNEL_OK")
</pallas_src>

<mosaic_0001>
module attributes {stable_mosaic.version = 11 : i64} {
  func.func @mapping_kernel(%arg0: memref<8x16xf32, #tpu.memory_space<vmem>>, %arg1: memref<8x1xi32, #tpu.memory_space<vmem>>, %arg2: memref<16x512xbf16, #tpu.memory_space<vmem>>, %arg3: memref<3x512x512xbf16, #tpu.memory_space<vmem>>, %arg4: memref<16x512xbf16, #tpu.memory_space<vmem>>, %arg5: memref<512x1024xbf16, #tpu.memory_space<any>>, %arg6: memref<4x512x512xbf16, #tpu.memory_space<any>>, %arg7: memref<1024x128xbf16, #tpu.memory_space<any>>, %arg8: memref<8x64xf32, #tpu.memory_space<vmem>>, %arg9: memref<512x1024xbf16, #tpu.memory_space<vmem>>, %arg10: memref<4x512x512xbf16, #tpu.memory_space<vmem>>, %arg11: memref<1024x128xbf16, #tpu.memory_space<vmem>>, %arg12: memref<3x!tpu.dma_semaphore, #tpu.memory_space<semaphore_mem>>) attributes {dimension_semantics = [], scalar_prefetch = 0 : i64, scratch_operands = 4 : i64, tpu.core_type = #tpu.core_type<tc>} {
    %c0_i32 = arith.constant 0 : i32
    %0 = tpu.memref_slice %arg12[%c0_i32] : memref<3x!tpu.dma_semaphore, #tpu.memory_space<semaphore_mem>> -> memref<1x!tpu.dma_semaphore, #tpu.memory_space<semaphore_mem>>
    %1 = tpu.memref_squeeze %0 : memref<1x!tpu.dma_semaphore, #tpu.memory_space<semaphore_mem>> -> memref<!tpu.dma_semaphore, #tpu.memory_space<semaphore_mem>>
    tpu.enqueue_dma source(%arg5 : memref<512x1024xbf16, #tpu.memory_space<any>>) target(%arg9 : memref<512x1024xbf16, #tpu.memory_space<vmem>>) target_semaphore(%1 : memref<!tpu.dma_semaphore, #tpu.memory_space<semaphore_mem>>)
    %c1_i32 = arith.constant 1 : i32
    %2 = tpu.memref_slice %arg12[%c1_i32] : memref<3x!tpu.dma_semaphore, #tpu.memory_space<semaphore_mem>> -> memref<1x!tpu.dma_semaphore, #tpu.memory_space<semaphore_mem>>
    %3 = tpu.memref_squeeze %2 : memref<1x!tpu.dma_semaphore, #tpu.memory_space<semaphore_mem>> -> memref<!tpu.dma_semaphore, #tpu.memory_space<semaphore_mem>>
    tpu.enqueue_dma source(%arg6 : memref<4x512x512xbf16, #tpu.memory_space<any>>) target(%arg10 : memref<4x512x512xbf16, #tpu.memory_space<vmem>>) target_semaphore(%3 : memref<!tpu.dma_semaphore, #tpu.memory_space<semaphore_mem>>)
    %c2_i32 = arith.constant 2 : i32
    %4 = tpu.memref_slice %arg12[%c2_i32] : memref<3x!tpu.dma_semaphore, #tpu.memory_space<semaphore_mem>> -> memref<1x!tpu.dma_semaphore, #tpu.memory_space<semaphore_mem>>
    %5 = tpu.memref_squeeze %4 : memref<1x!tpu.dma_semaphore, #tpu.memory_space<semaphore_mem>> -> memref<!tpu.dma_semaphore, #tpu.memory_space<semaphore_mem>>
    tpu.enqueue_dma source(%arg7 : memref<1024x128xbf16, #tpu.memory_space<any>>) target(%arg11 : memref<1024x128xbf16, #tpu.memory_space<vmem>>) target_semaphore(%5 : memref<!tpu.dma_semaphore, #tpu.memory_space<semaphore_mem>>)
    %c0 = arith.constant 0 : index
    %c0_0 = arith.constant 0 : index
    %6 = vector.load %arg0[%c0, %c0_0] : memref<8x16xf32, #tpu.memory_space<vmem>>, vector<8x16xf32>
    %7 = arith.truncf %6 : vector<8x16xf32> to vector<8x16xbf16>
    %c0_1 = arith.constant 0 : index
    %c0_2 = arith.constant 0 : index
    %8 = vector.load %arg2[%c0_1, %c0_2] : memref<16x512xbf16, #tpu.memory_space<vmem>>, vector<16x512xbf16>
    %c0_3 = arith.constant 0 : index
    %c0_4 = arith.constant 0 : index
    %9 = vector.load %arg4[%c0_3, %c0_4] : memref<16x512xbf16, #tpu.memory_space<vmem>>, vector<1x512xbf16>
    %cst = arith.constant dense<0.000000e+00> : vector<8x512xf32>
    %10 = tpu.matmul %7, %8, %cst {dimension_numbers = #tpu.dot_dimension_numbers<[1], [0], [0], [1], [0, 0, 1, 1], [], []>} : vector<8x16xbf16>, vector<16x512xbf16>, vector<8x512xf32> -> vector<8x512xf32>
    %11 = arith.extf %9 : vector<1x512xbf16> to vector<1x512xf32>
    %12 = vector.broadcast %11 : vector<1x512xf32> to vector<8x512xf32>
    %13 = arith.addf %10, %12 : vector<8x512xf32>
    %cst_5 = arith.constant 0.000000e+00 : f32
    %14 = vector.broadcast %cst_5 : f32 to vector<8x512xf32>
    %15 = arith.maximumf %13, %14 : vector<8x512xf32>
    %16 = arith.truncf %15 : vector<8x512xf32> to vector<8x512xbf16>
    %c0_6 = arith.constant 0 : index
    %c0_7 = arith.constant 0 : index
    %c0_8 = arith.constant 0 : index
    %17 = vector.load %arg3[%c0_6, %c0_7, %c0_8] : memref<3x512x512xbf16, #tpu.memory_space<vmem>>, vector<1x512x512xbf16>
    %18 = vector.shape_cast %17 : vector<1x512x512xbf16> to vector<512x512xbf16>
    %c1 = arith.constant 1 : index
    %c0_9 = arith.constant 0 : index
    %19 = vector.load %arg4[%c1, %c0_9] : memref<16x512xbf16, #tpu.memory_space<vmem>>, vector<1x512xbf16>
    %cst_10 = arith.constant dense<0.000000e+00> : vector<8x512xf32>
    %20 = tpu.matmul %16, %18, %cst_10 {dimension_numbers = #tpu.dot_dimension_numbers<[1], [0], [0], [1], [0, 0, 1, 1], [], []>} : vector<8x512xbf16>, vector<512x512xbf16>, vector<8x512xf32> -> vector<8x512xf32>
    %21 = arith.extf %19 : vector<1x512xbf16> to vector<1x512xf32>
    %22 = vector.broadcast %21 : vector<1x512xf32> to vector<8x512xf32>
    %23 = arith.addf %20, %22 : vector<8x512xf32>
    %cst_11 = arith.constant 0.000000e+00 : f32
    %24 = vector.broadcast %cst_11 : f32 to vector<8x512xf32>
    %25 = arith.maximumf %23, %24 : vector<8x512xf32>
    %26 = arith.truncf %25 : vector<8x512xf32> to vector<8x512xbf16>
    %c1_12 = arith.constant 1 : index
    %c0_13 = arith.constant 0 : index
    %c0_14 = arith.constant 0 : index
    %27 = vector.load %arg3[%c1_12, %c0_13, %c0_14] : memref<3x512x512xbf16, #tpu.memory_space<vmem>>, vector<1x512x512xbf16>
    %28 = vector.shape_cast %27 : vector<1x512x512xbf16> to vector<512x512xbf16>
    %c2 = arith.constant 2 : index
    %c0_15 = arith.constant 0 : index
    %29 = vector.load %arg4[%c2, %c0_15] : memref<16x512xbf16, #tpu.memory_space<vmem>>, vector<1x512xbf16>
    %cst_16 = arith.constant dense<0.000000e+00> : vector<8x512xf32>
    %30 = tpu.matmul %26, %28, %cst_16 {dimension_numbers = #tpu.dot_dimension_numbers<[1], [0], [0], [1], [0, 0, 1, 1], [], []>} : vector<8x512xbf16>, vector<512x512xbf16>, vector<8x512xf32> -> vector<8x512xf32>
    %31 = arith.extf %29 : vector<1x512xbf16> to vector<1x512xf32>
    %32 = vector.broadcast %31 : vector<1x512xf32> to vector<8x512xf32>
    %33 = arith.addf %30, %32 : vector<8x512xf32>
    %cst_17 = arith.constant 0.000000e+00 : f32
    %34 = vector.broadcast %cst_17 : f32 to vector<8x512xf32>
    %35 = arith.maximumf %33, %34 : vector<8x512xf32>
    %36 = arith.truncf %35 : vector<8x512xf32> to vector<8x512xbf16>
    %c2_18 = arith.constant 2 : index
    %c0_19 = arith.constant 0 : index
    %c0_20 = arith.constant 0 : index
    %37 = vector.load %arg3[%c2_18, %c0_19, %c0_20] : memref<3x512x512xbf16, #tpu.memory_space<vmem>>, vector<1x512x512xbf16>
    %38 = vector.shape_cast %37 : vector<1x512x512xbf16> to vector<512x512xbf16>
    %c3 = arith.constant 3 : index
    %c0_21 = arith.constant 0 : index
    %39 = vector.load %arg4[%c3, %c0_21] : memref<16x512xbf16, #tpu.memory_space<vmem>>, vector<1x512xbf16>
    %cst_22 = arith.constant dense<0.000000e+00> : vector<8x512xf32>
    %40 = tpu.matmul %36, %38, %cst_22 {dimension_numbers = #tpu.dot_dimension_numbers<[1], [0], [0], [1], [0, 0, 1, 1], [], []>} : vector<8x512xbf16>, vector<512x512xbf16>, vector<8x512xf32> -> vector<8x512xf32>
    %41 = arith.extf %39 : vector<1x512xbf16> to vector<1x512xf32>
    %42 = vector.broadcast %41 : vector<1x512xf32> to vector<8x512xf32>
    %43 = arith.addf %40, %42 : vector<8x512xf32>
    %cst_23 = arith.constant 0.000000e+00 : f32
    %44 = vector.broadcast %cst_23 : f32 to vector<8x512xf32>
    %45 = arith.maximumf %43, %44 : vector<8x512xf32>
    %46 = arith.truncf %45 : vector<8x512xf32> to vector<8x512xbf16>
    %c0_i32_24 = arith.constant 0 : i32
    %47 = tpu.memref_slice %arg12[%c0_i32_24] : memref<3x!tpu.dma_semaphore, #tpu.memory_space<semaphore_mem>> -> memref<1x!tpu.dma_semaphore, #tpu.memory_space<semaphore_mem>>
    %48 = tpu.memref_squeeze %47 : memref<1x!tpu.dma_semaphore, #tpu.memory_space<semaphore_mem>> -> memref<!tpu.dma_semaphore, #tpu.memory_space<semaphore_mem>>
    tpu.wait_dma2 semaphore(%48 : memref<!tpu.dma_semaphore, #tpu.memory_space<semaphore_mem>>) src(%arg5 : memref<512x1024xbf16, #tpu.memory_space<any>>) dst(%arg9 : memref<512x1024xbf16, #tpu.memory_space<vmem>>)
    %c1_i32_25 = arith.constant 1 : i32
    %49 = tpu.memref_slice %arg12[%c1_i32_25] : memref<3x!tpu.dma_semaphore, #tpu.memory_space<semaphore_mem>> -> memref<1x!tpu.dma_semaphore, #tpu.memory_space<semaphore_mem>>
    %50 = tpu.memref_squeeze %49 : memref<1x!tpu.dma_semaphore, #tpu.memory_space<semaphore_mem>> -> memref<!tpu.dma_semaphore, #tpu.memory_space<semaphore_mem>>
    tpu.wait_dma2 semaphore(%50 : memref<!tpu.dma_semaphore, #tpu.memory_space<semaphore_mem>>) src(%arg6 : memref<4x512x512xbf16, #tpu.memory_space<any>>) dst(%arg10 : memref<4x512x512xbf16, #tpu.memory_space<vmem>>)
    %c2_i32_26 = arith.constant 2 : i32
    %51 = tpu.memref_slice %arg12[%c2_i32_26] : memref<3x!tpu.dma_semaphore, #tpu.memory_space<semaphore_mem>> -> memref<1x!tpu.dma_semaphore, #tpu.memory_space<semaphore_mem>>
    %52 = tpu.memref_squeeze %51 : memref<1x!tpu.dma_semaphore, #tpu.memory_space<semaphore_mem>> -> memref<!tpu.dma_semaphore, #tpu.memory_space<semaphore_mem>>
    tpu.wait_dma2 semaphore(%52 : memref<!tpu.dma_semaphore, #tpu.memory_space<semaphore_mem>>) src(%arg7 : memref<1024x128xbf16, #tpu.memory_space<any>>) dst(%arg11 : memref<1024x128xbf16, #tpu.memory_space<vmem>>)
    %c4 = arith.constant 4 : index
    %c0_27 = arith.constant 0 : index
    %53 = vector.load %arg4[%c4, %c0_27] : memref<16x512xbf16, #tpu.memory_space<vmem>>, vector<1x512xbf16>
    %c5 = arith.constant 5 : index
    %c0_28 = arith.constant 0 : index
    %54 = vector.load %arg4[%c5, %c0_28] : memref<16x512xbf16, #tpu.memory_space<vmem>>, vector<1x512xbf16>
    %55 = tpu.concatenate %53, %54 in 1 : vector<1x512xbf16>, vector<1x512xbf16> -> vector<1x1024xbf16>
    %c0_29 = arith.constant 0 : index
    %c0_30 = arith.constant 0 : index
    %56 = vector.load %arg9[%c0_29, %c0_30] : memref<512x1024xbf16, #tpu.memory_space<vmem>>, vector<512x1024xbf16>
    %cst_31 = arith.constant dense<0.000000e+00> : vector<8x1024xf32>
    %57 = tpu.matmul %46, %56, %cst_31 {dimension_numbers = #tpu.dot_dimension_numbers<[1], [0], [0], [1], [0, 0, 1, 1], [], []>} : vector<8x512xbf16>, vector<512x1024xbf16>, vector<8x1024xf32> -> vector<8x1024xf32>
    %58 = arith.extf %55 : vector<1x1024xbf16> to vector<1x1024xf32>
    %59 = vector.broadcast %58 : vector<1x1024xf32> to vector<8x1024xf32>
    %60 = arith.addf %57, %59 : vector<8x1024xf32>
    %cst_32 = arith.constant 0.000000e+00 : f32
    %61 = vector.broadcast %cst_32 : f32 to vector<8x1024xf32>
    %62 = arith.maximumf %60, %61 : vector<8x1024xf32>
    %63 = arith.truncf %62 : vector<8x1024xf32> to vector<8x1024xbf16>
    %64 = vector.extract_strided_slice %63 {offsets = [0, 0], sizes = [8, 512], strides = [1, 1]} : vector<8x1024xbf16> to vector<8x512xbf16>
    %c0_33 = arith.constant 0 : index
    %c0_34 = arith.constant 0 : index
    %c0_35 = arith.constant 0 : index
    %65 = vector.load %arg10[%c0_33, %c0_34, %c0_35] : memref<4x512x512xbf16, #tpu.memory_space<vmem>>, vector<1x512x512xbf16>
    %66 = vector.shape_cast %65 : vector<1x512x512xbf16> to vector<512x512xbf16>
    %c6 = arith.constant 6 : index
    %c0_36 = arith.constant 0 : index
    %67 = vector.load %arg4[%c6, %c0_36] : memref<16x512xbf16, #tpu.memory_space<vmem>>, vector<1x512xbf16>
    %cst_37 = arith.constant dense<0.000000e+00> : vector<8x512xf32>
    %68 = tpu.matmul %64, %66, %cst_37 {dimension_numbers = #tpu.dot_dimension_numbers<[1], [0], [0], [1], [0, 0, 1, 1], [], []>} : vector<8x512xbf16>, vector<512x512xbf16>, vector<8x512xf32> -> vector<8x512xf32>
    %69 = arith.extf %67 : vector<1x512xbf16> to vector<1x512xf32>
    %70 = vector.broadcast %69 : vector<1x512xf32> to vector<8x512xf32>
    %71 = arith.addf %68, %70 : vector<8x512xf32>
    %cst_38 = arith.constant 0.000000e+00 : f32
    %72 = vector.broadcast %cst_38 : f32 to vector<8x512xf32>
    %73 = arith.maximumf %71, %72 : vector<8x512xf32>
    %74 = arith.truncf %73 : vector<8x512xf32> to vector<8x512xbf16>
    %c2_39 = arith.constant 2 : index
    %c0_40 = arith.constant 0 : index
    %c0_41 = arith.constant 0 : index
    %75 = vector.load %arg10[%c2_39, %c0_40, %c0_41] : memref<4x512x512xbf16, #tpu.memory_space<vmem>>, vector<1x512x512xbf16>
    %76 = vector.shape_cast %75 : vector<1x512x512xbf16> to vector<512x512xbf16>
    %c8 = arith.constant 8 : index
    %c0_42 = arith.constant 0 : index
    %77 = vector.load %arg4[%c8, %c0_42] : memref<16x512xbf16, #tpu.memory_space<vmem>>, vector<1x512xbf16>
    %cst_43 = arith.constant dense<0.000000e+00> : vector<8x512xf32>
    %78 = tpu.matmul %74, %76, %cst_43 {dimension_numbers = #tpu.dot_dimension_numbers<[1], [0], [0], [1], [0, 0, 1, 1], [], []>} : vector<8x512xbf16>, vector<512x512xbf16>, vector<8x512xf32> -> vector<8x512xf32>
    %79 = arith.extf %77 : vector<1x512xbf16> to vector<1x512xf32>
    %80 = vector.broadcast %79 : vector<1x512xf32> to vector<8x512xf32>
    %81 = arith.addf %78, %80 : vector<8x512xf32>
    %cst_44 = arith.constant 0.000000e+00 : f32
    %82 = vector.broadcast %cst_44 : f32 to vector<8x512xf32>
    %83 = arith.maximumf %81, %82 : vector<8x512xf32>
    %84 = arith.truncf %83 : vector<8x512xf32> to vector<8x512xbf16>
    %85 = vector.extract_strided_slice %63 {offsets = [0, 512], sizes = [8, 512], strides = [1, 1]} : vector<8x1024xbf16> to vector<8x512xbf16>
    %c1_45 = arith.constant 1 : index
    %c0_46 = arith.constant 0 : index
    %c0_47 = arith.constant 0 : index
    %86 = vector.load %arg10[%c1_45, %c0_46, %c0_47] : memref<4x512x512xbf16, #tpu.memory_space<vmem>>, vector<1x512x512xbf16>
    %87 = vector.shape_cast %86 : vector<1x512x512xbf16> to vector<512x512xbf16>
    %c7 = arith.constant 7 : index
    %c0_48 = arith.constant 0 : index
    %88 = vector.load %arg4[%c7, %c0_48] : memref<16x512xbf16, #tpu.memory_space<vmem>>, vector<1x512xbf16>
    %cst_49 = arith.constant dense<0.000000e+00> : vector<8x512xf32>
    %89 = tpu.matmul %85, %87, %cst_49 {dimension_numbers = #tpu.dot_dimension_numbers<[1], [0], [0], [1], [0, 0, 1, 1], [], []>} : vector<8x512xbf16>, vector<512x512xbf16>, vector<8x512xf32> -> vector<8x512xf32>
    %90 = arith.extf %88 : vector<1x512xbf16> to vector<1x512xf32>
    %91 = vector.broadcast %90 : vector<1x512xf32> to vector<8x512xf32>
    %92 = arith.addf %89, %91 : vector<8x512xf32>
    %cst_50 = arith.constant 0.000000e+00 : f32
    %93 = vector.broadcast %cst_50 : f32 to vector<8x512xf32>
    %94 = arith.maximumf %92, %93 : vector<8x512xf32>
    %95 = arith.truncf %94 : vector<8x512xf32> to vector<8x512xbf16>
    %c3_51 = arith.constant 3 : index
    %c0_52 = arith.constant 0 : index
    %c0_53 = arith.constant 0 : index
    %96 = vector.load %arg10[%c3_51, %c0_52, %c0_53] : memref<4x512x512xbf16, #tpu.memory_space<vmem>>, vector<1x512x512xbf16>
    %97 = vector.shape_cast %96 : vector<1x512x512xbf16> to vector<512x512xbf16>
    %c9 = arith.constant 9 : index
    %c0_54 = arith.constant 0 : index
    %98 = vector.load %arg4[%c9, %c0_54] : memref<16x512xbf16, #tpu.memory_space<vmem>>, vector<1x512xbf16>
    %cst_55 = arith.constant dense<0.000000e+00> : vector<8x512xf32>
    %99 = tpu.matmul %95, %97, %cst_55 {dimension_numbers = #tpu.dot_dimension_numbers<[1], [0], [0], [1], [0, 0, 1, 1], [], []>} : vector<8x512xbf16>, vector<512x512xbf16>, vector<8x512xf32> -> vector<8x512xf32>
    %100 = arith.extf %98 : vector<1x512xbf16> to vector<1x512xf32>
    %101 = vector.broadcast %100 : vector<1x512xf32> to vector<8x512xf32>
    %102 = arith.addf %99, %101 : vector<8x512xf32>
    %cst_56 = arith.constant 0.000000e+00 : f32
    %103 = vector.broadcast %cst_56 : f32 to vector<8x512xf32>
    %104 = arith.maximumf %102, %103 : vector<8x512xf32>
    %105 = arith.truncf %104 : vector<8x512xf32> to vector<8x512xbf16>
    %106 = tpu.concatenate %84, %105 in 1 : vector<8x512xbf16>, vector<8x512xbf16> -> vector<8x1024xbf16>
    %c0_57 = arith.constant 0 : index
    %c0_58 = arith.constant 0 : index
    %107 = vector.load %arg11[%c0_57, %c0_58] : memref<1024x128xbf16, #tpu.memory_space<vmem>>, vector<1024x128xbf16>
    %cst_59 = arith.constant dense<0.000000e+00> : vector<8x128xf32>
    %108 = tpu.matmul %106, %107, %cst_59 {dimension_numbers = #tpu.dot_dimension_numbers<[1], [0], [0], [1], [0, 0, 1, 1], [], []>} : vector<8x1024xbf16>, vector<1024x128xbf16>, vector<8x128xf32> -> vector<8x128xf32>
    %c10 = arith.constant 10 : index
    %c0_60 = arith.constant 0 : index
    %109 = vector.load %arg4[%c10, %c0_60] : memref<16x512xbf16, #tpu.memory_space<vmem>>, vector<1x128xbf16>
    %110 = arith.extf %109 : vector<1x128xbf16> to vector<1x128xf32>
    %111 = vector.broadcast %110 : vector<1x128xf32> to vector<8x128xf32>
    %112 = arith.addf %108, %111 : vector<8x128xf32>
    %c0_61 = arith.constant 0 : index
    %c0_62 = arith.constant 0 : index
    %113 = vector.load %arg1[%c0_61, %c0_62] : memref<8x1xi32, #tpu.memory_space<vmem>>, vector<8x1xi32>
    %cst_63 = arith.constant 0.000000e+00 : f32
    %114 = vector.broadcast %cst_63 : f32 to vector<8x64xf32>
    %c0_i32_64 = arith.constant 0 : i32
    %115 = vector.broadcast %c0_i32_64 : i32 to vector<8x1xi32>
    %116 = arith.cmpi eq, %113, %115 : vector<8x1xi32>
    %117 = vector.extract_strided_slice %112 {offsets = [0, 0], sizes = [8, 64], strides = [1, 1]} : vector<8x128xf32> to vector<8x64xf32>
    %118 = vector.shape_cast %116 : vector<8x1xi1> to vector<8x1xi1>
    %119 = vector.broadcast %118 : vector<8x1xi1> to vector<8x64xi1>
    %120 = arith.select %119, %117, %114 : vector<8x64xi1>, vector<8x64xf32>
    %c1_i32_65 = arith.constant 1 : i32
    %121 = vector.broadcast %c1_i32_65 : i32 to vector<8x1xi32>
    %122 = arith.cmpi eq, %113, %121 : vector<8x1xi32>
    %123 = vector.extract_strided_slice %112 {offsets = [0, 64], sizes = [8, 64], strides = [1, 1]} : vector<8x128xf32> to vector<8x64xf32>
    %124 = vector.shape_cast %122 : vector<8x1xi1> to vector<8x1xi1>
    %125 = vector.broadcast %124 : vector<8x1xi1> to vector<8x64xi1>
    %126 = arith.select %125, %123, %120 : vector<8x64xi1>, vector<8x64xf32>
    %c0_66 = arith.constant 0 : index
    %c0_67 = arith.constant 0 : index
    %127 = vector.load %arg8[%c0_66, %c0_67] : memref<8x64xf32, #tpu.memory_space<vmem>>, vector<8x64xf32>
    tpu.vector_store %arg8[%c0_66, %c0_67], %126 {strides = array<i32>} : memref<8x64xf32, #tpu.memory_space<vmem>>, vector<8x64xf32>,
    return
  }
}

</mosaic_0001>

<bundles_post_ra>
// kernel: tpu_custom_call.1
= control target key start
LH: loop header
LB: loop body
LE: loop exit
PB: predicated region body
PF: predicated region fallthrough
CT: control target
= control target key end

     0   :  { %13 = vsyncpa [#allocation7], 0  ;;  %s7193_s0 = inlined_call_operand.hbm [shape: f32[8,16], index: 0, kind: input, shape index: {}]   ;;  %s7194_s1 = inlined_call_operand.vmem [shape: s32[8,1], index: 1, kind: input, shape index: {}]   ;;  %s7195_s2 = inlined_call_operand.hbm [shape: bf16[16,512], index: 2, kind: input, shape index: {}]   ;;  %s7196_s3 = inlined_call_operand.hbm [shape: bf16[3,512,512], index: 3, kind: input, shape index: {}]   ;;  %s7197_s4 = inlined_call_operand.hbm [shape: bf16[16,512], index: 4, kind: input, shape index: {}]   ;;  %s7198_s5 = inlined_call_operand.hbm [shape: bf16[512,1024], index: 5, kind: input, shape index: {}]   ;;  %s7199_s6 = inlined_call_operand.hbm [shape: bf16[4,512,512], index: 6, kind: input, shape index: {}]   ;;  %s7200_s7 = inlined_call_operand.hbm [shape: bf16[1024,128], index: 7, kind: input, shape index: {}]   ;;  %s7201_s8 = inlined_call_operand.hbm [shape: f32[8,64], index: 8, kind: output, shape index: {}]  }
   0x1   :  { %14 = vsyncpa [#allocation10], 0 }
   0x2   :  { %15 = vsyncpa [#allocation13], 0 }
   0x3   :  { %16 = vsyncpa [#allocation8], 0  ;;  %s6786_s27 = smov [#allocation9]   ;;  %s6640_s9 = scalar_lea.hbm %s7195_s2, 512 }
   0x4   :  { %s34_s28 = sshll.u32 %s6786_s27, 4  ;;  %p6641_p0 = scmp.ne.s32.totalorder %s7195_s2, %s6640_s9  ;;  %s35_s28 = int_to_ptr.vmem [resolvable:$true] %s34_s28 }
   0x5   :  { %p6644_p1 = scmp.lt.u32.totalorder %s6640_s9, %s7195_s2 }
   0x7   :  { %p6646_p2 = pnand %p6644_p1, %p6641_p0 }
   0x9   :  { %6649 = shalt.err (!%p6646_p2)
}
   0xa   :  { %s6650_s14 = scalar_lea.vmem %s35_s28, 512  ;;  %p6655_p4 = scmp.lt.s32.totalorder %s35_s28, %s35_s28 }
   0xb   :  { %p6651_p3 = scmp.ne.s32.totalorder %s35_s28, %s6650_s14  ;;  %p6656_p5 = scmp.lt.s32.totalorder %s6650_s14, %s6650_s14 }
   0xd   :  { %p6657_p6 = por %p6656_p5, %p6655_p4 }
   0xf   :  { %p6658_p7 = pnand %p6657_p6, %p6651_p3 }
  0x11   :  { %6661 = shalt.err (!%p6658_p7)
}
  0x12   :  { %s6787_s15 = smov 256   ;;  %s6788_s16 = smov 16  }
  0x13   :  { %40 = dma.hbm_to_vmem [thread:$0]  %s7195_s2, 512, %s35_s28, [#allocation10], %s6787_s15, %s6787_s15, %s6788_s16  }
  0x14   :  { %s6789_s19 = smov [#allocation6]   ;;  %s6790_s21 = smov [#allocation11]  }
  0x15   :  { %s23_s20 = sshll.u32 %s6789_s19, 4  ;;  %s46_s22 = sshll.u32 %s6790_s21, 4  ;;  %s24_s20 = int_to_ptr.vmem [resolvable:$true] %s23_s20  ;;  %s47_s22 = int_to_ptr.vmem [resolvable:$true] %s46_s22 }
  0x16   :  { %s6662_s25 = scalar_lea.hbm %s7193_s0, 128 }
  0x17   :  { %p6663_p8 = scmp.ne.s32.totalorder %s7193_s0, %s6662_s25  ;;  %p6666_p9 = scmp.lt.u32.totalorder %s6662_s25, %s7193_s0 }
  0x19   :  { %p6668_p10 = pnand %p6666_p9, %p6663_p8 }
  0x1b   :  { %6671 = shalt.err (!%p6668_p10)
}
  0x1c   :  { %s6672_s2 = scalar_lea.vmem %s24_s20, 128  ;;  %p6677_p12 = scmp.lt.s32.totalorder %s24_s20, %s24_s20 }
  0x1d   :  { %p6673_p11 = scmp.ne.s32.totalorder %s24_s20, %s6672_s2  ;;  %p6678_p13 = scmp.lt.s32.totalorder %s6672_s2, %s6672_s2 }
  0x1f   :  { %p6679_p0 = por %p6678_p13, %p6677_p12 }
  0x21   :  { %p6680_p1 = pnand %p6679_p0, %p6673_p11 }
  0x23   :  { %6683 = shalt.err (!%p6680_p1)
}
  0x24   :  { %26 = dma.hbm_to_vmem [thread:$0]  %s7193_s0, 128, %s24_s20, [#allocation7]  }
  0x25   :  { %s6684_s12 = scalar_lea.hbm %s7196_s3, 49152 }
  0x26   :  { %p6685_p2 = scmp.ne.s32.totalorder %s7196_s3, %s6684_s12  ;;  %p6688_p3 = scmp.lt.u32.totalorder %s6684_s12, %s7196_s3 }
  0x28   :  { %p6690_p4 = pnand %p6688_p3, %p6685_p2 }
  0x2a   :  { %6693 = shalt.err (!%p6690_p4)
}
  0x2b   :  { %s6694_s19 = scalar_lea.vmem %s47_s22, 49152  ;;  %p6699_p6 = scmp.lt.s32.totalorder %s47_s22, %s47_s22 }
  0x2c   :  { %p6695_p5 = scmp.ne.s32.totalorder %s47_s22, %s6694_s19  ;;  %p6700_p7 = scmp.lt.s32.totalorder %s6694_s19, %s6694_s19 }
  0x2e   :  { %p6701_p8 = por %p6700_p7, %p6699_p6 }
  0x30   :  { %p6702_p9 = pnand %p6701_p8, %p6695_p5 }
  0x32   :  { %6705 = shalt.err (!%p6702_p9)
}
  0x33   :  { %52 = dma.hbm_to_vmem [thread:$0]  %s7196_s3, 49152, %s47_s22, [#allocation10], %s6787_s15, %s6787_s15, %s6788_s16  }
  0x34   :  { %s6791_s21 = smov [#allocation12]   ;;  %s6706_s26 = scalar_lea.hbm %s7197_s4, 512 }
  0x35   :  { %s58_s23 = sshll.u32 %s6791_s21, 4  ;;  %p6707_p10 = scmp.ne.s32.totalorder %s7197_s4, %s6706_s26  ;;  %s59_s23 = int_to_ptr.vmem [resolvable:$true] %s58_s23 }
  0x36   :  { %p6710_p11 = scmp.lt.u32.totalorder %s6706_s26, %s7197_s4 }
  0x38   :  { %p6712_p12 = pnand %p6710_p11, %p6707_p10 }
  0x3a   :  { %6715 = shalt.err (!%p6712_p12)
}
  0x3b   :  { %s6716_s28 = scalar_lea.vmem %s59_s23, 512  ;;  %p6721_p0 = scmp.lt.s32.totalorder %s59_s23, %s59_s23 }
  0x3c   :  { %p6717_p13 = scmp.ne.s32.totalorder %s59_s23, %s6716_s28  ;;  %p6722_p1 = scmp.lt.s32.totalorder %s6716_s28, %s6716_s28 }
  0x3e   :  { %p6723_p2 = por %p6722_p1, %p6721_p0 }
  0x40   :  { %p6724_p3 = pnand %p6723_p2, %p6717_p13 }
  0x42   :  { %6727 = shalt.err (!%p6724_p3)
}
  0x43   :  { %64 = dma.hbm_to_vmem [thread:$0]  %s7197_s4, 512, %s59_s23, [#allocation13], %s6787_s15, %s6787_s15, %s6788_s16  }
  0x44   :  { %6772 = dma.done.wait [#allocation7], 128  }
  0x45   :  { %6773 = vsyncadd [#allocation7], 4294967168 }
  0x46   :  { %6774 = dma.done.wait [#allocation10], 49664  }
  0x47   :  { %6775 = vsyncadd [#allocation10], 4294917632 }
  0x48   :  { %6776 = dma.done.wait [#allocation13], 512  }
  0x49   :  { %6777 = vsyncadd [#allocation13], 4294966784  ;;  %s82_s9 = sld [smem:[#allocation0]]   ;;  %s6792_s10 = smov 1024   ;;  %v6793_v0 = vmov 0   ;;  %vm208_vm0 = vcmask 130048  }
  0x4a   :  { %94 = sst [smem:[#allocation16]] %s6792_s10  ;;  %244 = vmatprep.mubr.bf16.mxu0 %v6793_v0  ;;  %285 = vmatprep.mubr.bf16.mxu1 %v6793_v0  ;;  %s6794_s11 = smov 8  }
  0x4b   :  { %96 = sst [smem:[#allocation16 + $0x1]] %s6792_s10  ;;  %s6795_s12 = smov [#allocation2]  }
  0x4c   :  { %98 = sst [smem:[#allocation16 + $0x2]] %s6794_s11  ;;  %s90_s13 = sshll.u32 %s6795_s12, 4  ;;  %s91_s13 = int_to_ptr.vmem [resolvable:$true] %s90_s13 }
  0x4d   :  { %s6796_s4 = smov 64   ;;  %s6797_s16 = smov 128  }
  0x4e   :  { %100 = sst [smem:[#allocation16 + $0x3]] %s6796_s4  ;;  %s6798_s17 = smov 2  }
  0x4f   :  { %102 = sst [smem:[#allocation16 + $0x4]] %s6797_s16  ;;  %s5434_s14 = sshll.u32 %s82_s9, 26 }
  0x50   :  { %104 = sst [smem:[#allocation16 + $0x5]] %s6798_s17  ;;  %s5435_s18 = sadd.s32 134217728, %s5434_s14 }
  0x51   :  { %s6799_s19 = smov 512   ;;  %108 = sst [smem:[#allocation16 + $0x7]] %s6796_s4 }
  0x52   :  { %106 = sst [smem:[#allocation16 + $0x6]] %s6799_s19  ;;  %s6800_s0 = smov 4  }
  0x53   :  { %110 = sst [smem:[#allocation16 + $0x8]] %s6800_s0  ;;  %s6801_s20 = smov [#allocation5]  }
  0x54   :  { %s6802_s21 = smov [#allocation15]   ;;  %s6803_s25 = smov [#allocation3]  }
  0x55   :  { %112 = dma.general %s7198_s5, 32768, %s91_s13, %s6801_s20, %s6802_s21, [#allocation16], %s5435_s18, 0  }
  0x56   :  { %129 = sst [smem:[#allocation18]] %s6799_s19  ;;  %s125_s26 = sshll.u32 %s6803_s25, 4  ;;  %s126_s26 = int_to_ptr.vmem [resolvable:$true] %s125_s26 }
  0x57   :  { %131 = sst [smem:[#allocation18 + $0x1]] %s6799_s19  ;;  %s6804_s27 = smov [#allocation5 + $0x1]  }
  0x58   :  { %133 = sst [smem:[#allocation18 + $0x2]] %s6800_s0  ;;  %s6805_s29 = smov [#allocation17]  }
  0x59   :  { %135 = sst [smem:[#allocation18 + $0x3]] %s6796_s4  ;;  %s6806_s5 = smov [#allocation4]  }
  0x5a   :  { %137 = sst [smem:[#allocation18 + $0x4]] %s6797_s16  ;;  %s6728_s3 = scalar_lea.hbm %s7200_s7, 8192 }
  0x5b   :  { %139 = sst [smem:[#allocation18 + $0x5]] %s6798_s17  ;;  %p6729_p4 = scmp.ne.s32.totalorder %s7200_s7, %s6728_s3 }
  0x5c   :  { %141 = sst [smem:[#allocation18 + $0x6]] %s6787_s15  ;;  %p6732_p5 = scmp.lt.u32.totalorder %s6728_s3, %s7200_s7 }
  0x5d   :  { %143 = sst [smem:[#allocation18 + $0x7]] %s6796_s4 }
  0x5e   :  { %145 = sst [smem:[#allocation18 + $0x8]] %s6800_s0  ;;  %p6734_p6 = pnand %p6732_p5, %p6729_p4 }
  0x5f   :  { %147 = dma.general %s7199_s6, 65536, %s126_s26, %s6804_s27, %s6805_s29, [#allocation18], %s5435_s18, 0  }
  0x60   :  { %v6053_v1 = vld [vmem:[#allocation9 + $0x4] ss:$16 sps:$4 sm:$0xff]   ;;  %v6055_v2 = vld [vmem:[#allocation9] ss:$16 sps:$4 sm:$0xff]   ;;  %v160_v3 = vld [vmem:[#allocation6] sm:$0xff]  ;;  %s156_s6 = sshll.u32 %s6806_s5, 4  ;;  %s157_s6 = int_to_ptr.vmem [resolvable:$true] %s156_s6 }
  0x61   :  { %212 = vmatprep.subr.bf16.mxu0 %v6053_v1  ;;  %v161_v4 = vpack.c.bf16 %v160_v3, %v160_v3  ;;  %v6056_v5 = vld [vmem:[#allocation9 + $0xc] ss:$16 sps:$4 sm:$0xff]   ;;  %v6058_v6 = vld [vmem:[#allocation9 + $0x8] ss:$16 sps:$4 sm:$0xff]   ;;  %v6059_v7 = vld [vmem:[#allocation11] ss:$16 sps:$4 sm:$0xff]  }
  0x62   :  { %213 = vmatpush1.bf16.msra.mxu0 %v6055_v2  ;;  %253 = vmatprep.subr.bf16.mxu1 %v6056_v5  ;;  %v6061_v8 = vld [vmem:[#allocation11 + $0x4] ss:$16 sps:$4 sm:$0xff]   ;;  %v6062_v9 = vld [vmem:[#allocation11 + $0x8] ss:$16 sps:$4 sm:$0xff]   ;;  %v6064_v10 = vld [vmem:[#allocation11 + $0xc] ss:$16 sps:$4 sm:$0xff]  }
  0x63   :  { %254 = vmatpush1.bf16.msra.mxu1 %v6058_v6  ;;  %1086 = vmatprep.subr.bf16.mxu0 %v6061_v8  ;;  %v6067_v11 = vld [vmem:[#allocation11 + $0x24] ss:$16 sps:$4 sm:$0xff]   ;;  %v6065_v12 = vld [vmem:[#allocation11 + $0x20] ss:$16 sps:$4 sm:$0xff]   ;;  %v6070_v13 = vld [vmem:[#allocation11 + $0x2c] ss:$16 sps:$4 sm:$0xff]  }
  0x64   :  { %1168 = vmatprep.subr.bf16.mxu1 %v6064_v10  ;;  %v6068_v14 = vld [vmem:[#allocation11 + $0x28] ss:$16 sps:$4 sm:$0xff]   ;;  %v6073_v15 = vld [vmem:[#allocation11 + $0x44] ss:$16 sps:$4 sm:$0xff]   ;;  %v6076_v16 = vld [vmem:[#allocation11 + $0x4c] ss:$16 sps:$4 sm:$0xff]   ;;  %v172_v10 = vlaneseq }
  0x65   :  { %5442 = vmatmul.mubr.msk.bf16.vlgmr.msra.gmra.mrb[0].mxu0 %vm208_vm0, %v161_v4  ;;  %v6071_v17 = vld [vmem:[#allocation11 + $0x40] ss:$16 sps:$4 sm:$0xff]   ;;  %v6079_v18 = vld [vmem:[#allocation11 + $0x64] ss:$16 sps:$4 sm:$0xff]   ;;  %v6074_v19 = vld [vmem:[#allocation11 + $0x48] ss:$16 sps:$4 sm:$0xff]  }
  0x66   :  { %1087 = vmatpush1.bf16.msra.mxu0 %v6059_v7  ;;  %5443 = vmatmul.mubr.msk.bf16.vlgmr.msra.gmra.mrb[0].mxu1 %vm208_vm0, %v161_v4  ;;  %v6082_v20 = vld [vmem:[#allocation11 + $0x6c] ss:$16 sps:$4 sm:$0xff]   ;;  %v6077_v21 = vld [vmem:[#allocation11 + $0x60] ss:$16 sps:$4 sm:$0xff]   ;;  %v6085_v22 = vld [vmem:[#allocation11 + $0x84] ss:$16 sps:$4 sm:$0xff]  }
  0x67   :  { %1088 = vmatprep.subr.bf16.mxu0 %v6067_v11  ;;  %1169 = vmatpush1.bf16.msra.mxu1 %v6062_v9  ;;  %v6080_v23 = vld [vmem:[#allocation11 + $0x68] ss:$16 sps:$4 sm:$0xff]   ;;  %v6088_v24 = vld [vmem:[#allocation11 + $0x8c] ss:$16 sps:$4 sm:$0xff]   ;;  %v6083_v25 = vld [vmem:[#allocation11 + $0x80] ss:$16 sps:$4 sm:$0xff]  }
  0x68   :  { %1170 = vmatprep.subr.bf16.mxu1 %v6070_v13  ;;  %v6091_v26 = vld [vmem:[#allocation11 + $0xa4] ss:$16 sps:$4 sm:$0xff]   ;;  %v6086_v27 = vld [vmem:[#allocation11 + $0x88] ss:$16 sps:$4 sm:$0xff]   ;;  %v6094_v28 = vld [vmem:[#allocation11 + $0xac] ss:$16 sps:$4 sm:$0xff]  }
  0x69   :  { %v6089_v29 = vld [vmem:[#allocation11 + $0xa0] ss:$16 sps:$4 sm:$0xff]   ;;  %v6097_v30 = vld [vmem:[#allocation11 + $0xc4] ss:$16 sps:$4 sm:$0xff]   ;;  %v6092_v31 = vld [vmem:[#allocation11 + $0xa8] ss:$16 sps:$4 sm:$0xff]  }
  0x6a   :  { %1089 = vmatpush1.bf16.msra.mxu0 %v6065_v12  ;;  %v6100_v32 = vld [vmem:[#allocation11 + $0xcc] ss:$16 sps:$4 sm:$0xff]   ;;  %v6095_v33 = vld [vmem:[#allocation11 + $0xc0] ss:$16 sps:$4 sm:$0xff]   ;;  %v6103_v34 = vld [vmem:[#allocation11 + $0xe4] ss:$16 sps:$4 sm:$0xff]  }
  0x6b   :  { %1090 = vmatprep.subr.bf16.mxu0 %v6073_v15  ;;  %1171 = vmatpush1.bf16.msra.mxu1 %v6068_v14  ;;  %v6098_v35 = vld [vmem:[#allocation11 + $0xc8] ss:$16 sps:$4 sm:$0xff]   ;;  %v6106_v36 = vld [vmem:[#allocation11 + $0xec] ss:$16 sps:$4 sm:$0xff]   ;;  %v6101_v37 = vld [vmem:[#allocation11 + $0xe0] ss:$16 sps:$4 sm:$0xff]  }
  0x6c   :  { %1172 = vmatprep.subr.bf16.mxu1 %v6076_v16  ;;  %v6109_v38 = vld [vmem:[#allocation11 + $0x104] ss:$16 sps:$4 sm:$0xff]   ;;  %v6104_v39 = vld [vmem:[#allocation11 + $0xe8] ss:$16 sps:$4 sm:$0xff]   ;;  %v6112_v40 = vld [vmem:[#allocation11 + $0x10c] ss:$16 sps:$4 sm:$0xff]  }
  0x6d   :  { %v6107_v41 = vld [vmem:[#allocation11 + $0x100] ss:$16 sps:$4 sm:$0xff]   ;;  %v6115_v42 = vld [vmem:[#allocation11 + $0x124] ss:$16 sps:$4 sm:$0xff]   ;;  %v6110_v43 = vld [vmem:[#allocation11 + $0x108] ss:$16 sps:$4 sm:$0xff]  }
  0x6e   :  { %1091 = vmatpush1.bf16.msra.mxu0 %v6071_v17  ;;  %v6113_v44 = vld [vmem:[#allocation11 + $0x120] ss:$16 sps:$4 sm:$0xff]   ;;  %v6118_v45 = vld [vmem:[#allocation11 + $0x12c] ss:$16 sps:$4 sm:$0xff]   ;;  %v6116_v46 = vld [vmem:[#allocation11 + $0x128] ss:$16 sps:$4 sm:$0xff]  }
  0x6f   :  { %1092 = vmatprep.subr.bf16.mxu0 %v6079_v18  ;;  %1173 = vmatpush1.bf16.msra.mxu1 %v6074_v19  ;;  %v6121_v47 = vld [vmem:[#allocation11 + $0x144] ss:$16 sps:$4 sm:$0xff]   ;;  %v6124_v48 = vld [vmem:[#allocation11 + $0x14c] ss:$16 sps:$4 sm:$0xff]   ;;  %v6119_v49 = vld [vmem:[#allocation11 + $0x140] ss:$16 sps:$4 sm:$0xff]  }
  0x70   :  { %1174 = vmatprep.subr.bf16.mxu1 %v6082_v20  ;;  %v6127_v50 = vld [vmem:[#allocation11 + $0x164] ss:$16 sps:$4 sm:$0xff]   ;;  %v6122_v51 = vld [vmem:[#allocation11 + $0x148] ss:$16 sps:$4 sm:$0xff]   ;;  %v6130_v52 = vld [vmem:[#allocation11 + $0x16c] ss:$16 sps:$4 sm:$0xff]  }
  0x71   :  { %v6125_v53 = vld [vmem:[#allocation11 + $0x160] ss:$16 sps:$4 sm:$0xff]   ;;  %v6133_v54 = vld [vmem:[#allocation11 + $0x184] ss:$16 sps:$4 sm:$0xff]   ;;  %v6128_v55 = vld [vmem:[#allocation11 + $0x168] ss:$16 sps:$4 sm:$0xff]  }
  0x72   :  { %1093 = vmatpush1.bf16.msra.mxu0 %v6077_v21  ;;  %v6136_v56 = vld [vmem:[#allocation11 + $0x18c] ss:$16 sps:$4 sm:$0xff]   ;;  %v6131_v57 = vld [vmem:[#allocation11 + $0x180] ss:$16 sps:$4 sm:$0xff]   ;;  %v6139_v58 = vld [vmem:[#allocation11 + $0x1a4] ss:$16 sps:$4 sm:$0xff]  }
  0x73   :  { %1094 = vmatprep.subr.bf16.mxu0 %v6085_v22  ;;  %1175 = vmatpush1.bf16.msra.mxu1 %v6080_v23  ;;  %v6134_v59 = vld [vmem:[#allocation11 + $0x188] ss:$16 sps:$4 sm:$0xff]   ;;  %v6142_v60 = vld [vmem:[#allocation11 + $0x1ac] ss:$16 sps:$4 sm:$0xff]   ;;  %v6137_v61 = vld [vmem:[#allocation11 + $0x1a0] ss:$16 sps:$4 sm:$0xff]  }
  0x74   :  { %1176 = vmatprep.subr.bf16.mxu1 %v6088_v24  ;;  %v6140_v62 = vld [vmem:[#allocation11 + $0x1a8] ss:$16 sps:$4 sm:$0xff]   ;;  %v6145_v63 = vld [vmem:[#allocation11 + $0x1c4] ss:$16 sps:$4 sm:$0xff]   ;;  %v6148_v1 = vld [vmem:[#allocation11 + $0x1cc] ss:$16 sps:$4 sm:$0xff]  }
  0x75   :  { %v6143_v2 = vld [vmem:[#allocation11 + $0x1c0] ss:$16 sps:$4 sm:$0xff]   ;;  %v6146_v3 = vld [vmem:[#allocation11 + $0x1c8] ss:$16 sps:$4 sm:$0xff]   ;;  %v6151_v4 = vld [vmem:[#allocation11 + $0x1e4] ss:$16 sps:$4 sm:$0xff]  }
  0x76   :  { %1095 = vmatpush1.bf16.msra.mxu0 %v6083_v25  ;;  %v6154_v5 = vld [vmem:[#allocation11 + $0x1ec] ss:$16 sps:$4 sm:$0xff]   ;;  %v6149_v6 = vld [vmem:[#allocation11 + $0x1e0] ss:$16 sps:$4 sm:$0xff]   ;;  %v6152_v7 = vld [vmem:[#allocation11 + $0x1e8] ss:$16 sps:$4 sm:$0xff]  }
  0x77   :  { %1096 = vmatprep.subr.bf16.mxu0 %v6091_v26  ;;  %1177 = vmatpush1.bf16.msra.mxu1 %v6086_v27  ;;  %v6157_v8 = vld [vmem:[#allocation11 + $0x204] ss:$16 sps:$4 sm:$0xff]   ;;  %v6160_v9 = vld [vmem:[#allocation11 + $0x20c] ss:$16 sps:$4 sm:$0xff]   ;;  %v6923_v11 = vshrl.u32 %v172_v10, 7 }
  0x78   :  { %1178 = vmatprep.subr.bf16.mxu1 %v6094_v28  ;;  %v6925_v12 = vld [vmem:[#allocation12] sm:$0x11]  ;;  %v6931_v15 = vld [vmem:[#allocation12 + $0x8] sm:$0x11] }
  0x79   :  { %v168_v13 = vunpack.c.l.bf16 %v6925_v12  ;;  %v6929_v14 = vsub.s32 0, %v6923_v11  ;;  %v169_v16 = vunpack.c.h.bf16 %v6925_v12  ;;  %v171_v17 = vunpack.c.h.bf16 %v6931_v15  ;;  %v6214_v10 = vld [vmem:[#allocation11 + $0x32c] ss:$16 sps:$4 sm:$0xff]  }
  0x7a   :  { %1097 = vmatpush1.bf16.msra.mxu0 %v6089_v29 }
  0x7b   :  { %1098 = vmatprep.subr.bf16.mxu0 %v6097_v30  ;;  %1179 = vmatpush1.bf16.msra.mxu1 %v6092_v31  ;;  %v175_v18 = vrot.slane %v168_v13, %v6929_v14  ;;  %v179_v19 = vrot.slane %v169_v16, %v6929_v14  ;;  %v187_v21 = vrot.slane %v171_v17, %v6929_v14 }
  0x7c   :  { %1180 = vmatprep.subr.bf16.mxu1 %v6100_v32 }
  0x7e   :  { %1099 = vmatpush1.bf16.msra.mxu0 %v6095_v33 }
  0x7f   :  { %1100 = vmatprep.subr.bf16.mxu0 %v6103_v34  ;;  %1181 = vmatpush1.bf16.msra.mxu1 %v6098_v35  ;;  %v6155_v35 = vld [vmem:[#allocation11 + $0x200] ss:$16 sps:$4 sm:$0xff]  }
  0x80   :  { %1182 = vmatprep.subr.bf16.mxu1 %v6106_v36  ;;  %v6158_v36 = vld [vmem:[#allocation11 + $0x208] ss:$16 sps:$4 sm:$0xff]  }
  0x82   :  { %1101 = vmatpush1.bf16.msra.mxu0 %v6101_v37 }
  0x83   :  { %1102 = vmatprep.subr.bf16.mxu0 %v6109_v38  ;;  %1183 = vmatpush1.bf16.msra.mxu1 %v6104_v39  ;;  %v6163_v39 = vld [vmem:[#allocation11 + $0x224] ss:$16 sps:$4 sm:$0xff]  }
  0x84   :  { %1184 = vmatprep.subr.bf16.mxu1 %v6112_v40  ;;  %v6166_v40 = vld [vmem:[#allocation11 + $0x22c] ss:$16 sps:$4 sm:$0xff]  }
  0x86   :  { %1103 = vmatpush1.bf16.msra.mxu0 %v6107_v41 }
  0x87   :  { %1104 = vmatprep.subr.bf16.mxu0 %v6115_v42  ;;  %1185 = vmatpush1.bf16.msra.mxu1 %v6110_v43  ;;  %v6161_v42 = vld [vmem:[#allocation11 + $0x220] ss:$16 sps:$4 sm:$0xff]   ;;  %v6164_v43 = vld [vmem:[#allocation11 + $0x228] ss:$16 sps:$4 sm:$0xff]  }
  0x88   :  { %1186 = vmatprep.subr.bf16.mxu1 %v6118_v45  ;;  %v6172_v45 = vld [vmem:[#allocation11 + $0x24c] ss:$16 sps:$4 sm:$0xff]  }
  0x8a   :  { %1105 = vmatpush1.bf16.msra.mxu0 %v6113_v44  ;;  %v6169_v44 = vld [vmem:[#allocation11 + $0x244] ss:$16 sps:$4 sm:$0xff]  }
  0x8b   :  { %1106 = vmatprep.subr.bf16.mxu0 %v6121_v47  ;;  %1187 = vmatpush1.bf16.msra.mxu1 %v6116_v46  ;;  %v6167_v46 = vld [vmem:[#allocation11 + $0x240] ss:$16 sps:$4 sm:$0xff]   ;;  %v6170_v47 = vld [vmem:[#allocation11 + $0x248] ss:$16 sps:$4 sm:$0xff]  }
  0x8c   :  { %1188 = vmatprep.subr.bf16.mxu1 %v6124_v48  ;;  %v6175_v48 = vld [vmem:[#allocation11 + $0x264] ss:$16 sps:$4 sm:$0xff]  }
  0x8e   :  { %1107 = vmatpush1.bf16.msra.mxu0 %v6119_v49  ;;  %v6178_v49 = vld [vmem:[#allocation11 + $0x26c] ss:$16 sps:$4 sm:$0xff]  }
  0x8f   :  { %1108 = vmatprep.subr.bf16.mxu0 %v6127_v50  ;;  %1189 = vmatpush1.bf16.msra.mxu1 %v6122_v51  ;;  %v6173_v50 = vld [vmem:[#allocation11 + $0x260] ss:$16 sps:$4 sm:$0xff]   ;;  %v6176_v51 = vld [vmem:[#allocation11 + $0x268] ss:$16 sps:$4 sm:$0xff]  }
  0x90   :  { %1190 = vmatprep.subr.bf16.mxu1 %v6130_v52  ;;  %v6181_v52 = vld [vmem:[#allocation11 + $0x284] ss:$16 sps:$4 sm:$0xff]  }
  0x92   :  { %1109 = vmatpush1.bf16.msra.mxu0 %v6125_v53  ;;  %v6184_v53 = vld [vmem:[#allocation11 + $0x28c] ss:$16 sps:$4 sm:$0xff]  }
  0x93   :  { %1110 = vmatprep.subr.bf16.mxu0 %v6133_v54  ;;  %1191 = vmatpush1.bf16.msra.mxu1 %v6128_v55  ;;  %v6179_v54 = vld [vmem:[#allocation11 + $0x280] ss:$16 sps:$4 sm:$0xff]   ;;  %v6182_v55 = vld [vmem:[#allocation11 + $0x288] ss:$16 sps:$4 sm:$0xff]  }
  0x94   :  { %1192 = vmatprep.subr.bf16.mxu1 %v6136_v56  ;;  %v6187_v56 = vld [vmem:[#allocation11 + $0x2a4] ss:$16 sps:$4 sm:$0xff]  }
  0x96   :  { %1111 = vmatpush1.bf16.msra.mxu0 %v6131_v57  ;;  %v6190_v57 = vld [vmem:[#allocation11 + $0x2ac] ss:$16 sps:$4 sm:$0xff]  }
  0x97   :  { %1112 = vmatprep.subr.bf16.mxu0 %v6139_v58  ;;  %1193 = vmatpush1.bf16.msra.mxu1 %v6134_v59  ;;  %v6185_v58 = vld [vmem:[#allocation11 + $0x2a0] ss:$16 sps:$4 sm:$0xff]   ;;  %v6188_v59 = vld [vmem:[#allocation11 + $0x2a8] ss:$16 sps:$4 sm:$0xff]  }
  0x98   :  { %1194 = vmatprep.subr.bf16.mxu1 %v6142_v60  ;;  %v6193_v60 = vld [vmem:[#allocation11 + $0x2c4] ss:$16 sps:$4 sm:$0xff]  }
  0x9a   :  { %1113 = vmatpush1.bf16.msra.mxu0 %v6137_v61  ;;  %v6196_v61 = vld [vmem:[#allocation11 + $0x2cc] ss:$16 sps:$4 sm:$0xff]  }
  0x9b   :  { %1195 = vmatpush1.bf16.msra.mxu1 %v6140_v62  ;;  %1114 = vmatprep.subr.bf16.mxu0 %v6145_v63  ;;  %v6191_v62 = vld [vmem:[#allocation11 + $0x2c0] ss:$16 sps:$4 sm:$0xff]   ;;  %v6194_v63 = vld [vmem:[#allocation11 + $0x2c8] ss:$16 sps:$4 sm:$0xff]  }
  0x9c   :  { %1196 = vmatprep.subr.bf16.mxu1 %v6148_v1  ;;  %v6199_v1 = vld [vmem:[#allocation11 + $0x2e4] ss:$16 sps:$4 sm:$0xff]  }
  0x9e   :  { %1115 = vmatpush1.bf16.msra.mxu0 %v6143_v2  ;;  %v6202_v2 = vld [vmem:[#allocation11 + $0x2ec] ss:$16 sps:$4 sm:$0xff]  }
  0x9f   :  { %1197 = vmatpush1.bf16.msra.mxu1 %v6146_v3  ;;  %1116 = vmatprep.subr.bf16.mxu0 %v6151_v4  ;;  %v6197_v3 = vld [vmem:[#allocation11 + $0x2e0] ss:$16 sps:$4 sm:$0xff]   ;;  %v6200_v4 = vld [vmem:[#allocation11 + $0x2e8] ss:$16 sps:$4 sm:$0xff]  }
  0xa0   :  { %1198 = vmatprep.subr.bf16.mxu1 %v6154_v5  ;;  %v6205_v5 = vld [vmem:[#allocation11 + $0x304] ss:$16 sps:$4 sm:$0xff]  }
  0xa2   :  { %1117 = vmatpush1.bf16.msra.mxu0 %v6149_v6  ;;  %v6208_v6 = vld [vmem:[#allocation11 + $0x30c] ss:$16 sps:$4 sm:$0xff]  }
  0xa3   :  { %1199 = vmatpush1.bf16.msra.mxu1 %v6152_v7  ;;  %1127 = vmatprep.subr.bf16.mxu0 %v6157_v8  ;;  %v6203_v7 = vld [vmem:[#allocation11 + $0x300] ss:$16 sps:$4 sm:$0xff]   ;;  %v6206_v8 = vld [vmem:[#allocation11 + $0x308] ss:$16 sps:$4 sm:$0xff]  }
  0xa4   :  { %1209 = vmatprep.subr.bf16.mxu1 %v6160_v9  ;;  %v6211_v9 = vld [vmem:[#allocation11 + $0x324] ss:$16 sps:$4 sm:$0xff]  }
 0x138   :  { %v246_v20 = vpop.f32.mrb[0].mxu0 }
 0x139   :  { %v247_v22 = vadd.f32 %v246_v20, %v175_v18  ;;  %v248_v23 = vpop.f32.mrb[1].mxu0  ;;  %v6944_v26 = vpop.f32.mrb[0].mxu1  ;;  %v6209_v18 = vld [vmem:[#allocation11 + $0x320] ss:$16 sps:$4 sm:$0xff]   ;;  %v6217_v20 = vld [vmem:[#allocation11 + $0x344] ss:$16 sps:$4 sm:$0xff]  }
 0x13a   :  { %v249_v24 = vadd.f32 %v248_v23, %v179_v19  ;;  %v250_v25 = vpop.f32.mrb[2].mxu0  ;;  %v289_v29 = vpop.f32.mrb[1].mxu1  ;;  %v6212_v19 = vld [vmem:[#allocation11 + $0x328] ss:$16 sps:$4 sm:$0xff]  }
 0x13b   :  { %v294_v27 = vmax.f32 %v247_v22, 0.0  ;;  %v251_v28 = vpop.f32.mrb[3].mxu0  ;;  %v290_v31 = vadd.f32 %v289_v29, %v187_v21  ;;  %v291_v32 = vpop.f32.mrb[2].mxu1  ;;  %v6220_v21 = vld [vmem:[#allocation11 + $0x34c] ss:$16 sps:$4 sm:$0xff]  }
 0x13c   :  { %v295_v30 = vmax.f32 %v249_v24, 0.0  ;;  %v292_v33 = vpop.f32.mrb[3].mxu1  ;;  %v6215_v22 = vld [vmem:[#allocation11 + $0x340] ss:$16 sps:$4 sm:$0xff]   ;;  %v6218_v23 = vld [vmem:[#allocation11 + $0x348] ss:$16 sps:$4 sm:$0xff]  }
 0x13d   :  { %v297_v37 = vmax.f32 %v290_v31, 0.0  ;;  %v298_v38 = vpack.c.bf16 %v294_v27, %v294_v27  ;;  %v6223_v24 = vld [vmem:[#allocation11 + $0x364] ss:$16 sps:$4 sm:$0xff]   ;;  %v6226_v25 = vld [vmem:[#allocation11 + $0x36c] ss:$16 sps:$4 sm:$0xff]   ;;  %v170_v33 = vunpack.c.l.bf16 %v6931_v15 }
 0x13e   :  { %v299_v34 = vpack.c.bf16 %v295_v30, %v295_v30  ;;  %v6221_v27 = vld [vmem:[#allocation11 + $0x360] ss:$16 sps:$4 sm:$0xff]   ;;  %v6224_v28 = vld [vmem:[#allocation11 + $0x368] ss:$16 sps:$4 sm:$0xff]   ;;  %v6229_v29 = vld [vmem:[#allocation11 + $0x384] ss:$16 sps:$4 sm:$0xff]  }
 0x13f   :  { %v301_v41 = vpack.c.bf16 %v297_v37, %v297_v37  ;;  %v6232_v30 = vld [vmem:[#allocation11 + $0x38c] ss:$16 sps:$4 sm:$0xff]   ;;  %v6227_v31 = vld [vmem:[#allocation11 + $0x380] ss:$16 sps:$4 sm:$0xff]   ;;  %v6230_v32 = vld [vmem:[#allocation11 + $0x388] ss:$16 sps:$4 sm:$0xff]  }
 0x140   :  { %1118 = vmatprep.mubr.bf16.mxu0 %v299_v34  ;;  %1200 = vmatprep.mubr.bf16.mxu1 %v299_v34  ;;  %v6235_v34 = vld [vmem:[#allocation11 + $0x3a4] ss:$16 sps:$4 sm:$0xff]   ;;  %v6236_v37 = vld [vmem:[#allocation11 + $0x3a8] ss:$16 sps:$4 sm:$0xff]  }
 0x141   :  { %1119 = vmatmul.mubr.bf16.vlgmr.msra.gmra.mrb[4].mxu0 %v298_v38  ;;  %1201 = vmatmul.mubr.bf16.vlgmr.msra.gmra.mrb[4].mxu1 %v298_v38  ;;  %v183_v38 = vrot.slane %v170_v33, %v6929_v14 }
 0x142   :  { %1128 = vmatpush1.bf16.msra.mxu0 %v6155_v35  ;;  %1210 = vmatpush1.bf16.msra.mxu1 %v6158_v36  ;;  %v6238_v35 = vld [vmem:[#allocation11 + $0x3ac] ss:$16 sps:$4 sm:$0xff]   ;;  %v6233_v36 = vld [vmem:[#allocation11 + $0x3a0] ss:$16 sps:$4 sm:$0xff]  }
 0x143   :  { %1129 = vmatprep.subr.bf16.mxu0 %v6163_v39  ;;  %1211 = vmatprep.subr.bf16.mxu1 %v6166_v40  ;;  %v6241_v39 = vld [vmem:[#allocation11 + $0x3c4] ss:$16 sps:$4 sm:$0xff]   ;;  %v6244_v40 = vld [vmem:[#allocation11 + $0x3cc] ss:$16 sps:$4 sm:$0xff]  }
 0x144   :  { %1159 = vmatprep.mubr.bf16.mxu0 %v301_v41  ;;  %1241 = vmatprep.mubr.bf16.mxu1 %v301_v41  ;;  %v6239_v41 = vld [vmem:[#allocation11 + $0x3c0] ss:$16 sps:$4 sm:$0xff]  }
 0x146   :  { %1130 = vmatpush1.bf16.msra.mxu0 %v6161_v42  ;;  %1212 = vmatpush1.bf16.msra.mxu1 %v6164_v43  ;;  %v6242_v42 = vld [vmem:[#allocation11 + $0x3c8] ss:$16 sps:$4 sm:$0xff]   ;;  %v288_v43 = vadd.f32 %v6944_v26, %v183_v38  ;;  %v6259_v26 = vld [vmem:[#allocation11 + $0x424] ss:$16 sps:$4 sm:$0xff]  }
 0x147   :  { %1131 = vmatprep.subr.bf16.mxu0 %v6169_v44  ;;  %1213 = vmatprep.subr.bf16.mxu1 %v6172_v45  ;;  %v6247_v44 = vld [vmem:[#allocation11 + $0x3e4] ss:$16 sps:$4 sm:$0xff]   ;;  %v6250_v45 = vld [vmem:[#allocation11 + $0x3ec] ss:$16 sps:$4 sm:$0xff]   ;;  %v6314_v38 = vld [vmem:[#allocation11 + $0x548] ss:$16 sps:$4 sm:$0xff]  }
 0x14a   :  { %1132 = vmatpush1.bf16.msra.mxu0 %v6167_v46  ;;  %1214 = vmatpush1.bf16.msra.mxu1 %v6170_v47  ;;  %v6245_v46 = vld [vmem:[#allocation11 + $0x3e0] ss:$16 sps:$4 sm:$0xff]   ;;  %v6248_v47 = vld [vmem:[#allocation11 + $0x3e8] ss:$16 sps:$4 sm:$0xff]  }
 0x14b   :  { %1133 = vmatprep.subr.bf16.mxu0 %v6175_v48  ;;  %1215 = vmatprep.subr.bf16.mxu1 %v6178_v49  ;;  %v296_v48 = vmax.f32 %v288_v43, 0.0  ;;  %v6253_v49 = vld [vmem:[#allocation11 + $0x404] ss:$16 sps:$4 sm:$0xff]  }
 0x14c   :  { %v6325_v43 = vld [vmem:[#allocation11 + $0x584] ss:$16 sps:$4 sm:$0xff]  }
 0x14e   :  { %1134 = vmatpush1.bf16.msra.mxu0 %v6173_v50  ;;  %1216 = vmatpush1.bf16.msra.mxu1 %v6176_v51  ;;  %v6256_v50 = vld [vmem:[#allocation11 + $0x40c] ss:$16 sps:$4 sm:$0xff]   ;;  %v6251_v51 = vld [vmem:[#allocation11 + $0x400] ss:$16 sps:$4 sm:$0xff]  }
 0x14f   :  { %1135 = vmatprep.subr.bf16.mxu0 %v6181_v52  ;;  %1217 = vmatprep.subr.bf16.mxu1 %v6184_v53  ;;  %v6254_v52 = vld [vmem:[#allocation11 + $0x408] ss:$16 sps:$4 sm:$0xff]   ;;  %v300_v53 = vpack.c.bf16 %v296_v48, %v296_v48  ;;  %v6334_v48 = vld [vmem:[#allocation11 + $0x5ac] ss:$16 sps:$4 sm:$0xff]  }
 0x152   :  { %1136 = vmatpush1.bf16.msra.mxu0 %v6179_v54  ;;  %1218 = vmatpush1.bf16.msra.mxu1 %v6182_v55  ;;  %v6262_v54 = vld [vmem:[#allocation11 + $0x42c] ss:$16 sps:$4 sm:$0xff]   ;;  %v6257_v55 = vld [vmem:[#allocation11 + $0x420] ss:$16 sps:$4 sm:$0xff]  }
 0x153   :  { %1137 = vmatprep.subr.bf16.mxu0 %v6187_v56  ;;  %1219 = vmatprep.subr.bf16.mxu1 %v6190_v57  ;;  %v6260_v56 = vld [vmem:[#allocation11 + $0x428] ss:$16 sps:$4 sm:$0xff]   ;;  %v6265_v57 = vld [vmem:[#allocation11 + $0x444] ss:$16 sps:$4 sm:$0xff]  }
 0x156   :  { %1138 = vmatpush1.bf16.msra.mxu0 %v6185_v58  ;;  %1220 = vmatpush1.bf16.msra.mxu1 %v6188_v59  ;;  %v6268_v58 = vld [vmem:[#allocation11 + $0x44c] ss:$16 sps:$4 sm:$0xff]   ;;  %v6263_v59 = vld [vmem:[#allocation11 + $0x440] ss:$16 sps:$4 sm:$0xff]  }
 0x157   :  { %1139 = vmatprep.subr.bf16.mxu0 %v6193_v60  ;;  %1221 = vmatprep.subr.bf16.mxu1 %v6196_v61  ;;  %v6266_v60 = vld [vmem:[#allocation11 + $0x448] ss:$16 sps:$4 sm:$0xff]   ;;  %v6271_v61 = vld [vmem:[#allocation11 + $0x464] ss:$16 sps:$4 sm:$0xff]  }
 0x15a   :  { %1140 = vmatpush1.bf16.msra.mxu0 %v6191_v62  ;;  %1222 = vmatpush1.bf16.msra.mxu1 %v6194_v63  ;;  %v6274_v62 = vld [vmem:[#allocation11 + $0x46c] ss:$16 sps:$4 sm:$0xff]   ;;  %v6269_v63 = vld [vmem:[#allocation11 + $0x460] ss:$16 sps:$4 sm:$0xff]  }
 0x15b   :  { %1141 = vmatprep.subr.bf16.mxu0 %v6199_v1  ;;  %1223 = vmatprep.subr.bf16.mxu1 %v6202_v2  ;;  %v6272_v1 = vld [vmem:[#allocation11 + $0x468] ss:$16 sps:$4 sm:$0xff]   ;;  %v6277_v2 = vld [vmem:[#allocation11 + $0x484] ss:$16 sps:$4 sm:$0xff]  }
 0x15e   :  { %1142 = vmatpush1.bf16.msra.mxu0 %v6197_v3  ;;  %1224 = vmatpush1.bf16.msra.mxu1 %v6200_v4  ;;  %v6280_v3 = vld [vmem:[#allocation11 + $0x48c] ss:$16 sps:$4 sm:$0xff]   ;;  %v6275_v4 = vld [vmem:[#allocation11 + $0x480] ss:$16 sps:$4 sm:$0xff]  }
 0x15f   :  { %1143 = vmatprep.subr.bf16.mxu0 %v6205_v5  ;;  %1225 = vmatprep.subr.bf16.mxu1 %v6208_v6  ;;  %v6278_v5 = vld [vmem:[#allocation11 + $0x488] ss:$16 sps:$4 sm:$0xff]   ;;  %v6283_v6 = vld [vmem:[#allocation11 + $0x4a4] ss:$16 sps:$4 sm:$0xff]  }
 0x162   :  { %1144 = vmatpush1.bf16.msra.mxu0 %v6203_v7  ;;  %1226 = vmatpush1.bf16.msra.mxu1 %v6206_v8  ;;  %v6286_v7 = vld [vmem:[#allocation11 + $0x4ac] ss:$16 sps:$4 sm:$0xff]   ;;  %v6281_v8 = vld [vmem:[#allocation11 + $0x4a0] ss:$16 sps:$4 sm:$0xff]  }
 0x163   :  { %1145 = vmatprep.subr.bf16.mxu0 %v6211_v9  ;;  %1227 = vmatprep.subr.bf16.mxu1 %v6214_v10  ;;  %v6284_v9 = vld [vmem:[#allocation11 + $0x4a8] ss:$16 sps:$4 sm:$0xff]   ;;  %v6289_v10 = vld [vmem:[#allocation11 + $0x4c4] ss:$16 sps:$4 sm:$0xff]  }
 0x166   :  { %1146 = vmatpush1.bf16.msra.mxu0 %v6209_v18  ;;  %1228 = vmatpush1.bf16.msra.mxu1 %v6212_v19  ;;  %v6292_v18 = vld [vmem:[#allocation11 + $0x4cc] ss:$16 sps:$4 sm:$0xff]   ;;  %v6287_v19 = vld [vmem:[#allocation11 + $0x4c0] ss:$16 sps:$4 sm:$0xff]  }
 0x167   :  { %1147 = vmatprep.subr.bf16.mxu0 %v6217_v20  ;;  %1229 = vmatprep.subr.bf16.mxu1 %v6220_v21  ;;  %v6290_v20 = vld [vmem:[#allocation11 + $0x4c8] ss:$16 sps:$4 sm:$0xff]   ;;  %v6295_v21 = vld [vmem:[#allocation11 + $0x4e4] ss:$16 sps:$4 sm:$0xff]  }
 0x16a   :  { %1148 = vmatpush1.bf16.msra.mxu0 %v6215_v22  ;;  %1230 = vmatpush1.bf16.msra.mxu1 %v6218_v23  ;;  %v6298_v22 = vld [vmem:[#allocation11 + $0x4ec] ss:$16 sps:$4 sm:$0xff]   ;;  %v6293_v23 = vld [vmem:[#allocation11 + $0x4e0] ss:$16 sps:$4 sm:$0xff]  }
 0x16b   :  { %1149 = vmatprep.subr.bf16.mxu0 %v6223_v24  ;;  %1231 = vmatprep.subr.bf16.mxu1 %v6226_v25  ;;  %v6296_v24 = vld [vmem:[#allocation11 + $0x4e8] ss:$16 sps:$4 sm:$0xff]   ;;  %v6301_v25 = vld [vmem:[#allocation11 + $0x504] ss:$16 sps:$4 sm:$0xff]  }
 0x16e   :  { %1150 = vmatpush1.bf16.msra.mxu0 %v6221_v27  ;;  %1232 = vmatpush1.bf16.msra.mxu1 %v6224_v28  ;;  %v6304_v27 = vld [vmem:[#allocation11 + $0x50c] ss:$16 sps:$4 sm:$0xff]   ;;  %v6299_v28 = vld [vmem:[#allocation11 + $0x500] ss:$16 sps:$4 sm:$0xff]  }
 0x16f   :  { %1151 = vmatprep.subr.bf16.mxu0 %v6229_v29  ;;  %1233 = vmatprep.subr.bf16.mxu1 %v6232_v30  ;;  %v6302_v29 = vld [vmem:[#allocation11 + $0x508] ss:$16 sps:$4 sm:$0xff]   ;;  %v6307_v30 = vld [vmem:[#allocation11 + $0x524] ss:$16 sps:$4 sm:$0xff]  }
 0x172   :  { %1152 = vmatpush1.bf16.msra.mxu0 %v6227_v31  ;;  %1234 = vmatpush1.bf16.msra.mxu1 %v6230_v32  ;;  %v6310_v31 = vld [vmem:[#allocation11 + $0x52c] ss:$16 sps:$4 sm:$0xff]   ;;  %v6305_v32 = vld [vmem:[#allocation11 + $0x520] ss:$16 sps:$4 sm:$0xff]  }
 0x173   :  { %1153 = vmatprep.subr.bf16.mxu0 %v6235_v34  ;;  %1235 = vmatprep.subr.bf16.mxu1 %v6238_v35  ;;  %v6308_v34 = vld [vmem:[#allocation11 + $0x528] ss:$16 sps:$4 sm:$0xff]   ;;  %v6313_v35 = vld [vmem:[#allocation11 + $0x544] ss:$16 sps:$4 sm:$0xff]  }
 0x176   :  { %1154 = vmatpush1.bf16.msra.mxu0 %v6233_v36  ;;  %1236 = vmatpush1.bf16.msra.mxu1 %v6236_v37  ;;  %v6316_v36 = vld [vmem:[#allocation11 + $0x54c] ss:$16 sps:$4 sm:$0xff]   ;;  %v6311_v37 = vld [vmem:[#allocation11 + $0x540] ss:$16 sps:$4 sm:$0xff]  }
 0x177   :  { %1155 = vmatprep.subr.bf16.mxu0 %v6241_v39  ;;  %1237 = vmatprep.subr.bf16.mxu1 %v6244_v40  ;;  %v6319_v39 = vld [vmem:[#allocation11 + $0x564] ss:$16 sps:$4 sm:$0xff]   ;;  %v6322_v40 = vld [vmem:[#allocation11 + $0x56c] ss:$16 sps:$4 sm:$0xff]  }
 0x17a   :  { %1156 = vmatpush1.bf16.msra.mxu0 %v6239_v41  ;;  %1238 = vmatpush1.bf16.msra.mxu1 %v6242_v42  ;;  %v6317_v41 = vld [vmem:[#allocation11 + $0x560] ss:$16 sps:$4 sm:$0xff]   ;;  %v6320_v42 = vld [vmem:[#allocation11 + $0x568] ss:$16 sps:$4 sm:$0xff]  }
 0x17b   :  { %1157 = vmatprep.subr.bf16.mxu0 %v6247_v44  ;;  %1239 = vmatprep.subr.bf16.mxu1 %v6250_v45  ;;  %v6328_v44 = vld [vmem:[#allocation11 + $0x58c] ss:$16 sps:$4 sm:$0xff]   ;;  %v6323_v45 = vld [vmem:[#allocation11 + $0x580] ss:$16 sps:$4 sm:$0xff]  }
 0x17e   :  { %1158 = vmatpush1.bf16.msra.mxu0 %v6245_v46  ;;  %1240 = vmatpush1.bf16.msra.mxu1 %v6248_v47  ;;  %v6326_v46 = vld [vmem:[#allocation11 + $0x588] ss:$16 sps:$4 sm:$0xff]   ;;  %v6331_v47 = vld [vmem:[#allocation11 + $0x5a4] ss:$16 sps:$4 sm:$0xff]  }
 0x17f   :  { %2049 = vmatprep.subr.bf16.mxu0 %v6253_v49  ;;  %2131 = vmatprep.subr.bf16.mxu1 %v6256_v50  ;;  %v6329_v49 = vld [vmem:[#allocation11 + $0x5a0] ss:$16 sps:$4 sm:$0xff]   ;;  %v6332_v50 = vld [vmem:[#allocation11 + $0x5a8] ss:$16 sps:$4 sm:$0xff]  }
 0x181   :  { %1160 = vmatmul.mubr.bf16.vlgmr.msra.gmra.mrb[4].mxu0 %v300_v53  ;;  %1242 = vmatmul.mubr.bf16.vlgmr.msra.gmra.mrb[4].mxu1 %v300_v53  ;;  %v6335_v53 = vld [vmem:[#allocation11 + $0x5c0] ss:$16 sps:$4 sm:$0xff]  }
 0x182   :  { %2050 = vmatpush1.bf16.msra.mxu0 %v6251_v51  ;;  %2132 = vmatpush1.bf16.msra.mxu1 %v6254_v52  ;;  %v6337_v51 = vld [vmem:[#allocation11 + $0x5c4] ss:$16 sps:$4 sm:$0xff]   ;;  %v6340_v52 = vld [vmem:[#allocation11 + $0x5cc] ss:$16 sps:$4 sm:$0xff]  }
 0x183   :  { %2051 = vmatprep.subr.bf16.mxu0 %v6259_v26  ;;  %2133 = vmatprep.subr.bf16.mxu1 %v6262_v54  ;;  %v6338_v26 = vld [vmem:[#allocation11 + $0x5c8] ss:$16 sps:$4 sm:$0xff]   ;;  %v6343_v54 = vld [vmem:[#allocation11 + $0x5e4] ss:$16 sps:$4 sm:$0xff]  }
 0x186   :  { %2052 = vmatpush1.bf16.msra.mxu0 %v6257_v55  ;;  %2134 = vmatpush1.bf16.msra.mxu1 %v6260_v56  ;;  %v6346_v55 = vld [vmem:[#allocation11 + $0x5ec] ss:$16 sps:$4 sm:$0xff]   ;;  %v6341_v56 = vld [vmem:[#allocation11 + $0x5e0] ss:$16 sps:$4 sm:$0xff]  }
 0x187   :  { %2053 = vmatprep.subr.bf16.mxu0 %v6265_v57  ;;  %2135 = vmatprep.subr.bf16.mxu1 %v6268_v58  ;;  %v6344_v57 = vld [vmem:[#allocation11 + $0x5e8] ss:$16 sps:$4 sm:$0xff]   ;;  %v6349_v58 = vld [vmem:[#allocation11 + $0x604] ss:$16 sps:$4 sm:$0xff]  }
 0x18a   :  { %2054 = vmatpush1.bf16.msra.mxu0 %v6263_v59  ;;  %2136 = vmatpush1.bf16.msra.mxu1 %v6266_v60  ;;  %v6352_v59 = vld [vmem:[#allocation11 + $0x60c] ss:$16 sps:$4 sm:$0xff]   ;;  %v6952_v60 = vsub.s32 1, %v6923_v11 }
 0x18b   :  { %2055 = vmatprep.subr.bf16.mxu0 %v6271_v61  ;;  %2137 = vmatprep.subr.bf16.mxu1 %v6274_v62 }
 0x18c   :  { %v433_v61 = vrot.slane %v168_v13, %v6952_v60  ;;  %v437_v62 = vrot.slane %v169_v16, %v6952_v60 }
 0x18e   :  { %2056 = vmatpush1.bf16.msra.mxu0 %v6269_v63  ;;  %2138 = vmatpush1.bf16.msra.mxu1 %v6272_v1  ;;  %v445_v63 = vrot.slane %v171_v17, %v6952_v60  ;;  %v6355_v17 = vld [vmem:[#allocation11 + $0x624] ss:$16 sps:$4 sm:$0xff]  }
 0x18f   :  { %2057 = vmatprep.subr.bf16.mxu0 %v6277_v2  ;;  %2139 = vmatprep.subr.bf16.mxu1 %v6280_v3 }
 0x192   :  { %2058 = vmatpush1.bf16.msra.mxu0 %v6275_v4  ;;  %2140 = vmatpush1.bf16.msra.mxu1 %v6278_v5 }
 0x193   :  { %2059 = vmatprep.subr.bf16.mxu0 %v6283_v6  ;;  %2141 = vmatprep.subr.bf16.mxu1 %v6286_v7 }
 0x196   :  { %2060 = vmatpush1.bf16.msra.mxu0 %v6281_v8  ;;  %2142 = vmatpush1.bf16.msra.mxu1 %v6284_v9 }
 0x197   :  { %2061 = vmatprep.subr.bf16.mxu0 %v6289_v10  ;;  %2143 = vmatprep.subr.bf16.mxu1 %v6292_v18 }
 0x19a   :  { %2062 = vmatpush1.bf16.msra.mxu0 %v6287_v19  ;;  %2144 = vmatpush1.bf16.msra.mxu1 %v6290_v20  ;;  %v6347_v20 = vld [vmem:[#allocation11 + $0x600] ss:$16 sps:$4 sm:$0xff]  }
 0x19b   :  { %2063 = vmatprep.subr.bf16.mxu0 %v6295_v21  ;;  %2145 = vmatprep.subr.bf16.mxu1 %v6298_v22  ;;  %v6350_v21 = vld [vmem:[#allocation11 + $0x608] ss:$16 sps:$4 sm:$0xff]  }
 0x19e   :  { %2064 = vmatpush1.bf16.msra.mxu0 %v6293_v23  ;;  %2146 = vmatpush1.bf16.msra.mxu1 %v6296_v24  ;;  %v6358_v23 = vld [vmem:[#allocation11 + $0x62c] ss:$16 sps:$4 sm:$0xff]  }
 0x19f   :  { %2065 = vmatprep.subr.bf16.mxu0 %v6301_v25  ;;  %2147 = vmatprep.subr.bf16.mxu1 %v6304_v27  ;;  %v6353_v25 = vld [vmem:[#allocation11 + $0x620] ss:$16 sps:$4 sm:$0xff]   ;;  %v6356_v27 = vld [vmem:[#allocation11 + $0x628] ss:$16 sps:$4 sm:$0xff]  }
 0x1a2   :  { %2066 = vmatpush1.bf16.msra.mxu0 %v6299_v28  ;;  %2148 = vmatpush1.bf16.msra.mxu1 %v6302_v29  ;;  %v6361_v28 = vld [vmem:[#allocation11 + $0x644] ss:$16 sps:$4 sm:$0xff]   ;;  %v6364_v29 = vld [vmem:[#allocation11 + $0x64c] ss:$16 sps:$4 sm:$0xff]  }
 0x1a3   :  { %2067 = vmatprep.subr.bf16.mxu0 %v6307_v30  ;;  %2149 = vmatprep.subr.bf16.mxu1 %v6310_v31  ;;  %v6359_v30 = vld [vmem:[#allocation11 + $0x640] ss:$16 sps:$4 sm:$0xff]   ;;  %v6362_v31 = vld [vmem:[#allocation11 + $0x648] ss:$16 sps:$4 sm:$0xff]  }
 0x1a6   :  { %2068 = vmatpush1.bf16.msra.mxu0 %v6305_v32  ;;  %2150 = vmatpush1.bf16.msra.mxu1 %v6308_v34  ;;  %v6367_v32 = vld [vmem:[#allocation11 + $0x664] ss:$16 sps:$4 sm:$0xff]   ;;  %v6370_v34 = vld [vmem:[#allocation11 + $0x66c] ss:$16 sps:$4 sm:$0xff]  }
 0x1a7   :  { %2069 = vmatprep.subr.bf16.mxu0 %v6313_v35  ;;  %2151 = vmatprep.subr.bf16.mxu1 %v6316_v36  ;;  %v6365_v35 = vld [vmem:[#allocation11 + $0x660] ss:$16 sps:$4 sm:$0xff]   ;;  %v6368_v36 = vld [vmem:[#allocation11 + $0x668] ss:$16 sps:$4 sm:$0xff]  }
 0x1aa   :  { %2070 = vmatpush1.bf16.msra.mxu0 %v6311_v37  ;;  %2152 = vmatpush1.bf16.msra.mxu1 %v6314_v38  ;;  %v6373_v37 = vld [vmem:[#allocation11 + $0x684] ss:$16 sps:$4 sm:$0xff]   ;;  %v6376_v38 = vld [vmem:[#allocation11 + $0x68c] ss:$16 sps:$4 sm:$0xff]  }
 0x1ab   :  { %2071 = vmatprep.subr.bf16.mxu0 %v6319_v39  ;;  %2153 = vmatprep.subr.bf16.mxu1 %v6322_v40  ;;  %v6371_v39 = vld [vmem:[#allocation11 + $0x680] ss:$16 sps:$4 sm:$0xff]   ;;  %v6374_v40 = vld [vmem:[#allocation11 + $0x688] ss:$16 sps:$4 sm:$0xff]  }
 0x1ae   :  { %2072 = vmatpush1.bf16.msra.mxu0 %v6317_v41  ;;  %2154 = vmatpush1.bf16.msra.mxu1 %v6320_v42  ;;  %v6379_v41 = vld [vmem:[#allocation11 + $0x6a4] ss:$16 sps:$4 sm:$0xff]   ;;  %v6382_v42 = vld [vmem:[#allocation11 + $0x6ac] ss:$16 sps:$4 sm:$0xff]  }
 0x1af   :  { %2073 = vmatprep.subr.bf16.mxu0 %v6325_v43  ;;  %2155 = vmatprep.subr.bf16.mxu1 %v6328_v44  ;;  %v6377_v43 = vld [vmem:[#allocation11 + $0x6a0] ss:$16 sps:$4 sm:$0xff]   ;;  %v6380_v44 = vld [vmem:[#allocation11 + $0x6a8] ss:$16 sps:$4 sm:$0xff]  }
 0x1b2   :  { %2074 = vmatpush1.bf16.msra.mxu0 %v6323_v45  ;;  %2156 = vmatpush1.bf16.msra.mxu1 %v6326_v46  ;;  %v6385_v45 = vld [vmem:[#allocation11 + $0x6c4] ss:$16 sps:$4 sm:$0xff]   ;;  %v6388_v46 = vld [vmem:[#allocation11 + $0x6cc] ss:$16 sps:$4 sm:$0xff]  }
 0x1b3   :  { %2075 = vmatprep.subr.bf16.mxu0 %v6331_v47  ;;  %2157 = vmatprep.subr.bf16.mxu1 %v6334_v48  ;;  %v6383_v47 = vld [vmem:[#allocation11 + $0x6c0] ss:$16 sps:$4 sm:$0xff]   ;;  %v6386_v48 = vld [vmem:[#allocation11 + $0x6c8] ss:$16 sps:$4 sm:$0xff]  }
 0x1b6   :  { %2076 = vmatpush1.bf16.msra.mxu0 %v6329_v49  ;;  %2158 = vmatpush1.bf16.msra.mxu1 %v6332_v50  ;;  %v6391_v49 = vld [vmem:[#allocation11 + $0x6e4] ss:$16 sps:$4 sm:$0xff]   ;;  %v6394_v50 = vld [vmem:[#allocation11 + $0x6ec] ss:$16 sps:$4 sm:$0xff]  }
 0x1b7   :  { %2077 = vmatprep.subr.bf16.mxu0 %v6337_v51  ;;  %2159 = vmatprep.subr.bf16.mxu1 %v6340_v52  ;;  %v6389_v51 = vld [vmem:[#allocation11 + $0x6e0] ss:$16 sps:$4 sm:$0xff]   ;;  %v6392_v52 = vld [vmem:[#allocation11 + $0x6e8] ss:$16 sps:$4 sm:$0xff]  }
 0x1ba   :  { %2078 = vmatpush1.bf16.msra.mxu0 %v6335_v53  ;;  %2160 = vmatpush1.bf16.msra.mxu1 %v6338_v26  ;;  %v6397_v53 = vld [vmem:[#allocation11 + $0x704] ss:$16 sps:$4 sm:$0xff]   ;;  %v6400_v26 = vld [vmem:[#allocation11 + $0x70c] ss:$16 sps:$4 sm:$0xff]  }
 0x1bb   :  { %2079 = vmatprep.subr.bf16.mxu0 %v6343_v54  ;;  %2161 = vmatprep.subr.bf16.mxu1 %v6346_v55  ;;  %v6395_v54 = vld [vmem:[#allocation11 + $0x700] ss:$16 sps:$4 sm:$0xff]   ;;  %v6398_v55 = vld [vmem:[#allocation11 + $0x708] ss:$16 sps:$4 sm:$0xff]  }
 0x1be   :  { %2080 = vmatpush1.bf16.msra.mxu0 %v6341_v56  ;;  %2162 = vmatpush1.bf16.msra.mxu1 %v6344_v57  ;;  %v6403_v56 = vld [vmem:[#allocation11 + $0x724] ss:$16 sps:$4 sm:$0xff]   ;;  %v6406_v57 = vld [vmem:[#allocation11 + $0x72c] ss:$16 sps:$4 sm:$0xff]  }
 0x1bf   :  { %2090 = vmatprep.subr.bf16.mxu0 %v6349_v58  ;;  %2172 = vmatprep.subr.bf16.mxu1 %v6352_v59  ;;  %v6401_v58 = vld [vmem:[#allocation11 + $0x720] ss:$16 sps:$4 sm:$0xff]   ;;  %v6404_v59 = vld [vmem:[#allocation11 + $0x728] ss:$16 sps:$4 sm:$0xff]  }
 0x254   :  { %v1161_v1 = vpop.f32.mrb[4].mxu0  ;;  %v6963_v2 = vpop.f32.mrb[4].mxu1 }
 0x255   :  { %v5923_v3 = vadd.f32 %v1161_v1, %v433_v61  ;;  %v1163_v4 = vpop.f32.mrb[5].mxu0  ;;  %v1245_v5 = vpop.f32.mrb[5].mxu1  ;;  %v6409_v61 = vld [vmem:[#allocation11 + $0x744] ss:$16 sps:$4 sm:$0xff]   ;;  %v6410_v1 = vld [vmem:[#allocation11 + $0x748] ss:$16 sps:$4 sm:$0xff]  }
 0x256   :  { %v5924_v6 = vadd.f32 %v1163_v4, %v437_v62  ;;  %v5926_v7 = vadd.f32 %v1245_v5, %v445_v63  ;;  %v1165_v8 = vpop.f32.mrb[6].mxu0  ;;  %v1247_v9 = vpop.f32.mrb[6].mxu1  ;;  %v6412_v62 = vld [vmem:[#allocation11 + $0x74c] ss:$16 sps:$4 sm:$0xff]   ;;  %v6407_v63 = vld [vmem:[#allocation11 + $0x740] ss:$16 sps:$4 sm:$0xff]  }
 0x257   :  { %v1250_v10 = vmax.f32 %v5923_v3, 0.0  ;;  %v1166_v13 = vpop.f32.mrb[7].mxu0  ;;  %v1248_v18 = vpop.f32.mrb[7].mxu1  ;;  %v6415_v3 = vld [vmem:[#allocation11 + $0x764] ss:$16 sps:$4 sm:$0xff]  }
 0x258   :  { %v1251_v19 = vmax.f32 %v5924_v6, 0.0  ;;  %v1253_v12 = vmax.f32 %v5926_v7, 0.0  ;;  %v6418_v4 = vld [vmem:[#allocation11 + $0x76c] ss:$16 sps:$4 sm:$0xff]   ;;  %v6413_v5 = vld [vmem:[#allocation11 + $0x760] ss:$16 sps:$4 sm:$0xff]  }
 0x259   :  { %v1254_v22 = vpack.c.bf16 %v1250_v10, %v1250_v10  ;;  %v6416_v6 = vld [vmem:[#allocation11 + $0x768] ss:$16 sps:$4 sm:$0xff]   ;;  %v6421_v7 = vld [vmem:[#allocation11 + $0x784] ss:$16 sps:$4 sm:$0xff]   ;;  %v6424_v8 = vld [vmem:[#allocation11 + $0x78c] ss:$16 sps:$4 sm:$0xff]  }
 0x25a   :  { %v1255_v16 = vpack.c.bf16 %v1251_v19, %v1251_v19  ;;  %v1257_v24 = vpack.c.bf16 %v1253_v12, %v1253_v12  ;;  %v6419_v9 = vld [vmem:[#allocation11 + $0x780] ss:$16 sps:$4 sm:$0xff]   ;;  %v6422_v10 = vld [vmem:[#allocation11 + $0x788] ss:$16 sps:$4 sm:$0xff]   ;;  %v6427_v13 = vld [vmem:[#allocation11 + $0x7a4] ss:$16 sps:$4 sm:$0xff]  }
 0x25b   :  { %v6430_v18 = vld [vmem:[#allocation11 + $0x7ac] ss:$16 sps:$4 sm:$0xff]   ;;  %v6425_v19 = vld [vmem:[#allocation11 + $0x7a0] ss:$16 sps:$4 sm:$0xff]   ;;  %v6428_v12 = vld [vmem:[#allocation11 + $0x7a8] ss:$16 sps:$4 sm:$0xff]  }
 0x25c   :  { %2081 = vmatprep.mubr.bf16.mxu0 %v1255_v16  ;;  %2163 = vmatprep.mubr.bf16.mxu1 %v1255_v16  ;;  %v441_v16 = vrot.slane %v170_v33, %v6952_v60  ;;  %v6445_v33 = vld [vmem:[#allocation11 + $0x804] ss:$16 sps:$4 sm:$0xff]  }
 0x25d   :  { %2082 = vmatmul.mubr.bf16.vlgmr.msra.gmra.mrb[8].mxu0 %v1254_v22  ;;  %2164 = vmatmul.mubr.bf16.vlgmr.msra.gmra.mrb[8].mxu1 %v1254_v22  ;;  %v6431_v22 = vld [vmem:[#allocation11 + $0x7c0] ss:$16 sps:$4 sm:$0xff]  }
 0x25e   :  { %2091 = vmatpush1.bf16.msra.mxu0 %v6347_v20  ;;  %2173 = vmatpush1.bf16.msra.mxu1 %v6350_v21  ;;  %v6433_v20 = vld [vmem:[#allocation11 + $0x7c4] ss:$16 sps:$4 sm:$0xff]   ;;  %v6436_v21 = vld [vmem:[#allocation11 + $0x7cc] ss:$16 sps:$4 sm:$0xff]  }
 0x25f   :  { %2122 = vmatprep.mubr.bf16.mxu0 %v1257_v24  ;;  %2204 = vmatprep.mubr.bf16.mxu1 %v1257_v24  ;;  %v6439_v24 = vld [vmem:[#allocation11 + $0x7e4] ss:$16 sps:$4 sm:$0xff]  }
 0x260   :  { %2092 = vmatprep.subr.bf16.mxu0 %v6355_v17  ;;  %2174 = vmatprep.subr.bf16.mxu1 %v6358_v23  ;;  %v6434_v17 = vld [vmem:[#allocation11 + $0x7c8] ss:$16 sps:$4 sm:$0xff]   ;;  %v5925_v23 = vadd.f32 %v6963_v2, %v441_v16  ;;  %v6451_v2 = vld [vmem:[#allocation11 + $0x824] ss:$16 sps:$4 sm:$0xff]  }
 0x261   :  { %v6517_v16 = vld [vmem:[#allocation11 + $0x984] ss:$16 sps:$4 sm:$0xff]  }
 0x262   :  { %2093 = vmatpush1.bf16.msra.mxu0 %v6353_v25  ;;  %2175 = vmatpush1.bf16.msra.mxu1 %v6356_v27  ;;  %v6442_v25 = vld [vmem:[#allocation11 + $0x7ec] ss:$16 sps:$4 sm:$0xff]   ;;  %v6437_v27 = vld [vmem:[#allocation11 + $0x7e0] ss:$16 sps:$4 sm:$0xff]   ;;  %v1252_v15 = vmax.f32 %v5925_v23, 0.0 }
 0x263   :  { %2094 = vmatprep.subr.bf16.mxu0 %v6361_v28  ;;  %2176 = vmatprep.subr.bf16.mxu1 %v6364_v29  ;;  %v6440_v28 = vld [vmem:[#allocation11 + $0x7e8] ss:$16 sps:$4 sm:$0xff]   ;;  %v6448_v29 = vld [vmem:[#allocation11 + $0x80c] ss:$16 sps:$4 sm:$0xff]  }
 0x264   :  { %v6526_v23 = vld [vmem:[#allocation11 + $0x9ac] ss:$16 sps:$4 sm:$0xff]  }
 0x266   :  { %2095 = vmatpush1.bf16.msra.mxu0 %v6359_v30  ;;  %2177 = vmatpush1.bf16.msra.mxu1 %v6362_v31  ;;  %v6443_v30 = vld [vmem:[#allocation11 + $0x800] ss:$16 sps:$4 sm:$0xff]   ;;  %v6446_v31 = vld [vmem:[#allocation11 + $0x808] ss:$16 sps:$4 sm:$0xff]  }
 0x267   :  { %2096 = vmatprep.subr.bf16.mxu0 %v6367_v32  ;;  %2178 = vmatprep.subr.bf16.mxu1 %v6370_v34  ;;  %v1256_v32 = vpack.c.bf16 %v1252_v15, %v1252_v15  ;;  %v6454_v34 = vld [vmem:[#allocation11 + $0x82c] ss:$16 sps:$4 sm:$0xff]   ;;  %v6527_v15 = vld [vmem:[#allocation11 + $0x9c0] ss:$16 sps:$4 sm:$0xff]  }
 0x26a   :  { %2097 = vmatpush1.bf16.msra.mxu0 %v6365_v35  ;;  %2179 = vmatpush1.bf16.msra.mxu1 %v6368_v36  ;;  %v6449_v35 = vld [vmem:[#allocation11 + $0x820] ss:$16 sps:$4 sm:$0xff]   ;;  %v6452_v36 = vld [vmem:[#allocation11 + $0x828] ss:$16 sps:$4 sm:$0xff]  }
 0x26b   :  { %2098 = vmatprep.subr.bf16.mxu0 %v6373_v37  ;;  %2180 = vmatprep.subr.bf16.mxu1 %v6376_v38  ;;  %v6457_v37 = vld [vmem:[#allocation11 + $0x844] ss:$16 sps:$4 sm:$0xff]   ;;  %v6460_v38 = vld [vmem:[#allocation11 + $0x84c] ss:$16 sps:$4 sm:$0xff]  }
 0x26e   :  { %2099 = vmatpush1.bf16.msra.mxu0 %v6371_v39  ;;  %2181 = vmatpush1.bf16.msra.mxu1 %v6374_v40  ;;  %v6455_v39 = vld [vmem:[#allocation11 + $0x840] ss:$16 sps:$4 sm:$0xff]   ;;  %v6458_v40 = vld [vmem:[#allocation11 + $0x848] ss:$16 sps:$4 sm:$0xff]  }
 0x26f   :  { %2100 = vmatprep.subr.bf16.mxu0 %v6379_v41  ;;  %2182 = vmatprep.subr.bf16.mxu1 %v6382_v42  ;;  %v6463_v41 = vld [vmem:[#allocation11 + $0x864] ss:$16 sps:$4 sm:$0xff]   ;;  %v6466_v42 = vld [vmem:[#allocation11 + $0x86c] ss:$16 sps:$4 sm:$0xff]  }
 0x272   :  { %2101 = vmatpush1.bf16.msra.mxu0 %v6377_v43  ;;  %2183 = vmatpush1.bf16.msra.mxu1 %v6380_v44  ;;  %v6461_v43 = vld [vmem:[#allocation11 + $0x860] ss:$16 sps:$4 sm:$0xff]   ;;  %v6464_v44 = vld [vmem:[#allocation11 + $0x868] ss:$16 sps:$4 sm:$0xff]  }
 0x273   :  { %2102 = vmatprep.subr.bf16.mxu0 %v6385_v45  ;;  %2184 = vmatprep.subr.bf16.mxu1 %v6388_v46  ;;  %v6469_v45 = vld [vmem:[#allocation11 + $0x884] ss:$16 sps:$4 sm:$0xff]   ;;  %v6472_v46 = vld [vmem:[#allocation11 + $0x88c] ss:$16 sps:$4 sm:$0xff]  }
 0x276   :  { %2103 = vmatpush1.bf16.msra.mxu0 %v6383_v47  ;;  %2185 = vmatpush1.bf16.msra.mxu1 %v6386_v48  ;;  %v6467_v47 = vld [vmem:[#allocation11 + $0x880] ss:$16 sps:$4 sm:$0xff]   ;;  %v6470_v48 = vld [vmem:[#allocation11 + $0x888] ss:$16 sps:$4 sm:$0xff]  }
 0x277   :  { %2104 = vmatprep.subr.bf16.mxu0 %v6391_v49  ;;  %2186 = vmatprep.subr.bf16.mxu1 %v6394_v50  ;;  %v6475_v49 = vld [vmem:[#allocation11 + $0x8a4] ss:$16 sps:$4 sm:$0xff]   ;;  %v6478_v50 = vld [vmem:[#allocation11 + $0x8ac] ss:$16 sps:$4 sm:$0xff]  }
 0x27a   :  { %2105 = vmatpush1.bf16.msra.mxu0 %v6389_v51  ;;  %2187 = vmatpush1.bf16.msra.mxu1 %v6392_v52  ;;  %v6473_v51 = vld [vmem:[#allocation11 + $0x8a0] ss:$16 sps:$4 sm:$0xff]   ;;  %v6476_v52 = vld [vmem:[#allocation11 + $0x8a8] ss:$16 sps:$4 sm:$0xff]  }
 0x27b   :  { %2106 = vmatprep.subr.bf16.mxu0 %v6397_v53  ;;  %2188 = vmatprep.subr.bf16.mxu1 %v6400_v26  ;;  %v6481_v53 = vld [vmem:[#allocation11 + $0x8c4] ss:$16 sps:$4 sm:$0xff]   ;;  %v6484_v26 = vld [vmem:[#allocation11 + $0x8cc] ss:$16 sps:$4 sm:$0xff]  }
 0x27e   :  { %2107 = vmatpush1.bf16.msra.mxu0 %v6395_v54  ;;  %2189 = vmatpush1.bf16.msra.mxu1 %v6398_v55  ;;  %v6479_v54 = vld [vmem:[#allocation11 + $0x8c0] ss:$16 sps:$4 sm:$0xff]   ;;  %v6482_v55 = vld [vmem:[#allocation11 + $0x8c8] ss:$16 sps:$4 sm:$0xff]  }
 0x27f   :  { %2108 = vmatprep.subr.bf16.mxu0 %v6403_v56  ;;  %2190 = vmatprep.subr.bf16.mxu1 %v6406_v57  ;;  %v6487_v56 = vld [vmem:[#allocation11 + $0x8e4] ss:$16 sps:$4 sm:$0xff]   ;;  %v6490_v57 = vld [vmem:[#allocation11 + $0x8ec] ss:$16 sps:$4 sm:$0xff]  }
 0x282   :  { %2109 = vmatpush1.bf16.msra.mxu0 %v6401_v58  ;;  %2191 = vmatpush1.bf16.msra.mxu1 %v6404_v59  ;;  %v6485_v58 = vld [vmem:[#allocation11 + $0x8e0] ss:$16 sps:$4 sm:$0xff]   ;;  %v6488_v59 = vld [vmem:[#allocation11 + $0x8e8] ss:$16 sps:$4 sm:$0xff]  }
 0x283   :  { %2110 = vmatprep.subr.bf16.mxu0 %v6409_v61  ;;  %2192 = vmatprep.subr.bf16.mxu1 %v6412_v62  ;;  %v6493_v61 = vld [vmem:[#allocation11 + $0x904] ss:$16 sps:$4 sm:$0xff]   ;;  %v6496_v62 = vld [vmem:[#allocation11 + $0x90c] ss:$16 sps:$4 sm:$0xff]  }
 0x286   :  { %2111 = vmatpush1.bf16.msra.mxu0 %v6407_v63  ;;  %2193 = vmatpush1.bf16.msra.mxu1 %v6410_v1  ;;  %v6491_v63 = vld [vmem:[#allocation11 + $0x900] ss:$16 sps:$4 sm:$0xff]   ;;  %v6494_v1 = vld [vmem:[#allocation11 + $0x908] ss:$16 sps:$4 sm:$0xff]  }
 0x287   :  { %2112 = vmatprep.subr.bf16.mxu0 %v6415_v3  ;;  %2194 = vmatprep.subr.bf16.mxu1 %v6418_v4  ;;  %v6499_v3 = vld [vmem:[#allocation11 + $0x924] ss:$16 sps:$4 sm:$0xff]   ;;  %v6502_v4 = vld [vmem:[#allocation11 + $0x92c] ss:$16 sps:$4 sm:$0xff]  }
 0x28a   :  { %2113 = vmatpush1.bf16.msra.mxu0 %v6413_v5  ;;  %2195 = vmatpush1.bf16.msra.mxu1 %v6416_v6  ;;  %v6497_v5 = vld [vmem:[#allocation11 + $0x920] ss:$16 sps:$4 sm:$0xff]   ;;  %v6500_v6 = vld [vmem:[#allocation11 + $0x928] ss:$16 sps:$4 sm:$0xff]  }
 0x28b   :  { %2114 = vmatprep.subr.bf16.mxu0 %v6421_v7  ;;  %2196 = vmatprep.subr.bf16.mxu1 %v6424_v8  ;;  %v6505_v7 = vld [vmem:[#allocation11 + $0x944] ss:$16 sps:$4 sm:$0xff]   ;;  %v6508_v8 = vld [vmem:[#allocation11 + $0x94c] ss:$16 sps:$4 sm:$0xff]  }
 0x28e   :  { %2115 = vmatpush1.bf16.msra.mxu0 %v6419_v9  ;;  %2197 = vmatpush1.bf16.msra.mxu1 %v6422_v10  ;;  %v6503_v9 = vld [vmem:[#allocation11 + $0x940] ss:$16 sps:$4 sm:$0xff]   ;;  %v6506_v10 = vld [vmem:[#allocation11 + $0x948] ss:$16 sps:$4 sm:$0xff]  }
 0x28f   :  { %2116 = vmatprep.subr.bf16.mxu0 %v6427_v13  ;;  %2198 = vmatprep.subr.bf16.mxu1 %v6430_v18  ;;  %v6511_v13 = vld [vmem:[#allocation11 + $0x964] ss:$16 sps:$4 sm:$0xff]   ;;  %v6514_v18 = vld [vmem:[#allocation11 + $0x96c] ss:$16 sps:$4 sm:$0xff]  }
 0x292   :  { %2117 = vmatpush1.bf16.msra.mxu0 %v6425_v19  ;;  %2199 = vmatpush1.bf16.msra.mxu1 %v6428_v12  ;;  %v6509_v19 = vld [vmem:[#allocation11 + $0x960] ss:$16 sps:$4 sm:$0xff]   ;;  %v6512_v12 = vld [vmem:[#allocation11 + $0x968] ss:$16 sps:$4 sm:$0xff]  }
 0x293   :  { %2118 = vmatprep.subr.bf16.mxu0 %v6433_v20  ;;  %2200 = vmatprep.subr.bf16.mxu1 %v6436_v21  ;;  %v6520_v20 = vld [vmem:[#allocation11 + $0x98c] ss:$16 sps:$4 sm:$0xff]   ;;  %v6515_v21 = vld [vmem:[#allocation11 + $0x980] ss:$16 sps:$4 sm:$0xff]  }
 0x296   :  { %2119 = vmatpush1.bf16.msra.mxu0 %v6431_v22  ;;  %2201 = vmatpush1.bf16.msra.mxu1 %v6434_v17  ;;  %v6518_v22 = vld [vmem:[#allocation11 + $0x988] ss:$16 sps:$4 sm:$0xff]   ;;  %v6523_v17 = vld [vmem:[#allocation11 + $0x9a4] ss:$16 sps:$4 sm:$0xff]  }
 0x297   :  { %2120 = vmatprep.subr.bf16.mxu0 %v6439_v24  ;;  %2202 = vmatprep.subr.bf16.mxu1 %v6442_v25  ;;  %v6521_v24 = vld [vmem:[#allocation11 + $0x9a0] ss:$16 sps:$4 sm:$0xff]   ;;  %v6524_v25 = vld [vmem:[#allocation11 + $0x9a8] ss:$16 sps:$4 sm:$0xff]  }
 0x29a   :  { %2121 = vmatpush1.bf16.msra.mxu0 %v6437_v27  ;;  %2203 = vmatpush1.bf16.msra.mxu1 %v6440_v28  ;;  %v6529_v27 = vld [vmem:[#allocation11 + $0x9c4] ss:$16 sps:$4 sm:$0xff]   ;;  %v6532_v28 = vld [vmem:[#allocation11 + $0x9cc] ss:$16 sps:$4 sm:$0xff]  }
 0x29b   :  { %3006 = vmatprep.subr.bf16.mxu0 %v6445_v33  ;;  %3088 = vmatprep.subr.bf16.mxu1 %v6448_v29  ;;  %v6530_v33 = vld [vmem:[#allocation11 + $0x9c8] ss:$16 sps:$4 sm:$0xff]   ;;  %v6535_v29 = vld [vmem:[#allocation11 + $0x9e4] ss:$16 sps:$4 sm:$0xff]  }
 0x29d   :  { %2123 = vmatmul.mubr.bf16.vlgmr.msra.gmra.mrb[8].mxu0 %v1256_v32  ;;  %2205 = vmatmul.mubr.bf16.vlgmr.msra.gmra.mrb[8].mxu1 %v1256_v32  ;;  %v6536_v32 = vld [vmem:[#allocation11 + $0x9e8] ss:$16 sps:$4 sm:$0xff]  }
 0x29e   :  { %3007 = vmatpush1.bf16.msra.mxu0 %v6443_v30  ;;  %3089 = vmatpush1.bf16.msra.mxu1 %v6446_v31  ;;  %v6538_v30 = vld [vmem:[#allocation11 + $0x9ec] ss:$16 sps:$4 sm:$0xff]   ;;  %v6533_v31 = vld [vmem:[#allocation11 + $0x9e0] ss:$16 sps:$4 sm:$0xff]  }
 0x29f   :  { %3008 = vmatprep.subr.bf16.mxu0 %v6451_v2  ;;  %3090 = vmatprep.subr.bf16.mxu1 %v6454_v34  ;;  %v6541_v2 = vld [vmem:[#allocation11 + $0xa04] ss:$16 sps:$4 sm:$0xff]   ;;  %v6544_v34 = vld [vmem:[#allocation11 + $0xa0c] ss:$16 sps:$4 sm:$0xff]  }
 0x2a2   :  { %3009 = vmatpush1.bf16.msra.mxu0 %v6449_v35  ;;  %3091 = vmatpush1.bf16.msra.mxu1 %v6452_v36  ;;  %v6969_v35 = vld [vmem:[#allocation12] sm:$0x22]  ;;  %v6971_v36 = vld [vmem:[#allocation12 + $0x8] sm:$0x22] }
 0x2a3   :  { %3010 = vmatprep.subr.bf16.mxu0 %v6457_v37  ;;  %3092 = vmatprep.subr.bf16.mxu1 %v6460_v38  ;;  %v1389_v37 = vunpack.c.l.bf16 %v6969_v35  ;;  %v6975_v38 = vsub.s32 2, %v6923_v11 }
 0x2a6   :  { %3011 = vmatpush1.bf16.msra.mxu0 %v6455_v39  ;;  %3093 = vmatpush1.bf16.msra.mxu1 %v6458_v40  ;;  %v1390_v39 = vunpack.c.h.bf16 %v6969_v35  ;;  %v1392_v40 = vunpack.c.h.bf16 %v6971_v36 }
 0x2a7   :  { %3012 = vmatprep.subr.bf16.mxu0 %v6463_v41  ;;  %3094 = vmatprep.subr.bf16.mxu1 %v6466_v42  ;;  %v1396_v41 = vrot.slane %v1389_v37, %v6975_v38 }
 0x2a8   :  { %v1400_v42 = vrot.slane %v1390_v39, %v6975_v38 }
 0x2aa   :  { %3013 = vmatpush1.bf16.msra.mxu0 %v6461_v43  ;;  %3095 = vmatpush1.bf16.msra.mxu1 %v6464_v44  ;;  %v1408_v43 = vrot.slane %v1392_v40, %v6975_v38 }
 0x2ab   :  { %3014 = vmatprep.subr.bf16.mxu0 %v6469_v45  ;;  %3096 = vmatprep.subr.bf16.mxu1 %v6472_v46 }
 0x2ae   :  { %3015 = vmatpush1.bf16.msra.mxu0 %v6467_v47  ;;  %3097 = vmatpush1.bf16.msra.mxu1 %v6470_v48 }
 0x2af   :  { %3016 = vmatprep.subr.bf16.mxu0 %v6475_v49  ;;  %3098 = vmatprep.subr.bf16.mxu1 %v6478_v50 }
 0x2b2   :  { %3017 = vmatpush1.bf16.msra.mxu0 %v6473_v51  ;;  %3099 = vmatpush1.bf16.msra.mxu1 %v6476_v52 }
 0x2b3   :  { %3018 = vmatprep.subr.bf16.mxu0 %v6481_v53  ;;  %3100 = vmatprep.subr.bf16.mxu1 %v6484_v26 }
 0x2b6   :  { %3019 = vmatpush1.bf16.msra.mxu0 %v6479_v54  ;;  %3101 = vmatpush1.bf16.msra.mxu1 %v6482_v55 }
 0x2b7   :  { %3020 = vmatprep.subr.bf16.mxu0 %v6487_v56  ;;  %3102 = vmatprep.subr.bf16.mxu1 %v6490_v57 }
 0x2ba   :  { %3021 = vmatpush1.bf16.msra.mxu0 %v6485_v58  ;;  %3103 = vmatpush1.bf16.msra.mxu1 %v6488_v59  ;;  %v6539_v58 = vld [vmem:[#allocation11 + $0xa00] ss:$16 sps:$4 sm:$0xff]   ;;  %v6542_v59 = vld [vmem:[#allocation11 + $0xa08] ss:$16 sps:$4 sm:$0xff]  }
 0x2bb   :  { %3022 = vmatprep.subr.bf16.mxu0 %v6493_v61  ;;  %3104 = vmatprep.subr.bf16.mxu1 %v6496_v62  ;;  %v6547_v62 = vld [vmem:[#allocation11 + $0xa24] ss:$16 sps:$4 sm:$0xff]  }
 0x2be   :  { %3023 = vmatpush1.bf16.msra.mxu0 %v6491_v63  ;;  %3105 = vmatpush1.bf16.msra.mxu1 %v6494_v1  ;;  %v6550_v63 = vld [vmem:[#allocation11 + $0xa2c] ss:$16 sps:$4 sm:$0xff]  }
 0x2bf   :  { %3024 = vmatprep.subr.bf16.mxu0 %v6499_v3  ;;  %3106 = vmatprep.subr.bf16.mxu1 %v6502_v4  ;;  %v6545_v3 = vld [vmem:[#allocation11 + $0xa20] ss:$16 sps:$4 sm:$0xff]   ;;  %v6548_v4 = vld [vmem:[#allocation11 + $0xa28] ss:$16 sps:$4 sm:$0xff]  }
 0x2c2   :  { %3025 = vmatpush1.bf16.msra.mxu0 %v6497_v5  ;;  %3107 = vmatpush1.bf16.msra.mxu1 %v6500_v6  ;;  %v6553_v5 = vld [vmem:[#allocation11 + $0xa44] ss:$16 sps:$4 sm:$0xff]   ;;  %v6556_v6 = vld [vmem:[#allocation11 + $0xa4c] ss:$16 sps:$4 sm:$0xff]  }
 0x2c3   :  { %3026 = vmatprep.subr.bf16.mxu0 %v6505_v7  ;;  %3108 = vmatprep.subr.bf16.mxu1 %v6508_v8  ;;  %v6551_v7 = vld [vmem:[#allocation11 + $0xa40] ss:$16 sps:$4 sm:$0xff]   ;;  %v6554_v8 = vld [vmem:[#allocation11 + $0xa48] ss:$16 sps:$4 sm:$0xff]  }
 0x2c6   :  { %3027 = vmatpush1.bf16.msra.mxu0 %v6503_v9  ;;  %3109 = vmatpush1.bf16.msra.mxu1 %v6506_v10  ;;  %v6559_v9 = vld [vmem:[#allocation11 + $0xa64] ss:$16 sps:$4 sm:$0xff]   ;;  %v6562_v10 = vld [vmem:[#allocation11 + $0xa6c] ss:$16 sps:$4 sm:$0xff]  }
 0x2c7   :  { %3028 = vmatprep.subr.bf16.mxu0 %v6511_v13  ;;  %3110 = vmatprep.subr.bf16.mxu1 %v6514_v18  ;;  %v6557_v13 = vld [vmem:[#allocation11 + $0xa60] ss:$16 sps:$4 sm:$0xff]   ;;  %v6560_v18 = vld [vmem:[#allocation11 + $0xa68] ss:$16 sps:$4 sm:$0xff]  }
 0x2ca   :  { %3029 = vmatpush1.bf16.msra.mxu0 %v6509_v19  ;;  %3111 = vmatpush1.bf16.msra.mxu1 %v6512_v12  ;;  %v6565_v19 = vld [vmem:[#allocation11 + $0xa84] ss:$16 sps:$4 sm:$0xff]   ;;  %v6568_v12 = vld [vmem:[#allocation11 + $0xa8c] ss:$16 sps:$4 sm:$0xff]  }
 0x2cb   :  { %3030 = vmatprep.subr.bf16.mxu0 %v6517_v16  ;;  %3112 = vmatprep.subr.bf16.mxu1 %v6520_v20  ;;  %v6563_v16 = vld [vmem:[#allocation11 + $0xa80] ss:$16 sps:$4 sm:$0xff]   ;;  %v6566_v20 = vld [vmem:[#allocation11 + $0xa88] ss:$16 sps:$4 sm:$0xff]  }
 0x2ce   :  { %3031 = vmatpush1.bf16.msra.mxu0 %v6515_v21  ;;  %3113 = vmatpush1.bf16.msra.mxu1 %v6518_v22  ;;  %v6571_v21 = vld [vmem:[#allocation11 + $0xaa4] ss:$16 sps:$4 sm:$0xff]   ;;  %v6574_v22 = vld [vmem:[#allocation11 + $0xaac] ss:$16 sps:$4 sm:$0xff]  }
 0x2cf   :  { %3032 = vmatprep.subr.bf16.mxu0 %v6523_v17  ;;  %3114 = vmatprep.subr.bf16.mxu1 %v6526_v23  ;;  %v6569_v17 = vld [vmem:[#allocation11 + $0xaa0] ss:$16 sps:$4 sm:$0xff]   ;;  %v6572_v23 = vld [vmem:[#allocation11 + $0xaa8] ss:$16 sps:$4 sm:$0xff]  }
 0x2d2   :  { %3033 = vmatpush1.bf16.msra.mxu0 %v6521_v24  ;;  %3115 = vmatpush1.bf16.msra.mxu1 %v6524_v25  ;;  %v6577_v24 = vld [vmem:[#allocation11 + $0xac4] ss:$16 sps:$4 sm:$0xff]   ;;  %v6580_v25 = vld [vmem:[#allocation11 + $0xacc] ss:$16 sps:$4 sm:$0xff]  }
 0x2d3   :  { %3034 = vmatprep.subr.bf16.mxu0 %v6529_v27  ;;  %3116 = vmatprep.subr.bf16.mxu1 %v6532_v28  ;;  %v6575_v27 = vld [vmem:[#allocation11 + $0xac0] ss:$16 sps:$4 sm:$0xff]   ;;  %v6578_v28 = vld [vmem:[#allocation11 + $0xac8] ss:$16 sps:$4 sm:$0xff]  }
 0x2d6   :  { %3035 = vmatpush1.bf16.msra.mxu0 %v6527_v15  ;;  %3117 = vmatpush1.bf16.msra.mxu1 %v6530_v33  ;;  %v6583_v15 = vld [vmem:[#allocation11 + $0xae4] ss:$16 sps:$4 sm:$0xff]   ;;  %v6586_v33 = vld [vmem:[#allocation11 + $0xaec] ss:$16 sps:$4 sm:$0xff]  }
 0x2d7   :  { %3036 = vmatprep.subr.bf16.mxu0 %v6535_v29  ;;  %3118 = vmatprep.subr.bf16.mxu1 %v6538_v30  ;;  %v6581_v29 = vld [vmem:[#allocation11 + $0xae0] ss:$16 sps:$4 sm:$0xff]   ;;  %v6584_v30 = vld [vmem:[#allocation11 + $0xae8] ss:$16 sps:$4 sm:$0xff]  }
 0x2da   :  { %3037 = vmatpush1.bf16.msra.mxu0 %v6533_v31  ;;  %3119 = vmatpush1.bf16.msra.mxu1 %v6536_v32  ;;  %v6589_v31 = vld [vmem:[#allocation11 + $0xb04] ss:$16 sps:$4 sm:$0xff]   ;;  %v6592_v32 = vld [vmem:[#allocation11 + $0xb0c] ss:$16 sps:$4 sm:$0xff]  }
 0x2db   :  { %3047 = vmatprep.subr.bf16.mxu0 %v6541_v2  ;;  %3129 = vmatprep.subr.bf16.mxu1 %v6544_v34  ;;  %v6587_v2 = vld [vmem:[#allocation11 + $0xb00] ss:$16 sps:$4 sm:$0xff]   ;;  %v6590_v34 = vld [vmem:[#allocation11 + $0xb08] ss:$16 sps:$4 sm:$0xff]  }
 0x370   :  { %v2124_v44 = vpop.f32.mrb[8].mxu0  ;;  %v6988_v45 = vpop.f32.mrb[8].mxu1 }
 0x371   :  { %v5927_v46 = vadd.f32 %v2124_v44, %v1396_v41  ;;  %v2126_v47 = vpop.f32.mrb[9].mxu0  ;;  %v2208_v48 = vpop.f32.mrb[9].mxu1  ;;  %v6595_v41 = vld [vmem:[#allocation11 + $0xb24] ss:$16 sps:$4 sm:$0xff]   ;;  %v6596_v44 = vld [vmem:[#allocation11 + $0xb28] ss:$16 sps:$4 sm:$0xff]  }
 0x372   :  { %v5928_v49 = vadd.f32 %v2126_v47, %v1400_v42  ;;  %v5930_v50 = vadd.f32 %v2208_v48, %v1408_v43  ;;  %v2128_v51 = vpop.f32.mrb[10].mxu0  ;;  %v2210_v52 = vpop.f32.mrb[10].mxu1  ;;  %v6598_v42 = vld [vmem:[#allocation11 + $0xb2c] ss:$16 sps:$4 sm:$0xff]   ;;  %v6593_v43 = vld [vmem:[#allocation11 + $0xb20] ss:$16 sps:$4 sm:$0xff]  }
 0x373   :  { %v2213_v53 = vmax.f32 %v5927_v46, 0.0  ;;  %v2129_v26 = vpop.f32.mrb[11].mxu0  ;;  %v2211_v54 = vpop.f32.mrb[11].mxu1  ;;  %v6601_v46 = vld [vmem:[#allocation11 + $0xb44] ss:$16 sps:$4 sm:$0xff]  }
 0x374   :  { %v2214_v55 = vmax.f32 %v5928_v49, 0.0  ;;  %v2216_v56 = vmax.f32 %v5930_v50, 0.0  ;;  %v6604_v47 = vld [vmem:[#allocation11 + $0xb4c] ss:$16 sps:$4 sm:$0xff]   ;;  %v6599_v48 = vld [vmem:[#allocation11 + $0xb40] ss:$16 sps:$4 sm:$0xff]  }
 0x375   :  { %v2217_v61 = vpack.c.bf16 %v2213_v53, %v2213_v53  ;;  %v6602_v49 = vld [vmem:[#allocation11 + $0xb48] ss:$16 sps:$4 sm:$0xff]   ;;  %v6607_v50 = vld [vmem:[#allocation11 + $0xb64] ss:$16 sps:$4 sm:$0xff]   ;;  %v6610_v51 = vld [vmem:[#allocation11 + $0xb6c] ss:$16 sps:$4 sm:$0xff]  }
 0x376   :  { %v2218_v57 = vpack.c.bf16 %v2214_v55, %v2214_v55  ;;  %v2220_v1 = vpack.c.bf16 %v2216_v56, %v2216_v56  ;;  %v6605_v52 = vld [vmem:[#allocation11 + $0xb60] ss:$16 sps:$4 sm:$0xff]   ;;  %v6608_v53 = vld [vmem:[#allocation11 + $0xb68] ss:$16 sps:$4 sm:$0xff]   ;;  %v6613_v26 = vld [vmem:[#allocation11 + $0xb84] ss:$16 sps:$4 sm:$0xff]  }
 0x377   :  { %v6616_v54 = vld [vmem:[#allocation11 + $0xb8c] ss:$16 sps:$4 sm:$0xff]   ;;  %v6611_v55 = vld [vmem:[#allocation11 + $0xb80] ss:$16 sps:$4 sm:$0xff]   ;;  %v6614_v56 = vld [vmem:[#allocation11 + $0xb88] ss:$16 sps:$4 sm:$0xff]  }
 0x378   :  { %3038 = vmatprep.mubr.bf16.mxu0 %v2218_v57  ;;  %3120 = vmatprep.mubr.bf16.mxu1 %v2218_v57  ;;  %v1391_v57 = vunpack.c.l.bf16 %v6971_v36 }
 0x379   :  { %3039 = vmatmul.mubr.bf16.vlgmr.msra.gmra.mrb[12].mxu0 %v2217_v61  ;;  %3121 = vmatmul.mubr.bf16.vlgmr.msra.gmra.mrb[12].mxu1 %v2217_v61  ;;  %v6617_v61 = vld [vmem:[#allocation11 + $0xba0] ss:$16 sps:$4 sm:$0xff]  }
 0x37a   :  { %3048 = vmatpush1.bf16.msra.mxu0 %v6539_v58  ;;  %3130 = vmatpush1.bf16.msra.mxu1 %v6542_v59  ;;  %v6619_v58 = vld [vmem:[#allocation11 + $0xba4] ss:$16 sps:$4 sm:$0xff]   ;;  %v6622_v59 = vld [vmem:[#allocation11 + $0xbac] ss:$16 sps:$4 sm:$0xff]  }
 0x37b   :  { %3079 = vmatprep.mubr.bf16.mxu0 %v2220_v1  ;;  %3161 = vmatprep.mubr.bf16.mxu1 %v2220_v1  ;;  %v6625_v1 = vld [vmem:[#allocation11 + $0xbc4] ss:$16 sps:$4 sm:$0xff]  }
 0x37c   :  { %3049 = vmatprep.subr.bf16.mxu0 %v6547_v62  ;;  %3131 = vmatprep.subr.bf16.mxu1 %v6550_v63  ;;  %v6620_v62 = vld [vmem:[#allocation11 + $0xba8] ss:$16 sps:$4 sm:$0xff]   ;;  %v1404_v63 = vrot.slane %v1391_v57, %v6975_v38 }
 0x37e   :  { %3050 = vmatpush1.bf16.msra.mxu0 %v6545_v3  ;;  %3132 = vmatpush1.bf16.msra.mxu1 %v6548_v4  ;;  %v6628_v3 = vld [vmem:[#allocation11 + $0xbcc] ss:$16 sps:$4 sm:$0xff]   ;;  %v6623_v4 = vld [vmem:[#allocation11 + $0xbc0] ss:$16 sps:$4 sm:$0xff]  }
 0x37f   :  { %3051 = vmatprep.subr.bf16.mxu0 %v6553_v5  ;;  %3133 = vmatprep.subr.bf16.mxu1 %v6556_v6  ;;  %v6626_v5 = vld [vmem:[#allocation11 + $0xbc8] ss:$16 sps:$4 sm:$0xff]   ;;  %v5929_v6 = vadd.f32 %v6988_v45, %v1404_v63 }
 0x382   :  { %3052 = vmatpush1.bf16.msra.mxu0 %v6551_v7  ;;  %3134 = vmatpush1.bf16.msra.mxu1 %v6554_v8  ;;  %v6631_v7 = vld [vmem:[#allocation11 + $0xbe4] ss:$16 sps:$4 sm:$0xff]   ;;  %v6634_v8 = vld [vmem:[#allocation11 + $0xbec] ss:$16 sps:$4 sm:$0xff]  }
 0x383   :  { %3053 = vmatprep.subr.bf16.mxu0 %v6559_v9  ;;  %3135 = vmatprep.subr.bf16.mxu1 %v6562_v10  ;;  %v6629_v9 = vld [vmem:[#allocation11 + $0xbe0] ss:$16 sps:$4 sm:$0xff]   ;;  %v6632_v10 = vld [vmem:[#allocation11 + $0xbe8] ss:$16 sps:$4 sm:$0xff]  }
 0x386   :  { %3054 = vmatpush1.bf16.msra.mxu0 %v6557_v13  ;;  %3136 = vmatpush1.bf16.msra.mxu1 %v6560_v18  ;;  %v2215_v13 = vmax.f32 %v5929_v6, 0.0 }
 0x387   :  { %3055 = vmatprep.subr.bf16.mxu0 %v6565_v19  ;;  %3137 = vmatprep.subr.bf16.mxu1 %v6568_v12 }
 0x388   :  { %v2219_v18 = vpack.c.bf16 %v2215_v13, %v2215_v13 }
 0x38a   :  { %3056 = vmatpush1.bf16.msra.mxu0 %v6563_v16  ;;  %3138 = vmatpush1.bf16.msra.mxu1 %v6566_v20 }
 0x38b   :  { %3057 = vmatprep.subr.bf16.mxu0 %v6571_v21  ;;  %3139 = vmatprep.subr.bf16.mxu1 %v6574_v22 }
 0x38e   :  { %3058 = vmatpush1.bf16.msra.mxu0 %v6569_v17  ;;  %3140 = vmatpush1.bf16.msra.mxu1 %v6572_v23 }
 0x38f   :  { %3059 = vmatprep.subr.bf16.mxu0 %v6577_v24  ;;  %3141 = vmatprep.subr.bf16.mxu1 %v6580_v25 }
 0x392   :  { %3060 = vmatpush1.bf16.msra.mxu0 %v6575_v27  ;;  %3142 = vmatpush1.bf16.msra.mxu1 %v6578_v28 }
 0x393   :  { %3061 = vmatprep.subr.bf16.mxu0 %v6583_v15  ;;  %3143 = vmatprep.subr.bf16.mxu1 %v6586_v33 }
 0x396   :  { %3062 = vmatpush1.bf16.msra.mxu0 %v6581_v29  ;;  %3144 = vmatpush1.bf16.msra.mxu1 %v6584_v30 }
 0x397   :  { %3063 = vmatprep.subr.bf16.mxu0 %v6589_v31  ;;  %3145 = vmatprep.subr.bf16.mxu1 %v6592_v32 }
 0x39a   :  { %3064 = vmatpush1.bf16.msra.mxu0 %v6587_v2  ;;  %3146 = vmatpush1.bf16.msra.mxu1 %v6590_v34 }
 0x39b   :  { %3065 = vmatprep.subr.bf16.mxu0 %v6595_v41  ;;  %3147 = vmatprep.subr.bf16.mxu1 %v6598_v42 }
 0x39e   :  { %3066 = vmatpush1.bf16.msra.mxu0 %v6593_v43  ;;  %3148 = vmatpush1.bf16.msra.mxu1 %v6596_v44 }
 0x39f   :  { %3067 = vmatprep.subr.bf16.mxu0 %v6601_v46  ;;  %3149 = vmatprep.subr.bf16.mxu1 %v6604_v47 }
 0x3a2   :  { %3068 = vmatpush1.bf16.msra.mxu0 %v6599_v48  ;;  %3150 = vmatpush1.bf16.msra.mxu1 %v6602_v49 }
 0x3a3   :  { %3069 = vmatprep.subr.bf16.mxu0 %v6607_v50  ;;  %3151 = vmatprep.subr.bf16.mxu1 %v6610_v51 }
 0x3a6   :  { %3070 = vmatpush1.bf16.msra.mxu0 %v6605_v52  ;;  %3152 = vmatpush1.bf16.msra.mxu1 %v6608_v53 }
 0x3a7   :  { %3071 = vmatprep.subr.bf16.mxu0 %v6613_v26  ;;  %3153 = vmatprep.subr.bf16.mxu1 %v6616_v54 }
 0x3aa   :  { %3072 = vmatpush1.bf16.msra.mxu0 %v6611_v55  ;;  %3154 = vmatpush1.bf16.msra.mxu1 %v6614_v56 }
 0x3ab   :  { %3073 = vmatprep.subr.bf16.mxu0 %v6619_v58  ;;  %3155 = vmatprep.subr.bf16.mxu1 %v6622_v59 }
 0x3ae   :  { %3074 = vmatpush1.bf16.msra.mxu0 %v6617_v61  ;;  %3156 = vmatpush1.bf16.msra.mxu1 %v6620_v62 }
 0x3af   :  { %3075 = vmatprep.subr.bf16.mxu0 %v6625_v1  ;;  %3157 = vmatprep.subr.bf16.mxu1 %v6628_v3 }
 0x3b2   :  { %3076 = vmatpush1.bf16.msra.mxu0 %v6623_v4  ;;  %3158 = vmatpush1.bf16.msra.mxu1 %v6626_v5 }
 0x3b3   :  { %3077 = vmatprep.subr.bf16.mxu0 %v6631_v7  ;;  %3159 = vmatprep.subr.bf16.mxu1 %v6634_v8 }
 0x3b6   :  { %3078 = vmatpush1.bf16.msra.mxu0 %v6629_v9  ;;  %3160 = vmatpush1.bf16.msra.mxu1 %v6632_v10 }
 0x3b9   :  { %3080 = vmatmul.mubr.bf16.vlgmr.msra.gmra.mrb[12].mxu0 %v2219_v18  ;;  %3162 = vmatmul.mubr.bf16.vlgmr.msra.gmra.mrb[12].mxu1 %v2219_v18 }
 0x3ba   :  { %6737 = shalt.err (!%p6734_p6)  }
 0x3bb   :  { %s6738_s12 = scalar_lea.vmem %s157_s6, 8192  ;;  %p6743_p8 = scmp.lt.s32.totalorder %s157_s6, %s157_s6 }
 0x3bc   :  { %p6739_p7 = scmp.ne.s32.totalorder %s157_s6, %s6738_s12  ;;  %p6744_p9 = scmp.lt.s32.totalorder %s6738_s12, %s6738_s12 }
 0x3be   :  { %p6745_p10 = por %p6744_p9, %p6743_p8 }
 0x3c0   :  { %p6746_p11 = pnand %p6745_p10, %p6739_p7 }
 0x3c2   :  { %6749 = shalt.err (!%p6746_p11)  }
 0x3c3   :  { %159 = dma.hbm_to_vmem [thread:$0]  %s7200_s7, 8192, %s157_s6, [#allocation5 + $0x2]  ;;  %v2352_v45 = vsub.s32 3, %v6923_v11 }
 0x3c5   :  { %v2353_v19 = vrot.slane %v1389_v37, %v2352_v45  ;;  %v2361_v12 = vrot.slane %v1391_v57, %v2352_v45  ;;  %v2357_v16 = vrot.slane %v1390_v39, %v2352_v45  ;;  %v2365_v20 = vrot.slane %v1392_v40, %v2352_v45 }
 0x48c   :  { %v3081_v21 = vpop.f32.mrb[12].mxu0  ;;  %v3163_v22 = vpop.f32.mrb[12].mxu1 }
 0x48d   :  { %v5931_v17 = vadd.f32 %v3081_v21, %v2353_v19  ;;  %v5933_v23 = vadd.f32 %v3163_v22, %v2361_v12  ;;  %v3083_v24 = vpop.f32.mrb[13].mxu0  ;;  %v3165_v25 = vpop.f32.mrb[13].mxu1 }
 0x48e   :  { %v5932_v27 = vadd.f32 %v3083_v24, %v2357_v16  ;;  %v5934_v28 = vadd.f32 %v3165_v25, %v2365_v20  ;;  %v3085_v15 = vpop.f32.mrb[14].mxu0  ;;  %v3167_v33 = vpop.f32.mrb[14].mxu1 }
 0x48f   :  { %v3170_v29 = vmax.f32 %v5931_v17, 0.0  ;;  %v3172_v30 = vmax.f32 %v5933_v23, 0.0  ;;  %v3086_v37 = vpop.f32.mrb[15].mxu0  ;;  %v3168_v31 = vpop.f32.mrb[15].mxu1 }
 0x490   :  { %v3171_v32 = vmax.f32 %v5932_v27, 0.0  ;;  %v3173_v35 = vmax.f32 %v5934_v28, 0.0 }
 0x491   :  { %v7012_v39 = vpack.c.bf16 %v3170_v29, %v3170_v29  ;;  %v7014_v36 = vpack.c.bf16 %v3172_v30, %v3172_v30 }
 0x492   :  { %v7016_v40 = vpack.c.bf16 %v3171_v32, %v3171_v32  ;;  %v7018_v2 = vpack.c.bf16 %v3173_v35, %v3173_v35 }
 0x493   :  { %6778 = dma.done.wait [#allocation5], 32768 }
 0x494   :  { %6779 = vsyncadd [#allocation5], 4294934528 }
 0x495   :  { %6780 = dma.done.wait [#allocation5 + $0x1], 65536 }
 0x496   :  { %6781 = vsyncadd [#allocation5 + $0x1], 4294901760 }
 0x497   :  { %6782 = dma.done.wait [#allocation5 + $0x2], 8192 }
 0x498   :  { %6783 = vsyncadd [#allocation5 + $0x2], 4294959104  ;;  %3551 = vmatprep.mubr.bf16.mxu0 %v7016_v40  ;;  %3633 = vmatprep.mubr.bf16.mxu1 %v7016_v40  ;;  %v3224_v34 = vld [vmem:[#allocation2 + $0x8] sm:$0xff]  ;;  %v3226_v41 = vld [vmem:[#allocation2 + $0x18] sm:$0xff]  ;;  %vm5395_vm5 = vcmask 523264  }
 0x499   :  { %6635 = vset.pattern.permute.xlu0 %v6793_v0  ;;  %v3223_v42 = vld [vmem:[#allocation2] sm:$0xff]  ;;  %3519 = vmatprep.subr.bf16.mxu0 %v3224_v34  ;;  %v3225_v43 = vld [vmem:[#allocation2 + $0x10] sm:$0xff]  ;;  %v3232_v44 = vld [vmem:[#allocation2 + $0x48] sm:$0xff] }
 0x49a   :  { %3601 = vmatprep.subr.bf16.mxu1 %v3226_v41  ;;  %v3234_v46 = vld [vmem:[#allocation2 + $0x58] sm:$0xff]  ;;  %3520 = vmatpush1.bf16.msra.mxu0 %v3223_v42  ;;  %v3231_v47 = vld [vmem:[#allocation2 + $0x40] sm:$0xff]  ;;  %v3233_v48 = vld [vmem:[#allocation2 + $0x50] sm:$0xff] }
 0x49b   :  { %3602 = vmatpush1.bf16.msra.mxu1 %v3225_v43  ;;  %3521 = vmatprep.subr.bf16.mxu0 %v3232_v44  ;;  %v3240_v49 = vld [vmem:[#allocation2 + $0x88] sm:$0xff]  ;;  %v3242_v50 = vld [vmem:[#allocation2 + $0x98] sm:$0xff]  ;;  %v3239_v51 = vld [vmem:[#allocation2 + $0x80] sm:$0xff] }
 0x49c   :  { %3603 = vmatprep.subr.bf16.mxu1 %v3234_v46  ;;  %v3241_v52 = vld [vmem:[#allocation2 + $0x90] sm:$0xff]  ;;  %v3248_v53 = vld [vmem:[#allocation2 + $0xc8] sm:$0xff]  ;;  %v3250_v26 = vld [vmem:[#allocation2 + $0xd8] sm:$0xff] }
 0x49d   :  { %v3247_v54 = vld [vmem:[#allocation2 + $0xc0] sm:$0xff]  ;;  %v3249_v55 = vld [vmem:[#allocation2 + $0xd0] sm:$0xff]  ;;  %v3256_v56 = vld [vmem:[#allocation2 + $0x108] sm:$0xff] }
 0x49e   :  { %3522 = vmatpush1.bf16.msra.mxu0 %v3231_v47  ;;  %v3258_v57 = vld [vmem:[#allocation2 + $0x118] sm:$0xff]  ;;  %v3255_v58 = vld [vmem:[#allocation2 + $0x100] sm:$0xff]  ;;  %v3257_v59 = vld [vmem:[#allocation2 + $0x110] sm:$0xff] }
 0x49f   :  { %3604 = vmatpush1.bf16.msra.mxu1 %v3233_v48  ;;  %3523 = vmatprep.subr.bf16.mxu0 %v3240_v49  ;;  %v3264_v61 = vld [vmem:[#allocation2 + $0x148] sm:$0xff]  ;;  %v3266_v62 = vld [vmem:[#allocation2 + $0x158] sm:$0xff]  ;;  %v3263_v63 = vld [vmem:[#allocation2 + $0x140] sm:$0xff] }
 0x4a0   :  { %3605 = vmatprep.subr.bf16.mxu1 %v3242_v50  ;;  %v3265_v1 = vld [vmem:[#allocation2 + $0x150] sm:$0xff]  ;;  %v3272_v3 = vld [vmem:[#allocation2 + $0x188] sm:$0xff]  ;;  %v3274_v4 = vld [vmem:[#allocation2 + $0x198] sm:$0xff] }
 0x4a1   :  { %v3271_v5 = vld [vmem:[#allocation2 + $0x180] sm:$0xff]  ;;  %v3273_v6 = vld [vmem:[#allocation2 + $0x190] sm:$0xff]  ;;  %v3280_v7 = vld [vmem:[#allocation2 + $0x1c8] sm:$0xff] }
 0x4a2   :  { %3524 = vmatpush1.bf16.msra.mxu0 %v3239_v51  ;;  %v3282_v8 = vld [vmem:[#allocation2 + $0x1d8] sm:$0xff]  ;;  %v3279_v9 = vld [vmem:[#allocation2 + $0x1c0] sm:$0xff]  ;;  %v3281_v10 = vld [vmem:[#allocation2 + $0x1d0] sm:$0xff] }
 0x4a3   :  { %3606 = vmatpush1.bf16.msra.mxu1 %v3241_v52  ;;  %3525 = vmatprep.subr.bf16.mxu0 %v3248_v53  ;;  %v3288_v13 = vld [vmem:[#allocation2 + $0x208] sm:$0xff]  ;;  %v3290_v18 = vld [vmem:[#allocation2 + $0x218] sm:$0xff]  ;;  %v3287_v45 = vld [vmem:[#allocation2 + $0x200] sm:$0xff] }
 0x4a4   :  { %3607 = vmatprep.subr.bf16.mxu1 %v3250_v26  ;;  %v3289_v19 = vld [vmem:[#allocation2 + $0x210] sm:$0xff]  ;;  %v3296_v12 = vld [vmem:[#allocation2 + $0x248] sm:$0xff]  ;;  %v3298_v16 = vld [vmem:[#allocation2 + $0x258] sm:$0xff] }
 0x4a5   :  { %v3295_v20 = vld [vmem:[#allocation2 + $0x240] sm:$0xff]  ;;  %v3297_v21 = vld [vmem:[#allocation2 + $0x250] sm:$0xff]  ;;  %v3304_v22 = vld [vmem:[#allocation2 + $0x288] sm:$0xff] }
 0x4a6   :  { %3526 = vmatpush1.bf16.msra.mxu0 %v3247_v54  ;;  %v3306_v17 = vld [vmem:[#allocation2 + $0x298] sm:$0xff]  ;;  %v3303_v23 = vld [vmem:[#allocation2 + $0x280] sm:$0xff]  ;;  %v3305_v24 = vld [vmem:[#allocation2 + $0x290] sm:$0xff] }
 0x4a7   :  { %3608 = vmatpush1.bf16.msra.mxu1 %v3249_v55  ;;  %3527 = vmatprep.subr.bf16.mxu0 %v3256_v56  ;;  %v3312_v25 = vld [vmem:[#allocation2 + $0x2c8] sm:$0xff]  ;;  %v3314_v27 = vld [vmem:[#allocation2 + $0x2d8] sm:$0xff]  ;;  %v3311_v28 = vld [vmem:[#allocation2 + $0x2c0] sm:$0xff] }
 0x4a8   :  { %3609 = vmatprep.subr.bf16.mxu1 %v3258_v57  ;;  %v3313_v15 = vld [vmem:[#allocation2 + $0x2d0] sm:$0xff]  ;;  %v3320_v33 = vld [vmem:[#allocation2 + $0x308] sm:$0xff]  ;;  %v3322_v29 = vld [vmem:[#allocation2 + $0x318] sm:$0xff] }
 0x4a9   :  { %v3319_v30 = vld [vmem:[#allocation2 + $0x300] sm:$0xff]  ;;  %v3321_v37 = vld [vmem:[#allocation2 + $0x310] sm:$0xff]  ;;  %v3328_v31 = vld [vmem:[#allocation2 + $0x348] sm:$0xff] }
 0x4aa   :  { %3528 = vmatpush1.bf16.msra.mxu0 %v3255_v58  ;;  %v3330_v32 = vld [vmem:[#allocation2 + $0x358] sm:$0xff]  ;;  %v3327_v35 = vld [vmem:[#allocation2 + $0x340] sm:$0xff]  ;;  %v3329_v34 = vld [vmem:[#allocation2 + $0x350] sm:$0xff] }
 0x4ab   :  { %3610 = vmatpush1.bf16.msra.mxu1 %v3257_v59  ;;  %3529 = vmatprep.subr.bf16.mxu0 %v3264_v61  ;;  %v3336_v41 = vld [vmem:[#allocation2 + $0x388] sm:$0xff]  ;;  %v3338_v42 = vld [vmem:[#allocation2 + $0x398] sm:$0xff]  ;;  %v3335_v43 = vld [vmem:[#allocation2 + $0x380] sm:$0xff] }
 0x4ac   :  { %3611 = vmatprep.subr.bf16.mxu1 %v3266_v62  ;;  %v3337_v44 = vld [vmem:[#allocation2 + $0x390] sm:$0xff]  ;;  %v3344_v46 = vld [vmem:[#allocation2 + $0x3c8] sm:$0xff]  ;;  %v3346_v47 = vld [vmem:[#allocation2 + $0x3d8] sm:$0xff] }
 0x4ad   :  { %v3343_v48 = vld [vmem:[#allocation2 + $0x3c0] sm:$0xff]  ;;  %v3345_v49 = vld [vmem:[#allocation2 + $0x3d0] sm:$0xff]  ;;  %v3352_v50 = vld [vmem:[#allocation2 + $0x408] sm:$0xff] }
 0x4ae   :  { %3530 = vmatpush1.bf16.msra.mxu0 %v3263_v63  ;;  %v3354_v51 = vld [vmem:[#allocation2 + $0x418] sm:$0xff]  ;;  %v3351_v52 = vld [vmem:[#allocation2 + $0x400] sm:$0xff]  ;;  %v3353_v53 = vld [vmem:[#allocation2 + $0x410] sm:$0xff] }
 0x4af   :  { %3612 = vmatpush1.bf16.msra.mxu1 %v3265_v1  ;;  %3531 = vmatprep.subr.bf16.mxu0 %v3272_v3  ;;  %v3360_v26 = vld [vmem:[#allocation2 + $0x448] sm:$0xff]  ;;  %v3362_v54 = vld [vmem:[#allocation2 + $0x458] sm:$0xff]  ;;  %v3359_v55 = vld [vmem:[#allocation2 + $0x440] sm:$0xff] }
 0x4b0   :  { %3613 = vmatprep.subr.bf16.mxu1 %v3274_v4  ;;  %v3361_v56 = vld [vmem:[#allocation2 + $0x450] sm:$0xff]  ;;  %v3368_v57 = vld [vmem:[#allocation2 + $0x488] sm:$0xff]  ;;  %v3370_v58 = vld [vmem:[#allocation2 + $0x498] sm:$0xff] }
 0x4b1   :  { %v3367_v59 = vld [vmem:[#allocation2 + $0x480] sm:$0xff]  ;;  %v3369_v61 = vld [vmem:[#allocation2 + $0x490] sm:$0xff]  ;;  %v3376_v62 = vld [vmem:[#allocation2 + $0x4c8] sm:$0xff] }
 0x4b2   :  { %3532 = vmatpush1.bf16.msra.mxu0 %v3271_v5  ;;  %v3378_v63 = vld [vmem:[#allocation2 + $0x4d8] sm:$0xff]  ;;  %v3375_v1 = vld [vmem:[#allocation2 + $0x4c0] sm:$0xff]  ;;  %v3377_v3 = vld [vmem:[#allocation2 + $0x4d0] sm:$0xff] }
 0x4b3   :  { %3614 = vmatpush1.bf16.msra.mxu1 %v3273_v6  ;;  %3533 = vmatprep.subr.bf16.mxu0 %v3280_v7  ;;  %v3384_v4 = vld [vmem:[#allocation2 + $0x508] sm:$0xff]  ;;  %v3386_v5 = vld [vmem:[#allocation2 + $0x518] sm:$0xff]  ;;  %v3383_v6 = vld [vmem:[#allocation2 + $0x500] sm:$0xff] }
 0x4b4   :  { %3615 = vmatprep.subr.bf16.mxu1 %v3282_v8  ;;  %v3385_v7 = vld [vmem:[#allocation2 + $0x510] sm:$0xff]  ;;  %v3392_v8 = vld [vmem:[#allocation2 + $0x548] sm:$0xff] }
 0x4b6   :  { %3534 = vmatpush1.bf16.msra.mxu0 %v3279_v9  ;;  %v3394_v9 = vld [vmem:[#allocation2 + $0x558] sm:$0xff] }
 0x4b7   :  { %3616 = vmatpush1.bf16.msra.mxu1 %v3281_v10  ;;  %3535 = vmatprep.subr.bf16.mxu0 %v3288_v13  ;;  %v3391_v10 = vld [vmem:[#allocation2 + $0x540] sm:$0xff]  ;;  %v3393_v13 = vld [vmem:[#allocation2 + $0x550] sm:$0xff] }
 0x4b8   :  { %3617 = vmatprep.subr.bf16.mxu1 %v3290_v18  ;;  %v3400_v18 = vld [vmem:[#allocation2 + $0x588] sm:$0xff] }
 0x4ba   :  { %3536 = vmatpush1.bf16.msra.mxu0 %v3287_v45  ;;  %v3402_v45 = vld [vmem:[#allocation2 + $0x598] sm:$0xff] }
 0x4bb   :  { %3618 = vmatpush1.bf16.msra.mxu1 %v3289_v19  ;;  %3537 = vmatprep.subr.bf16.mxu0 %v3296_v12  ;;  %v3399_v19 = vld [vmem:[#allocation2 + $0x580] sm:$0xff]  ;;  %v3401_v12 = vld [vmem:[#allocation2 + $0x590] sm:$0xff] }
 0x4bc   :  { %3619 = vmatprep.subr.bf16.mxu1 %v3298_v16  ;;  %v3408_v16 = vld [vmem:[#allocation2 + $0x5c8] sm:$0xff] }
 0x4be   :  { %3538 = vmatpush1.bf16.msra.mxu0 %v3295_v20  ;;  %v3410_v20 = vld [vmem:[#allocation2 + $0x5d8] sm:$0xff] }
 0x4bf   :  { %3620 = vmatpush1.bf16.msra.mxu1 %v3297_v21  ;;  %3539 = vmatprep.subr.bf16.mxu0 %v3304_v22  ;;  %v3407_v21 = vld [vmem:[#allocation2 + $0x5c0] sm:$0xff]  ;;  %v3409_v22 = vld [vmem:[#allocation2 + $0x5d0] sm:$0xff] }
 0x4c0   :  { %3621 = vmatprep.subr.bf16.mxu1 %v3306_v17  ;;  %v3416_v17 = vld [vmem:[#allocation2 + $0x608] sm:$0xff] }
 0x4c2   :  { %3540 = vmatpush1.bf16.msra.mxu0 %v3303_v23  ;;  %v3418_v23 = vld [vmem:[#allocation2 + $0x618] sm:$0xff] }
 0x4c3   :  { %3622 = vmatpush1.bf16.msra.mxu1 %v3305_v24  ;;  %3541 = vmatprep.subr.bf16.mxu0 %v3312_v25  ;;  %v3415_v24 = vld [vmem:[#allocation2 + $0x600] sm:$0xff]  ;;  %v3417_v25 = vld [vmem:[#allocation2 + $0x610] sm:$0xff] }
 0x4c4   :  { %3623 = vmatprep.subr.bf16.mxu1 %v3314_v27  ;;  %v3424_v27 = vld [vmem:[#allocation2 + $0x648] sm:$0xff] }
 0x4c6   :  { %3542 = vmatpush1.bf16.msra.mxu0 %v3311_v28  ;;  %v3426_v28 = vld [vmem:[#allocation2 + $0x658] sm:$0xff] }
 0x4c7   :  { %3624 = vmatpush1.bf16.msra.mxu1 %v3313_v15  ;;  %3543 = vmatprep.subr.bf16.mxu0 %v3320_v33  ;;  %v3423_v15 = vld [vmem:[#allocation2 + $0x640] sm:$0xff]  ;;  %v3425_v33 = vld [vmem:[#allocation2 + $0x650] sm:$0xff] }
 0x4c8   :  { %3625 = vmatprep.subr.bf16.mxu1 %v3322_v29  ;;  %v3432_v29 = vld [vmem:[#allocation2 + $0x688] sm:$0xff] }
 0x4ca   :  { %3544 = vmatpush1.bf16.msra.mxu0 %v3319_v30  ;;  %v3434_v30 = vld [vmem:[#allocation2 + $0x698] sm:$0xff] }
 0x4cb   :  { %3626 = vmatpush1.bf16.msra.mxu1 %v3321_v37  ;;  %3545 = vmatprep.subr.bf16.mxu0 %v3328_v31  ;;  %v3431_v37 = vld [vmem:[#allocation2 + $0x680] sm:$0xff]  ;;  %v3433_v31 = vld [vmem:[#allocation2 + $0x690] sm:$0xff] }
 0x4cc   :  { %3627 = vmatprep.subr.bf16.mxu1 %v3330_v32  ;;  %v3440_v32 = vld [vmem:[#allocation2 + $0x6c8] sm:$0xff] }
 0x4ce   :  { %3546 = vmatpush1.bf16.msra.mxu0 %v3327_v35  ;;  %v3442_v35 = vld [vmem:[#allocation2 + $0x6d8] sm:$0xff] }
 0x4cf   :  { %3628 = vmatpush1.bf16.msra.mxu1 %v3329_v34  ;;  %3547 = vmatprep.subr.bf16.mxu0 %v3336_v41  ;;  %v3439_v34 = vld [vmem:[#allocation2 + $0x6c0] sm:$0xff]  ;;  %v3441_v41 = vld [vmem:[#allocation2 + $0x6d0] sm:$0xff] }
 0x4d0   :  { %3629 = vmatprep.subr.bf16.mxu1 %v3338_v42  ;;  %v3448_v42 = vld [vmem:[#allocation2 + $0x708] sm:$0xff] }
 0x4d2   :  { %3548 = vmatpush1.bf16.msra.mxu0 %v3335_v43  ;;  %v3450_v43 = vld [vmem:[#allocation2 + $0x718] sm:$0xff] }
 0x4d3   :  { %3630 = vmatpush1.bf16.msra.mxu1 %v3337_v44  ;;  %3549 = vmatprep.subr.bf16.mxu0 %v3344_v46  ;;  %v3447_v44 = vld [vmem:[#allocation2 + $0x700] sm:$0xff]  ;;  %v3449_v46 = vld [vmem:[#allocation2 + $0x710] sm:$0xff] }
 0x4d4   :  { %3631 = vmatprep.subr.bf16.mxu1 %v3346_v47  ;;  %v3456_v47 = vld [vmem:[#allocation2 + $0x748] sm:$0xff] }
 0x4d6   :  { %3550 = vmatpush1.bf16.msra.mxu0 %v3343_v48  ;;  %v3458_v48 = vld [vmem:[#allocation2 + $0x758] sm:$0xff] }
 0x4d7   :  { %3632 = vmatpush1.bf16.msra.mxu1 %v3345_v49  ;;  %3560 = vmatprep.subr.bf16.mxu0 %v3352_v50  ;;  %v3455_v49 = vld [vmem:[#allocation2 + $0x740] sm:$0xff]  ;;  %v3457_v50 = vld [vmem:[#allocation2 + $0x750] sm:$0xff] }
 0x4d8   :  { %3642 = vmatprep.subr.bf16.mxu1 %v3354_v51  ;;  %v3464_v51 = vld [vmem:[#allocation2 + $0x788] sm:$0xff] }
 0x4d9   :  { %3552 = vmatmul.mubr.bf16.vlgmr.msra.gmra.mrb[16].mxu0 %v7012_v39 }
 0x4da   :  { %3634 = vmatmul.mubr.bf16.vlgmr.msra.gmra.mrb[16].mxu1 %v7012_v39  ;;  %3561 = vmatpush1.bf16.msra.mxu0 %v3351_v52  ;;  %v3466_v52 = vld [vmem:[#allocation2 + $0x798] sm:$0xff] }
 0x4db   :  { %3643 = vmatpush1.bf16.msra.mxu1 %v3353_v53  ;;  %3562 = vmatprep.subr.bf16.mxu0 %v3360_v26  ;;  %v3463_v53 = vld [vmem:[#allocation2 + $0x780] sm:$0xff]  ;;  %v3465_v26 = vld [vmem:[#allocation2 + $0x790] sm:$0xff] }
 0x4dc   :  { %3644 = vmatprep.subr.bf16.mxu1 %v3362_v54  ;;  %3592 = vmatprep.mubr.bf16.mxu0 %v7018_v2  ;;  %v3472_v54 = vld [vmem:[#allocation2 + $0x7c8] sm:$0xff] }
 0x4dd   :  { %3674 = vmatprep.mubr.bf16.mxu1 %v7018_v2 }
 0x4de   :  { %3563 = vmatpush1.bf16.msra.mxu0 %v3359_v55  ;;  %v3474_v55 = vld [vmem:[#allocation2 + $0x7d8] sm:$0xff] }
 0x4df   :  { %3645 = vmatpush1.bf16.msra.mxu1 %v3361_v56  ;;  %3564 = vmatprep.subr.bf16.mxu0 %v3368_v57  ;;  %v3471_v56 = vld [vmem:[#allocation2 + $0x7c0] sm:$0xff]  ;;  %v3473_v57 = vld [vmem:[#allocation2 + $0x7d0] sm:$0xff] }
 0x4e0   :  { %3646 = vmatprep.subr.bf16.mxu1 %v3370_v58  ;;  %v3228_v58 = vld [vmem:[#allocation2 + $0x28] sm:$0xff] }
 0x4e2   :  { %3565 = vmatpush1.bf16.msra.mxu0 %v3367_v59  ;;  %v3230_v59 = vld [vmem:[#allocation2 + $0x38] sm:$0xff] }
 0x4e3   :  { %3647 = vmatpush1.bf16.msra.mxu1 %v3369_v61  ;;  %3566 = vmatprep.subr.bf16.mxu0 %v3376_v62  ;;  %v3227_v61 = vld [vmem:[#allocation2 + $0x20] sm:$0xff]  ;;  %v3229_v62 = vld [vmem:[#allocation2 + $0x30] sm:$0xff] }
 0x4e4   :  { %3648 = vmatprep.subr.bf16.mxu1 %v3378_v63  ;;  %v3236_v63 = vld [vmem:[#allocation2 + $0x68] sm:$0xff] }
 0x4e6   :  { %3567 = vmatpush1.bf16.msra.mxu0 %v3375_v1  ;;  %v3238_v1 = vld [vmem:[#allocation2 + $0x78] sm:$0xff] }
 0x4e7   :  { %3649 = vmatpush1.bf16.msra.mxu1 %v3377_v3  ;;  %3568 = vmatprep.subr.bf16.mxu0 %v3384_v4  ;;  %v3235_v3 = vld [vmem:[#allocation2 + $0x60] sm:$0xff]  ;;  %v3237_v4 = vld [vmem:[#allocation2 + $0x70] sm:$0xff] }
 0x4e8   :  { %3650 = vmatprep.subr.bf16.mxu1 %v3386_v5  ;;  %v3244_v5 = vld [vmem:[#allocation2 + $0xa8] sm:$0xff] }
 0x4ea   :  { %3569 = vmatpush1.bf16.msra.mxu0 %v3383_v6  ;;  %v3246_v6 = vld [vmem:[#allocation2 + $0xb8] sm:$0xff] }
 0x4eb   :  { %3651 = vmatpush1.bf16.msra.mxu1 %v3385_v7  ;;  %3570 = vmatprep.subr.bf16.mxu0 %v3392_v8  ;;  %v3243_v7 = vld [vmem:[#allocation2 + $0xa0] sm:$0xff]  ;;  %v3245_v8 = vld [vmem:[#allocation2 + $0xb0] sm:$0xff] }
 0x4ec   :  { %3652 = vmatprep.subr.bf16.mxu1 %v3394_v9  ;;  %v3252_v9 = vld [vmem:[#allocation2 + $0xe8] sm:$0xff] }
 0x4ee   :  { %3571 = vmatpush1.bf16.msra.mxu0 %v3391_v10  ;;  %v3254_v10 = vld [vmem:[#allocation2 + $0xf8] sm:$0xff] }
 0x4ef   :  { %3653 = vmatpush1.bf16.msra.mxu1 %v3393_v13  ;;  %3572 = vmatprep.subr.bf16.mxu0 %v3400_v18  ;;  %v3251_v13 = vld [vmem:[#allocation2 + $0xe0] sm:$0xff]  ;;  %v3253_v18 = vld [vmem:[#allocation2 + $0xf0] sm:$0xff] }
 0x4f0   :  { %3654 = vmatprep.subr.bf16.mxu1 %v3402_v45  ;;  %v3260_v45 = vld [vmem:[#allocation2 + $0x128] sm:$0xff] }
 0x4f2   :  { %3573 = vmatpush1.bf16.msra.mxu0 %v3399_v19  ;;  %v3262_v19 = vld [vmem:[#allocation2 + $0x138] sm:$0xff] }
 0x4f3   :  { %3655 = vmatpush1.bf16.msra.mxu1 %v3401_v12  ;;  %3574 = vmatprep.subr.bf16.mxu0 %v3408_v16  ;;  %v3261_v12 = vld [vmem:[#allocation2 + $0x130] sm:$0xff]  ;;  %v3268_v16 = vld [vmem:[#allocation2 + $0x168] sm:$0xff] }
 0x4f4   :  { %3656 = vmatprep.subr.bf16.mxu1 %v3410_v20  ;;  %v3270_v20 = vld [vmem:[#allocation2 + $0x178] sm:$0xff] }
 0x4f6   :  { %3575 = vmatpush1.bf16.msra.mxu0 %v3407_v21  ;;  %v3267_v21 = vld [vmem:[#allocation2 + $0x160] sm:$0xff] }
 0x4f7   :  { %3657 = vmatpush1.bf16.msra.mxu1 %v3409_v22  ;;  %3576 = vmatprep.subr.bf16.mxu0 %v3416_v17  ;;  %v3269_v22 = vld [vmem:[#allocation2 + $0x170] sm:$0xff]  ;;  %v3276_v17 = vld [vmem:[#allocation2 + $0x1a8] sm:$0xff] }
 0x4f8   :  { %3658 = vmatprep.subr.bf16.mxu1 %v3418_v23  ;;  %v3278_v23 = vld [vmem:[#allocation2 + $0x1b8] sm:$0xff] }
 0x4fa   :  { %3577 = vmatpush1.bf16.msra.mxu0 %v3415_v24  ;;  %v3275_v24 = vld [vmem:[#allocation2 + $0x1a0] sm:$0xff] }
 0x4fb   :  { %3659 = vmatpush1.bf16.msra.mxu1 %v3417_v25  ;;  %3578 = vmatprep.subr.bf16.mxu0 %v3424_v27  ;;  %v3277_v25 = vld [vmem:[#allocation2 + $0x1b0] sm:$0xff]  ;;  %v3284_v27 = vld [vmem:[#allocation2 + $0x1e8] sm:$0xff] }
 0x4fc   :  { %3660 = vmatprep.subr.bf16.mxu1 %v3426_v28  ;;  %v3286_v28 = vld [vmem:[#allocation2 + $0x1f8] sm:$0xff] }
 0x4fe   :  { %3579 = vmatpush1.bf16.msra.mxu0 %v3423_v15  ;;  %v3283_v15 = vld [vmem:[#allocation2 + $0x1e0] sm:$0xff] }
 0x4ff   :  { %3661 = vmatpush1.bf16.msra.mxu1 %v3425_v33  ;;  %3580 = vmatprep.subr.bf16.mxu0 %v3432_v29  ;;  %v3285_v33 = vld [vmem:[#allocation2 + $0x1f0] sm:$0xff]  ;;  %v3292_v29 = vld [vmem:[#allocation2 + $0x228] sm:$0xff] }
 0x500   :  { %3662 = vmatprep.subr.bf16.mxu1 %v3434_v30  ;;  %v3294_v30 = vld [vmem:[#allocation2 + $0x238] sm:$0xff] }
 0x502   :  { %3581 = vmatpush1.bf16.msra.mxu0 %v3431_v37  ;;  %v3291_v37 = vld [vmem:[#allocation2 + $0x220] sm:$0xff] }
 0x503   :  { %3663 = vmatpush1.bf16.msra.mxu1 %v3433_v31  ;;  %3582 = vmatprep.subr.bf16.mxu0 %v3440_v32  ;;  %v3293_v31 = vld [vmem:[#allocation2 + $0x230] sm:$0xff]  ;;  %v3300_v32 = vld [vmem:[#allocation2 + $0x268] sm:$0xff] }
 0x504   :  { %3664 = vmatprep.subr.bf16.mxu1 %v3442_v35  ;;  %v3302_v35 = vld [vmem:[#allocation2 + $0x278] sm:$0xff] }
 0x506   :  { %3583 = vmatpush1.bf16.msra.mxu0 %v3439_v34  ;;  %v3299_v34 = vld [vmem:[#allocation2 + $0x260] sm:$0xff] }
 0x507   :  { %3665 = vmatpush1.bf16.msra.mxu1 %v3441_v41  ;;  %3584 = vmatprep.subr.bf16.mxu0 %v3448_v42  ;;  %v3301_v41 = vld [vmem:[#allocation2 + $0x270] sm:$0xff]  ;;  %v3308_v42 = vld [vmem:[#allocation2 + $0x2a8] sm:$0xff] }
 0x508   :  { %3666 = vmatprep.subr.bf16.mxu1 %v3450_v43  ;;  %v3310_v43 = vld [vmem:[#allocation2 + $0x2b8] sm:$0xff] }
 0x50a   :  { %3585 = vmatpush1.bf16.msra.mxu0 %v3447_v44  ;;  %v3307_v44 = vld [vmem:[#allocation2 + $0x2a0] sm:$0xff] }
 0x50b   :  { %3667 = vmatpush1.bf16.msra.mxu1 %v3449_v46  ;;  %3586 = vmatprep.subr.bf16.mxu0 %v3456_v47  ;;  %v3309_v46 = vld [vmem:[#allocation2 + $0x2b0] sm:$0xff]  ;;  %v3316_v47 = vld [vmem:[#allocation2 + $0x2e8] sm:$0xff] }
 0x50c   :  { %3668 = vmatprep.subr.bf16.mxu1 %v3458_v48  ;;  %v3318_v48 = vld [vmem:[#allocation2 + $0x2f8] sm:$0xff] }
 0x50e   :  { %3587 = vmatpush1.bf16.msra.mxu0 %v3455_v49  ;;  %v3315_v49 = vld [vmem:[#allocation2 + $0x2e0] sm:$0xff] }
 0x50f   :  { %3669 = vmatpush1.bf16.msra.mxu1 %v3457_v50  ;;  %3588 = vmatprep.subr.bf16.mxu0 %v3464_v51  ;;  %v3317_v50 = vld [vmem:[#allocation2 + $0x2f0] sm:$0xff]  ;;  %v3324_v51 = vld [vmem:[#allocation2 + $0x328] sm:$0xff] }
 0x510   :  { %3670 = vmatprep.subr.bf16.mxu1 %v3466_v52  ;;  %v3326_v52 = vld [vmem:[#allocation2 + $0x338] sm:$0xff] }
 0x512   :  { %3589 = vmatpush1.bf16.msra.mxu0 %v3463_v53  ;;  %v3323_v53 = vld [vmem:[#allocation2 + $0x320] sm:$0xff] }
 0x513   :  { %3671 = vmatpush1.bf16.msra.mxu1 %v3465_v26  ;;  %3590 = vmatprep.subr.bf16.mxu0 %v3472_v54  ;;  %v3325_v26 = vld [vmem:[#allocation2 + $0x330] sm:$0xff]  ;;  %v3332_v54 = vld [vmem:[#allocation2 + $0x368] sm:$0xff] }
 0x514   :  { %3672 = vmatprep.subr.bf16.mxu1 %v3474_v55  ;;  %v3334_v55 = vld [vmem:[#allocation2 + $0x378] sm:$0xff] }
 0x516   :  { %3591 = vmatpush1.bf16.msra.mxu0 %v3471_v56  ;;  %v3331_v56 = vld [vmem:[#allocation2 + $0x360] sm:$0xff] }
 0x517   :  { %3673 = vmatpush1.bf16.msra.mxu1 %v3473_v57  ;;  %3683 = vmatprep.subr.bf16.mxu0 %v3228_v58  ;;  %v3333_v57 = vld [vmem:[#allocation2 + $0x370] sm:$0xff]  ;;  %v3340_v58 = vld [vmem:[#allocation2 + $0x3a8] sm:$0xff] }
 0x518   :  { %3765 = vmatprep.subr.bf16.mxu1 %v3230_v59  ;;  %v3342_v59 = vld [vmem:[#allocation2 + $0x3b8] sm:$0xff] }
 0x519   :  { %3593 = vmatmul.mubr.bf16.vlgmr.msra.gmra.mrb[16].mxu0 %v7014_v36 }
 0x51a   :  { %3675 = vmatmul.mubr.bf16.vlgmr.msra.gmra.mrb[16].mxu1 %v7014_v36  ;;  %3684 = vmatpush1.bf16.msra.mxu0 %v3227_v61  ;;  %v3339_v61 = vld [vmem:[#allocation2 + $0x3a0] sm:$0xff] }
 0x51b   :  { %3766 = vmatpush1.bf16.msra.mxu1 %v3229_v62  ;;  %3685 = vmatprep.subr.bf16.mxu0 %v3236_v63  ;;  %v3341_v62 = vld [vmem:[#allocation2 + $0x3b0] sm:$0xff]  ;;  %v3348_v63 = vld [vmem:[#allocation2 + $0x3e8] sm:$0xff] }
 0x51c   :  { %3767 = vmatprep.subr.bf16.mxu1 %v3238_v1  ;;  %3715 = vmatprep.mubr.bf16.mxu0 %v7016_v40  ;;  %v3350_v1 = vld [vmem:[#allocation2 + $0x3f8] sm:$0xff] }
 0x51d   :  { %3797 = vmatprep.mubr.bf16.mxu1 %v7016_v40  ;;  %v3259_v40 = vld [vmem:[#allocation2 + $0x120] sm:$0xff] }
 0x51e   :  { %3686 = vmatpush1.bf16.msra.mxu0 %v3235_v3  ;;  %v3347_v3 = vld [vmem:[#allocation2 + $0x3e0] sm:$0xff] }
 0x51f   :  { %3768 = vmatpush1.bf16.msra.mxu1 %v3237_v4  ;;  %3687 = vmatprep.subr.bf16.mxu0 %v3244_v5  ;;  %v3349_v4 = vld [vmem:[#allocation2 + $0x3f0] sm:$0xff]  ;;  %v3356_v5 = vld [vmem:[#allocation2 + $0x428] sm:$0xff] }
 0x520   :  { %3769 = vmatprep.subr.bf16.mxu1 %v3246_v6  ;;  %v3358_v6 = vld [vmem:[#allocation2 + $0x438] sm:$0xff] }
 0x522   :  { %3688 = vmatpush1.bf16.msra.mxu0 %v3243_v7  ;;  %v3355_v7 = vld [vmem:[#allocation2 + $0x420] sm:$0xff] }
 0x523   :  { %3770 = vmatpush1.bf16.msra.mxu1 %v3245_v8  ;;  %3689 = vmatprep.subr.bf16.mxu0 %v3252_v9  ;;  %v3357_v8 = vld [vmem:[#allocation2 + $0x430] sm:$0xff]  ;;  %v3364_v9 = vld [vmem:[#allocation2 + $0x468] sm:$0xff] }
 0x524   :  { %3771 = vmatprep.subr.bf16.mxu1 %v3254_v10  ;;  %v3366_v10 = vld [vmem:[#allocation2 + $0x478] sm:$0xff] }
 0x526   :  { %3690 = vmatpush1.bf16.msra.mxu0 %v3251_v13  ;;  %v3363_v13 = vld [vmem:[#allocation2 + $0x460] sm:$0xff] }
 0x527   :  { %3772 = vmatpush1.bf16.msra.mxu1 %v3253_v18  ;;  %3691 = vmatprep.subr.bf16.mxu0 %v3260_v45  ;;  %v3365_v18 = vld [vmem:[#allocation2 + $0x470] sm:$0xff]  ;;  %v3372_v45 = vld [vmem:[#allocation2 + $0x4a8] sm:$0xff] }
 0x528   :  { %3773 = vmatprep.subr.bf16.mxu1 %v3262_v19  ;;  %v3374_v19 = vld [vmem:[#allocation2 + $0x4b8] sm:$0xff] }
 0x52a   :  { %3692 = vmatpush1.bf16.msra.mxu0 %v3259_v40  ;;  %v3371_v40 = vld [vmem:[#allocation2 + $0x4a0] sm:$0xff] }
 0x52b   :  { %3774 = vmatpush1.bf16.msra.mxu1 %v3261_v12  ;;  %3693 = vmatprep.subr.bf16.mxu0 %v3268_v16  ;;  %v3373_v12 = vld [vmem:[#allocation2 + $0x4b0] sm:$0xff]  ;;  %v3380_v16 = vld [vmem:[#allocation2 + $0x4e8] sm:$0xff] }
 0x52c   :  { %3775 = vmatprep.subr.bf16.mxu1 %v3270_v20  ;;  %v3379_v20 = vld [vmem:[#allocation2 + $0x4e0] sm:$0xff] }
 0x52e   :  { %3694 = vmatpush1.bf16.msra.mxu0 %v3267_v21  ;;  %v3381_v21 = vld [vmem:[#allocation2 + $0x4f0] sm:$0xff] }
 0x52f   :  { %3776 = vmatpush1.bf16.msra.mxu1 %v3269_v22  ;;  %3695 = vmatprep.subr.bf16.mxu0 %v3276_v17  ;;  %v3388_v22 = vld [vmem:[#allocation2 + $0x528] sm:$0xff]  ;;  %v3390_v17 = vld [vmem:[#allocation2 + $0x538] sm:$0xff] }
 0x530   :  { %3777 = vmatprep.subr.bf16.mxu1 %v3278_v23  ;;  %v3389_v23 = vld [vmem:[#allocation2 + $0x530] sm:$0xff] }
 0x532   :  { %3696 = vmatpush1.bf16.msra.mxu0 %v3275_v24  ;;  %v3396_v24 = vld [vmem:[#allocation2 + $0x568] sm:$0xff] }
 0x533   :  { %3778 = vmatpush1.bf16.msra.mxu1 %v3277_v25  ;;  %3697 = vmatprep.subr.bf16.mxu0 %v3284_v27  ;;  %v3398_v25 = vld [vmem:[#allocation2 + $0x578] sm:$0xff]  ;;  %v3395_v27 = vld [vmem:[#allocation2 + $0x560] sm:$0xff] }
 0x534   :  { %3779 = vmatprep.subr.bf16.mxu1 %v3286_v28  ;;  %v3397_v28 = vld [vmem:[#allocation2 + $0x570] sm:$0xff] }
 0x536   :  { %3698 = vmatpush1.bf16.msra.mxu0 %v3283_v15  ;;  %v3404_v15 = vld [vmem:[#allocation2 + $0x5a8] sm:$0xff] }
 0x537   :  { %3780 = vmatpush1.bf16.msra.mxu1 %v3285_v33  ;;  %3699 = vmatprep.subr.bf16.mxu0 %v3292_v29  ;;  %v3406_v33 = vld [vmem:[#allocation2 + $0x5b8] sm:$0xff]  ;;  %v3403_v29 = vld [vmem:[#allocation2 + $0x5a0] sm:$0xff] }
 0x538   :  { %3781 = vmatprep.subr.bf16.mxu1 %v3294_v30  ;;  %v3405_v30 = vld [vmem:[#allocation2 + $0x5b0] sm:$0xff] }
 0x53a   :  { %3700 = vmatpush1.bf16.msra.mxu0 %v3291_v37  ;;  %v3412_v37 = vld [vmem:[#allocation2 + $0x5e8] sm:$0xff] }
 0x53b   :  { %3782 = vmatpush1.bf16.msra.mxu1 %v3293_v31  ;;  %3701 = vmatprep.subr.bf16.mxu0 %v3300_v32  ;;  %v3414_v31 = vld [vmem:[#allocation2 + $0x5f8] sm:$0xff]  ;;  %v3411_v32 = vld [vmem:[#allocation2 + $0x5e0] sm:$0xff] }
 0x53c   :  { %3783 = vmatprep.subr.bf16.mxu1 %v3302_v35  ;;  %v3413_v35 = vld [vmem:[#allocation2 + $0x5f0] sm:$0xff] }
 0x53e   :  { %3702 = vmatpush1.bf16.msra.mxu0 %v3299_v34  ;;  %v3420_v34 = vld [vmem:[#allocation2 + $0x628] sm:$0xff] }
 0x53f   :  { %3784 = vmatpush1.bf16.msra.mxu1 %v3301_v41  ;;  %3703 = vmatprep.subr.bf16.mxu0 %v3308_v42  ;;  %v3422_v41 = vld [vmem:[#allocation2 + $0x638] sm:$0xff]  ;;  %v3419_v42 = vld [vmem:[#allocation2 + $0x620] sm:$0xff] }
 0x540   :  { %3785 = vmatprep.subr.bf16.mxu1 %v3310_v43  ;;  %v3421_v43 = vld [vmem:[#allocation2 + $0x630] sm:$0xff] }
 0x542   :  { %3704 = vmatpush1.bf16.msra.mxu0 %v3307_v44  ;;  %v3428_v44 = vld [vmem:[#allocation2 + $0x668] sm:$0xff] }
 0x543   :  { %3786 = vmatpush1.bf16.msra.mxu1 %v3309_v46  ;;  %3705 = vmatprep.subr.bf16.mxu0 %v3316_v47  ;;  %v3430_v46 = vld [vmem:[#allocation2 + $0x678] sm:$0xff]  ;;  %v3427_v47 = vld [vmem:[#allocation2 + $0x660] sm:$0xff] }
 0x544   :  { %3787 = vmatprep.subr.bf16.mxu1 %v3318_v48  ;;  %v3429_v48 = vld [vmem:[#allocation2 + $0x670] sm:$0xff] }
 0x546   :  { %3706 = vmatpush1.bf16.msra.mxu0 %v3315_v49  ;;  %v3436_v49 = vld [vmem:[#allocation2 + $0x6a8] sm:$0xff] }
 0x547   :  { %3788 = vmatpush1.bf16.msra.mxu1 %v3317_v50  ;;  %3707 = vmatprep.subr.bf16.mxu0 %v3324_v51  ;;  %v3438_v50 = vld [vmem:[#allocation2 + $0x6b8] sm:$0xff]  ;;  %v3435_v51 = vld [vmem:[#allocation2 + $0x6a0] sm:$0xff] }
 0x548   :  { %3789 = vmatprep.subr.bf16.mxu1 %v3326_v52  ;;  %v3437_v52 = vld [vmem:[#allocation2 + $0x6b0] sm:$0xff] }
 0x54a   :  { %3708 = vmatpush1.bf16.msra.mxu0 %v3323_v53  ;;  %v3444_v53 = vld [vmem:[#allocation2 + $0x6e8] sm:$0xff] }
 0x54b   :  { %3790 = vmatpush1.bf16.msra.mxu1 %v3325_v26  ;;  %3709 = vmatprep.subr.bf16.mxu0 %v3332_v54  ;;  %v3446_v26 = vld [vmem:[#allocation2 + $0x6f8] sm:$0xff]  ;;  %v3443_v54 = vld [vmem:[#allocation2 + $0x6e0] sm:$0xff] }
 0x54c   :  { %3791 = vmatprep.subr.bf16.mxu1 %v3334_v55  ;;  %v3445_v55 = vld [vmem:[#allocation2 + $0x6f0] sm:$0xff] }
 0x54e   :  { %3710 = vmatpush1.bf16.msra.mxu0 %v3331_v56  ;;  %v3452_v56 = vld [vmem:[#allocation2 + $0x728] sm:$0xff] }
 0x54f   :  { %3792 = vmatpush1.bf16.msra.mxu1 %v3333_v57  ;;  %3711 = vmatprep.subr.bf16.mxu0 %v3340_v58  ;;  %v3454_v57 = vld [vmem:[#allocation2 + $0x738] sm:$0xff]  ;;  %v3451_v58 = vld [vmem:[#allocation2 + $0x720] sm:$0xff] }
 0x550   :  { %3793 = vmatprep.subr.bf16.mxu1 %v3342_v59  ;;  %v3453_v59 = vld [vmem:[#allocation2 + $0x730] sm:$0xff] }
 0x552   :  { %3712 = vmatpush1.bf16.msra.mxu0 %v3339_v61  ;;  %v3460_v61 = vld [vmem:[#allocation2 + $0x768] sm:$0xff] }
 0x553   :  { %3794 = vmatpush1.bf16.msra.mxu1 %v3341_v62  ;;  %3713 = vmatprep.subr.bf16.mxu0 %v3348_v63  ;;  %v3462_v62 = vld [vmem:[#allocation2 + $0x778] sm:$0xff]  ;;  %v3459_v63 = vld [vmem:[#allocation2 + $0x760] sm:$0xff] }
 0x554   :  { %3795 = vmatprep.subr.bf16.mxu1 %v3350_v1  ;;  %v3461_v1 = vld [vmem:[#allocation2 + $0x770] sm:$0xff] }
 0x556   :  { %3714 = vmatpush1.bf16.msra.mxu0 %v3347_v3  ;;  %v3468_v3 = vld [vmem:[#allocation2 + $0x7a8] sm:$0xff] }
 0x557   :  { %3796 = vmatpush1.bf16.msra.mxu1 %v3349_v4  ;;  %3724 = vmatprep.subr.bf16.mxu0 %v3356_v5  ;;  %v3470_v4 = vld [vmem:[#allocation2 + $0x7b8] sm:$0xff]  ;;  %v3467_v5 = vld [vmem:[#allocation2 + $0x7a0] sm:$0xff] }
 0x558   :  { %3806 = vmatprep.subr.bf16.mxu1 %v3358_v6  ;;  %v3469_v6 = vld [vmem:[#allocation2 + $0x7b0] sm:$0xff] }
 0x559   :  { %3716 = vmatmul.mubr.bf16.vlgmr.msra.gmra.mrb[20].mxu0 %v7012_v39 }
 0x55a   :  { %3798 = vmatmul.mubr.bf16.vlgmr.msra.gmra.mrb[20].mxu1 %v7012_v39  ;;  %3725 = vmatpush1.bf16.msra.mxu0 %v3355_v7  ;;  %v3382_v39 = vld [vmem:[#allocation2 + $0x4f8] sm:$0xff]  ;;  %v3476_v7 = vld [vmem:[#allocation2 + $0x7e8] sm:$0xff] }
 0x55b   :  { %3807 = vmatpush1.bf16.msra.mxu1 %v3357_v8  ;;  %3726 = vmatprep.subr.bf16.mxu0 %v3364_v9  ;;  %v3478_v8 = vld [vmem:[#allocation2 + $0x7f8] sm:$0xff]  ;;  %v3475_v9 = vld [vmem:[#allocation2 + $0x7e0] sm:$0xff] }
 0x55c   :  { %3808 = vmatprep.subr.bf16.mxu1 %v3366_v10  ;;  %3756 = vmatprep.mubr.bf16.mxu0 %v7018_v2  ;;  %v3477_v10 = vld [vmem:[#allocation2 + $0x7f0] sm:$0xff] }
 0x55d   :  { %3838 = vmatprep.mubr.bf16.mxu1 %v7018_v2  ;;  %v3387_v2 = vld [vmem:[#allocation2 + $0x520] sm:$0xff] }
 0x55e   :  { %3727 = vmatpush1.bf16.msra.mxu0 %v3363_v13  ;;  %v3864_v13 = vld [vmem:[#allocation3 + $0x8] sm:$0xff] }
 0x55f   :  { %3809 = vmatpush1.bf16.msra.mxu1 %v3365_v18  ;;  %3728 = vmatprep.subr.bf16.mxu0 %v3372_v45  ;;  %v3866_v18 = vld [vmem:[#allocation3 + $0x18] sm:$0xff]  ;;  %v3863_v45 = vld [vmem:[#allocation3] sm:$0xff] }
 0x560   :  { %3810 = vmatprep.subr.bf16.mxu1 %v3374_v19  ;;  %v3865_v19 = vld [vmem:[#allocation3 + $0x10] sm:$0xff] }
 0x562   :  { %3729 = vmatpush1.bf16.msra.mxu0 %v3371_v40  ;;  %v3868_v40 = vld [vmem:[#allocation3 + $0x28] sm:$0xff] }
 0x563   :  { %3811 = vmatpush1.bf16.msra.mxu1 %v3373_v12  ;;  %3730 = vmatprep.subr.bf16.mxu0 %v3380_v16  ;;  %v3870_v12 = vld [vmem:[#allocation3 + $0x38] sm:$0xff]  ;;  %v3867_v16 = vld [vmem:[#allocation3 + $0x20] sm:$0xff] }
 0x564   :  { %3812 = vmatprep.subr.bf16.mxu1 %v3382_v39  ;;  %v3869_v39 = vld [vmem:[#allocation3 + $0x30] sm:$0xff] }
 0x566   :  { %3731 = vmatpush1.bf16.msra.mxu0 %v3379_v20  ;;  %v3872_v20 = vld [vmem:[#allocation3 + $0x48] sm:$0xff] }
 0x567   :  { %3813 = vmatpush1.bf16.msra.mxu1 %v3381_v21  ;;  %3732 = vmatprep.subr.bf16.mxu0 %v3388_v22  ;;  %v3874_v21 = vld [vmem:[#allocation3 + $0x58] sm:$0xff]  ;;  %v3871_v22 = vld [vmem:[#allocation3 + $0x40] sm:$0xff] }
 0x568   :  { %3814 = vmatprep.subr.bf16.mxu1 %v3390_v17  ;;  %v3873_v17 = vld [vmem:[#allocation3 + $0x50] sm:$0xff] }
 0x56a   :  { %3733 = vmatpush1.bf16.msra.mxu0 %v3387_v2  ;;  %v3876_v2 = vld [vmem:[#allocation3 + $0x68] sm:$0xff] }
 0x56b   :  { %3815 = vmatpush1.bf16.msra.mxu1 %v3389_v23  ;;  %3734 = vmatprep.subr.bf16.mxu0 %v3396_v24  ;;  %v3878_v23 = vld [vmem:[#allocation3 + $0x78] sm:$0xff]  ;;  %v3877_v24 = vld [vmem:[#allocation3 + $0x70] sm:$0xff] }
 0x56c   :  { %3816 = vmatprep.subr.bf16.mxu1 %v3398_v25  ;;  %v3880_v25 = vld [vmem:[#allocation3 + $0x88] sm:$0xff] }
 0x56e   :  { %3735 = vmatpush1.bf16.msra.mxu0 %v3395_v27  ;;  %v3882_v27 = vld [vmem:[#allocation3 + $0x98] sm:$0xff] }
 0x56f   :  { %3817 = vmatpush1.bf16.msra.mxu1 %v3397_v28  ;;  %3736 = vmatprep.subr.bf16.mxu0 %v3404_v15  ;;  %v3879_v28 = vld [vmem:[#allocation3 + $0x80] sm:$0xff]  ;;  %v3881_v15 = vld [vmem:[#allocation3 + $0x90] sm:$0xff] }
 0x570   :  { %3818 = vmatprep.subr.bf16.mxu1 %v3406_v33  ;;  %v3884_v33 = vld [vmem:[#allocation3 + $0xa8] sm:$0xff] }
 0x572   :  { %3737 = vmatpush1.bf16.msra.mxu0 %v3403_v29  ;;  %v3886_v29 = vld [vmem:[#allocation3 + $0xb8] sm:$0xff] }
 0x573   :  { %3819 = vmatpush1.bf16.msra.mxu1 %v3405_v30  ;;  %3738 = vmatprep.subr.bf16.mxu0 %v3412_v37  ;;  %v3883_v30 = vld [vmem:[#allocation3 + $0xa0] sm:$0xff]  ;;  %v3885_v37 = vld [vmem:[#allocation3 + $0xb0] sm:$0xff] }
 0x574   :  { %3820 = vmatprep.subr.bf16.mxu1 %v3414_v31  ;;  %v3888_v31 = vld [vmem:[#allocation3 + $0xc8] sm:$0xff] }
 0x576   :  { %3739 = vmatpush1.bf16.msra.mxu0 %v3411_v32  ;;  %v3890_v32 = vld [vmem:[#allocation3 + $0xd8] sm:$0xff] }
 0x577   :  { %3821 = vmatpush1.bf16.msra.mxu1 %v3413_v35  ;;  %3740 = vmatprep.subr.bf16.mxu0 %v3420_v34  ;;  %v3887_v35 = vld [vmem:[#allocation3 + $0xc0] sm:$0xff]  ;;  %v3889_v34 = vld [vmem:[#allocation3 + $0xd0] sm:$0xff] }
 0x578   :  { %3822 = vmatprep.subr.bf16.mxu1 %v3422_v41  ;;  %v3892_v41 = vld [vmem:[#allocation3 + $0xe8] sm:$0xff] }
 0x57a   :  { %3741 = vmatpush1.bf16.msra.mxu0 %v3419_v42  ;;  %v3894_v42 = vld [vmem:[#allocation3 + $0xf8] sm:$0xff] }
 0x57b   :  { %3823 = vmatpush1.bf16.msra.mxu1 %v3421_v43  ;;  %3742 = vmatprep.subr.bf16.mxu0 %v3428_v44  ;;  %v3891_v43 = vld [vmem:[#allocation3 + $0xe0] sm:$0xff]  ;;  %v3893_v44 = vld [vmem:[#allocation3 + $0xf0] sm:$0xff] }
 0x57c   :  { %3824 = vmatprep.subr.bf16.mxu1 %v3430_v46  ;;  %v3896_v46 = vld [vmem:[#allocation3 + $0x108] sm:$0xff] }
 0x57e   :  { %3743 = vmatpush1.bf16.msra.mxu0 %v3427_v47  ;;  %v3898_v47 = vld [vmem:[#allocation3 + $0x118] sm:$0xff] }
 0x57f   :  { %3825 = vmatpush1.bf16.msra.mxu1 %v3429_v48  ;;  %3744 = vmatprep.subr.bf16.mxu0 %v3436_v49  ;;  %v3895_v48 = vld [vmem:[#allocation3 + $0x100] sm:$0xff]  ;;  %v3897_v49 = vld [vmem:[#allocation3 + $0x110] sm:$0xff] }
 0x580   :  { %3826 = vmatprep.subr.bf16.mxu1 %v3438_v50  ;;  %v3900_v50 = vld [vmem:[#allocation3 + $0x128] sm:$0xff] }
 0x582   :  { %3745 = vmatpush1.bf16.msra.mxu0 %v3435_v51  ;;  %v3902_v51 = vld [vmem:[#allocation3 + $0x138] sm:$0xff] }
 0x583   :  { %3827 = vmatpush1.bf16.msra.mxu1 %v3437_v52  ;;  %3746 = vmatprep.subr.bf16.mxu0 %v3444_v53  ;;  %v3899_v52 = vld [vmem:[#allocation3 + $0x120] sm:$0xff]  ;;  %v3901_v53 = vld [vmem:[#allocation3 + $0x130] sm:$0xff] }
 0x584   :  { %3828 = vmatprep.subr.bf16.mxu1 %v3446_v26  ;;  %v3904_v26 = vld [vmem:[#allocation3 + $0x148] sm:$0xff] }
 0x586   :  { %3747 = vmatpush1.bf16.msra.mxu0 %v3443_v54  ;;  %v3906_v54 = vld [vmem:[#allocation3 + $0x158] sm:$0xff] }
 0x587   :  { %3829 = vmatpush1.bf16.msra.mxu1 %v3445_v55  ;;  %3748 = vmatprep.subr.bf16.mxu0 %v3452_v56  ;;  %v3903_v55 = vld [vmem:[#allocation3 + $0x140] sm:$0xff]  ;;  %v3905_v56 = vld [vmem:[#allocation3 + $0x150] sm:$0xff] }
 0x588   :  { %3830 = vmatprep.subr.bf16.mxu1 %v3454_v57  ;;  %v3908_v57 = vld [vmem:[#allocation3 + $0x168] sm:$0xff] }
 0x58a   :  { %3749 = vmatpush1.bf16.msra.mxu0 %v3451_v58  ;;  %v3910_v58 = vld [vmem:[#allocation3 + $0x178] sm:$0xff] }
 0x58b   :  { %3831 = vmatpush1.bf16.msra.mxu1 %v3453_v59  ;;  %3750 = vmatprep.subr.bf16.mxu0 %v3460_v61  ;;  %v3907_v59 = vld [vmem:[#allocation3 + $0x160] sm:$0xff]  ;;  %v3909_v61 = vld [vmem:[#allocation3 + $0x170] sm:$0xff] }
 0x58c   :  { %3832 = vmatprep.subr.bf16.mxu1 %v3462_v62  ;;  %v3912_v62 = vld [vmem:[#allocation3 + $0x188] sm:$0xff] }
 0x58e   :  { %3751 = vmatpush1.bf16.msra.mxu0 %v3459_v63  ;;  %v3914_v63 = vld [vmem:[#allocation3 + $0x198] sm:$0xff] }
 0x58f   :  { %3833 = vmatpush1.bf16.msra.mxu1 %v3461_v1  ;;  %3752 = vmatprep.subr.bf16.mxu0 %v3468_v3  ;;  %v3911_v1 = vld [vmem:[#allocation3 + $0x180] sm:$0xff]  ;;  %v3913_v3 = vld [vmem:[#allocation3 + $0x190] sm:$0xff] }
 0x590   :  { %3834 = vmatprep.subr.bf16.mxu1 %v3470_v4  ;;  %v3916_v4 = vld [vmem:[#allocation3 + $0x1a8] sm:$0xff] }
 0x592   :  { %3753 = vmatpush1.bf16.msra.mxu0 %v3467_v5  ;;  %v3918_v5 = vld [vmem:[#allocation3 + $0x1b8] sm:$0xff] }
 0x593   :  { %3835 = vmatpush1.bf16.msra.mxu1 %v3469_v6  ;;  %3754 = vmatprep.subr.bf16.mxu0 %v3476_v7  ;;  %v3915_v6 = vld [vmem:[#allocation3 + $0x1a0] sm:$0xff]  ;;  %v3917_v7 = vld [vmem:[#allocation3 + $0x1b0] sm:$0xff] }
 0x594   :  { %3836 = vmatprep.subr.bf16.mxu1 %v3478_v8  ;;  %v3920_v8 = vld [vmem:[#allocation3 + $0x1c8] sm:$0xff] }
 0x596   :  { %3755 = vmatpush1.bf16.msra.mxu0 %v3475_v9  ;;  %v3922_v9 = vld [vmem:[#allocation3 + $0x1d8] sm:$0xff] }
 0x597   :  { %3837 = vmatpush1.bf16.msra.mxu1 %v3477_v10  ;;  %4013 = vmatprep.subr.bf16.mxu0 %v3864_v13  ;;  %v3919_v10 = vld [vmem:[#allocation3 + $0x1c0] sm:$0xff]  ;;  %v3921_v13 = vld [vmem:[#allocation3 + $0x1d0] sm:$0xff] }
 0x598   :  { %4095 = vmatprep.subr.bf16.mxu1 %v3866_v18  ;;  %v3924_v18 = vld [vmem:[#allocation3 + $0x1e8] sm:$0xff] }
 0x599   :  { %3757 = vmatmul.mubr.bf16.vlgmr.msra.gmra.mrb[20].mxu0 %v7014_v36 }
 0x59a   :  { %3839 = vmatmul.mubr.bf16.vlgmr.msra.gmra.mrb[20].mxu1 %v7014_v36  ;;  %4014 = vmatpush1.bf16.msra.mxu0 %v3863_v45  ;;  %v3875_v36 = vld [vmem:[#allocation3 + $0x60] sm:$0xff]  ;;  %v3926_v45 = vld [vmem:[#allocation3 + $0x1f8] sm:$0xff] }
 0x59b   :  { %4096 = vmatpush1.bf16.msra.mxu1 %v3865_v19  ;;  %4015 = vmatprep.subr.bf16.mxu0 %v3868_v40  ;;  %v3923_v19 = vld [vmem:[#allocation3 + $0x1e0] sm:$0xff]  ;;  %v3925_v40 = vld [vmem:[#allocation3 + $0x1f0] sm:$0xff] }
 0x59c   :  { %4097 = vmatprep.subr.bf16.mxu1 %v3870_v12  ;;  %v3928_v12 = vld [vmem:[#allocation3 + $0x208] sm:$0xff] }
 0x59e   :  { %4016 = vmatpush1.bf16.msra.mxu0 %v3867_v16  ;;  %v3930_v16 = vld [vmem:[#allocation3 + $0x218] sm:$0xff] }
 0x59f   :  { %4098 = vmatpush1.bf16.msra.mxu1 %v3869_v39  ;;  %4017 = vmatprep.subr.bf16.mxu0 %v3872_v20  ;;  %v3191_v39 = vld [vmem:[#allocation12] sm:$0x44]  ;;  %v7037_v20 = vld [vmem:[#allocation12 + $0x8] sm:$0x44] }
 0x5a0   :  { %4099 = vmatprep.subr.bf16.mxu1 %v3874_v21  ;;  %v7039_v21 = vcombine.low %v3191_v39, %v3191_v39 }
 0x5a2   :  { %4018 = vmatpush1.bf16.msra.mxu0 %v3871_v22  ;;  %v7041_v22 = vcombine.high %v3191_v39, %v3191_v39  ;;  %v3960_v39 = vld [vmem:[#allocation3 + $0x308] sm:$0xff] }
 0x5a3   :  { %4100 = vmatpush1.bf16.msra.mxu1 %v3873_v17  ;;  %4019 = vmatprep.subr.bf16.mxu0 %v3876_v2  ;;  %v7045_v17 = vcombine.high %v7037_v20, %v7037_v20  ;;  %v3479_v2 = vunpack.c.l.bf16 %v7039_v21 }
 0x5a4   :  { %4101 = vmatprep.subr.bf16.mxu1 %v3878_v23  ;;  %v7049_v23 = vsub.s32 4, %v6923_v11 }
 0x5a6   :  { %4020 = vmatpush1.bf16.msra.mxu0 %v3875_v36  ;;  %v3480_v36 = vunpack.c.l.bf16 %v7041_v22 }
 0x5a7   :  { %4102 = vmatpush1.bf16.msra.mxu1 %v3877_v24  ;;  %4021 = vmatprep.subr.bf16.mxu0 %v3880_v25  ;;  %v3482_v24 = vunpack.c.l.bf16 %v7045_v17  ;;  %v3490_v25 = vrot.slane %v3479_v2, %v7049_v23  ;;  %v3962_v2 = vld [vmem:[#allocation3 + $0x318] sm:$0xff] }
 0x5a8   :  { %4103 = vmatprep.subr.bf16.mxu1 %v3882_v27  ;;  %v3494_v27 = vrot.slane %v3480_v36, %v7049_v23  ;;  %v3959_v36 = vld [vmem:[#allocation3 + $0x300] sm:$0xff] }
 0x5aa   :  { %4022 = vmatpush1.bf16.msra.mxu0 %v3879_v28  ;;  %v3502_v28 = vrot.slane %v3482_v24, %v7049_v23  ;;  %v3961_v24 = vld [vmem:[#allocation3 + $0x310] sm:$0xff] }
 0x5ab   :  { %4104 = vmatpush1.bf16.msra.mxu1 %v3881_v15  ;;  %4023 = vmatprep.subr.bf16.mxu0 %v3884_v33 }
 0x5ac   :  { %4105 = vmatprep.subr.bf16.mxu1 %v3886_v29 }
 0x5ae   :  { %4024 = vmatpush1.bf16.msra.mxu0 %v3883_v30 }
 0x5af   :  { %4106 = vmatpush1.bf16.msra.mxu1 %v3885_v37  ;;  %4025 = vmatprep.subr.bf16.mxu0 %v3888_v31 }
 0x5b0   :  { %4107 = vmatprep.subr.bf16.mxu1 %v3890_v32 }
 0x5b2   :  { %4026 = vmatpush1.bf16.msra.mxu0 %v3887_v35 }
 0x5b3   :  { %4108 = vmatpush1.bf16.msra.mxu1 %v3889_v34  ;;  %4027 = vmatprep.subr.bf16.mxu0 %v3892_v41 }
 0x5b4   :  { %4109 = vmatprep.subr.bf16.mxu1 %v3894_v42 }
 0x5b6   :  { %4028 = vmatpush1.bf16.msra.mxu0 %v3891_v43 }
 0x5b7   :  { %4110 = vmatpush1.bf16.msra.mxu1 %v3893_v44  ;;  %4029 = vmatprep.subr.bf16.mxu0 %v3896_v46 }
 0x5b8   :  { %4111 = vmatprep.subr.bf16.mxu1 %v3898_v47 }
 0x5ba   :  { %4030 = vmatpush1.bf16.msra.mxu0 %v3895_v48 }
 0x5bb   :  { %4112 = vmatpush1.bf16.msra.mxu1 %v3897_v49  ;;  %4031 = vmatprep.subr.bf16.mxu0 %v3900_v50  ;;  %v3927_v49 = vld [vmem:[#allocation3 + $0x200] sm:$0xff]  ;;  %v3929_v50 = vld [vmem:[#allocation3 + $0x210] sm:$0xff] }
 0x5bc   :  { %4113 = vmatprep.subr.bf16.mxu1 %v3902_v51 }
 0x5be   :  { %4032 = vmatpush1.bf16.msra.mxu0 %v3899_v52  ;;  %v3932_v52 = vld [vmem:[#allocation3 + $0x228] sm:$0xff] }
 0x5bf   :  { %4114 = vmatpush1.bf16.msra.mxu1 %v3901_v53  ;;  %4033 = vmatprep.subr.bf16.mxu0 %v3904_v26  ;;  %v3934_v53 = vld [vmem:[#allocation3 + $0x238] sm:$0xff]  ;;  %v3931_v26 = vld [vmem:[#allocation3 + $0x220] sm:$0xff] }
 0x5c0   :  { %4115 = vmatprep.subr.bf16.mxu1 %v3906_v54  ;;  %v3933_v54 = vld [vmem:[#allocation3 + $0x230] sm:$0xff] }
 0x5c2   :  { %4034 = vmatpush1.bf16.msra.mxu0 %v3903_v55  ;;  %v3936_v55 = vld [vmem:[#allocation3 + $0x248] sm:$0xff] }
 0x5c3   :  { %4116 = vmatpush1.bf16.msra.mxu1 %v3905_v56  ;;  %4035 = vmatprep.subr.bf16.mxu0 %v3908_v57  ;;  %v3938_v56 = vld [vmem:[#allocation3 + $0x258] sm:$0xff]  ;;  %v3935_v57 = vld [vmem:[#allocation3 + $0x240] sm:$0xff] }
 0x5c4   :  { %4117 = vmatprep.subr.bf16.mxu1 %v3910_v58  ;;  %v3937_v58 = vld [vmem:[#allocation3 + $0x250] sm:$0xff] }
 0x5c6   :  { %4036 = vmatpush1.bf16.msra.mxu0 %v3907_v59  ;;  %v3940_v59 = vld [vmem:[#allocation3 + $0x268] sm:$0xff] }
 0x5c7   :  { %4118 = vmatpush1.bf16.msra.mxu1 %v3909_v61  ;;  %4037 = vmatprep.subr.bf16.mxu0 %v3912_v62  ;;  %v3942_v61 = vld [vmem:[#allocation3 + $0x278] sm:$0xff]  ;;  %v3939_v62 = vld [vmem:[#allocation3 + $0x260] sm:$0xff] }
 0x5c8   :  { %4119 = vmatprep.subr.bf16.mxu1 %v3914_v63  ;;  %v3941_v63 = vld [vmem:[#allocation3 + $0x270] sm:$0xff] }
 0x5ca   :  { %4038 = vmatpush1.bf16.msra.mxu0 %v3911_v1  ;;  %v3944_v1 = vld [vmem:[#allocation3 + $0x288] sm:$0xff] }
 0x5cb   :  { %4120 = vmatpush1.bf16.msra.mxu1 %v3913_v3  ;;  %4039 = vmatprep.subr.bf16.mxu0 %v3916_v4  ;;  %v3946_v3 = vld [vmem:[#allocation3 + $0x298] sm:$0xff]  ;;  %v3943_v4 = vld [vmem:[#allocation3 + $0x280] sm:$0xff] }
 0x5cc   :  { %4121 = vmatprep.subr.bf16.mxu1 %v3918_v5  ;;  %v3945_v5 = vld [vmem:[#allocation3 + $0x290] sm:$0xff] }
 0x5ce   :  { %4040 = vmatpush1.bf16.msra.mxu0 %v3915_v6  ;;  %v3948_v6 = vld [vmem:[#allocation3 + $0x2a8] sm:$0xff] }
 0x5cf   :  { %4122 = vmatpush1.bf16.msra.mxu1 %v3917_v7  ;;  %4041 = vmatprep.subr.bf16.mxu0 %v3920_v8  ;;  %v3950_v7 = vld [vmem:[#allocation3 + $0x2b8] sm:$0xff]  ;;  %v3947_v8 = vld [vmem:[#allocation3 + $0x2a0] sm:$0xff] }
 0x5d0   :  { %4123 = vmatprep.subr.bf16.mxu1 %v3922_v9  ;;  %v3949_v9 = vld [vmem:[#allocation3 + $0x2b0] sm:$0xff] }
 0x5d2   :  { %4042 = vmatpush1.bf16.msra.mxu0 %v3919_v10  ;;  %v3952_v10 = vld [vmem:[#allocation3 + $0x2c8] sm:$0xff] }
 0x5d3   :  { %4124 = vmatpush1.bf16.msra.mxu1 %v3921_v13  ;;  %4043 = vmatprep.subr.bf16.mxu0 %v3924_v18  ;;  %v3954_v13 = vld [vmem:[#allocation3 + $0x2d8] sm:$0xff]  ;;  %v3951_v18 = vld [vmem:[#allocation3 + $0x2c0] sm:$0xff] }
 0x5d4   :  { %4125 = vmatprep.subr.bf16.mxu1 %v3926_v45  ;;  %v3953_v45 = vld [vmem:[#allocation3 + $0x2d0] sm:$0xff] }
 0x5d6   :  { %4044 = vmatpush1.bf16.msra.mxu0 %v3923_v19  ;;  %v3956_v19 = vld [vmem:[#allocation3 + $0x2e8] sm:$0xff] }
 0x5d7   :  { %4126 = vmatpush1.bf16.msra.mxu1 %v3925_v40  ;;  %4054 = vmatprep.subr.bf16.mxu0 %v3928_v12  ;;  %v3958_v40 = vld [vmem:[#allocation3 + $0x2f8] sm:$0xff]  ;;  %v3955_v12 = vld [vmem:[#allocation3 + $0x2e0] sm:$0xff] }
 0x5d8   :  { %4136 = vmatprep.subr.bf16.mxu1 %v3930_v16  ;;  %v3957_v16 = vld [vmem:[#allocation3 + $0x2f0] sm:$0xff] }
 0x5ec   :  { %v3594_v15 = vpop.f32.mrb[16].mxu0 }
 0x5ed   :  { %v7056_v33 = vpop.f32.mrb[16].mxu1  ;;  %v5935_v29 = vadd.f32 %v3594_v15, %v3490_v25  ;;  %v3596_v30 = vpop.f32.mrb[17].mxu0  ;;  %v3964_v25 = vld [vmem:[#allocation3 + $0x328] sm:$0xff]  ;;  %v3965_v15 = vld [vmem:[#allocation3 + $0x330] sm:$0xff] }
 0x5ee   :  { %v3678_v37 = vpop.f32.mrb[17].mxu1  ;;  %v5936_v31 = vadd.f32 %v3596_v30, %v3494_v27  ;;  %v3598_v35 = vpop.f32.mrb[18].mxu0  ;;  %v3966_v27 = vld [vmem:[#allocation3 + $0x338] sm:$0xff] }
 0x5ef   :  { %v5938_v32 = vadd.f32 %v3678_v37, %v3502_v28  ;;  %v3680_v34 = vpop.f32.mrb[18].mxu1  ;;  %v3847_v41 = vmax.f32 %v5935_v29, 0.0  ;;  %v3599_v42 = vpop.f32.mrb[19].mxu0  ;;  %v3963_v28 = vld [vmem:[#allocation3 + $0x320] sm:$0xff]  ;;  %v3968_v29 = vld [vmem:[#allocation3 + $0x348] sm:$0xff]  ;;  %v3970_v30 = vld [vmem:[#allocation3 + $0x358] sm:$0xff] }
 0x5f0   :  { %v3681_v43 = vpop.f32.mrb[19].mxu1  ;;  %v3848_v44 = vmax.f32 %v5936_v31, 0.0  ;;  %v3967_v37 = vld [vmem:[#allocation3 + $0x340] sm:$0xff]  ;;  %v3969_v31 = vld [vmem:[#allocation3 + $0x350] sm:$0xff]  ;;  %v3974_v35 = vld [vmem:[#allocation3 + $0x378] sm:$0xff]  ;;  %v7060_v34 = vcombine.low %v7037_v20, %v7037_v20 }
 0x5f1   :  { %v3850_v46 = vmax.f32 %v5938_v32, 0.0  ;;  %v3855_v48 = vpack.c.bf16 %v3847_v41, %v3847_v41  ;;  %v3972_v32 = vld [vmem:[#allocation3 + $0x368] sm:$0xff]  ;;  %v3971_v41 = vld [vmem:[#allocation3 + $0x360] sm:$0xff]  ;;  %v3973_v42 = vld [vmem:[#allocation3 + $0x370] sm:$0xff] }
 0x5f2   :  { %v3856_v47 = vpack.c.bf16 %v3848_v44, %v3848_v44  ;;  %v3976_v43 = vld [vmem:[#allocation3 + $0x388] sm:$0xff]  ;;  %v3978_v44 = vld [vmem:[#allocation3 + $0x398] sm:$0xff] }
 0x5f3   :  { %v3858_v51 = vpack.c.bf16 %v3850_v46, %v3850_v46  ;;  %v3481_v46 = vunpack.c.l.bf16 %v7060_v34 }
 0x5f4   :  { %4045 = vmatprep.mubr.bf16.mxu0 %v3856_v47  ;;  %4127 = vmatprep.mubr.bf16.mxu1 %v3856_v47  ;;  %v3975_v47 = vld [vmem:[#allocation3 + $0x380] sm:$0xff] }
 0x5f5   :  { %4046 = vmatmul.mubr.bf16.vlgmr.msra.gmra.mrb[24].mxu0 %v3855_v48  ;;  %4128 = vmatmul.mubr.bf16.vlgmr.msra.gmra.mrb[24].mxu1 %v3855_v48  ;;  %v3977_v48 = vld [vmem:[#allocation3 + $0x390] sm:$0xff]  ;;  %v3498_v20 = vrot.slane %v3481_v46, %v7049_v23 }
 0x5f6   :  { %4055 = vmatpush1.bf16.msra.mxu0 %v3927_v49  ;;  %4137 = vmatpush1.bf16.msra.mxu1 %v3929_v50  ;;  %v3980_v49 = vld [vmem:[#allocation3 + $0x3a8] sm:$0xff]  ;;  %v3982_v50 = vld [vmem:[#allocation3 + $0x3b8] sm:$0xff]  ;;  %v4220_v46 = vld [vmem:[#allocation3 + $0x910] sm:$0xff] }
 0x5f7   :  { %4086 = vmatprep.mubr.bf16.mxu0 %v3858_v51  ;;  %4168 = vmatprep.mubr.bf16.mxu1 %v3858_v51  ;;  %v3979_v51 = vld [vmem:[#allocation3 + $0x3a0] sm:$0xff] }
 0x5f8   :  { %4056 = vmatprep.subr.bf16.mxu0 %v3932_v52  ;;  %4138 = vmatprep.subr.bf16.mxu1 %v3934_v53  ;;  %v3981_v52 = vld [vmem:[#allocation3 + $0x3b0] sm:$0xff]  ;;  %v3984_v53 = vld [vmem:[#allocation3 + $0x3c8] sm:$0xff] }
 0x5fa   :  { %4057 = vmatpush1.bf16.msra.mxu0 %v3931_v26  ;;  %4139 = vmatpush1.bf16.msra.mxu1 %v3933_v54  ;;  %v3986_v26 = vld [vmem:[#allocation3 + $0x3d8] sm:$0xff]  ;;  %v5937_v54 = vadd.f32 %v7056_v33, %v3498_v20  ;;  %v4186_v33 = vld [vmem:[#allocation3 + $0x800] sm:$0xff]  ;;  %v4227_v20 = vld [vmem:[#allocation3 + $0x948] sm:$0xff] }
 0x5fb   :  { %4058 = vmatprep.subr.bf16.mxu0 %v3936_v55  ;;  %4140 = vmatprep.subr.bf16.mxu1 %v3938_v56  ;;  %v3983_v55 = vld [vmem:[#allocation3 + $0x3c0] sm:$0xff]  ;;  %v3985_v56 = vld [vmem:[#allocation3 + $0x3d0] sm:$0xff] }
 0x5fe   :  { %4059 = vmatpush1.bf16.msra.mxu0 %v3935_v57  ;;  %4141 = vmatpush1.bf16.msra.mxu1 %v3937_v58  ;;  %v3988_v57 = vld [vmem:[#allocation3 + $0x3e8] sm:$0xff]  ;;  %v3990_v58 = vld [vmem:[#allocation3 + $0x3f8] sm:$0xff] }
 0x5ff   :  { %4060 = vmatprep.subr.bf16.mxu0 %v3940_v59  ;;  %4142 = vmatprep.subr.bf16.mxu1 %v3942_v61  ;;  %v3849_v59 = vmax.f32 %v5937_v54, 0.0  ;;  %v3987_v61 = vld [vmem:[#allocation3 + $0x3e0] sm:$0xff]  ;;  %v4233_v54 = vld [vmem:[#allocation3 + $0x978] sm:$0xff] }
 0x602   :  { %4061 = vmatpush1.bf16.msra.mxu0 %v3939_v62  ;;  %4143 = vmatpush1.bf16.msra.mxu1 %v3941_v63  ;;  %v3989_v62 = vld [vmem:[#allocation3 + $0x3f0] sm:$0xff]  ;;  %v4187_v63 = vld [vmem:[#allocation3 + $0x808] sm:$0xff] }
 0x603   :  { %4062 = vmatprep.subr.bf16.mxu0 %v3944_v1  ;;  %4144 = vmatprep.subr.bf16.mxu1 %v3946_v3  ;;  %v4189_v1 = vld [vmem:[#allocation3 + $0x818] sm:$0xff]  ;;  %v3857_v3 = vpack.c.bf16 %v3849_v59, %v3849_v59  ;;  %v4234_v59 = vld [vmem:[#allocation3 + $0x980] sm:$0xff] }
 0x606   :  { %4063 = vmatpush1.bf16.msra.mxu0 %v3943_v4  ;;  %4145 = vmatpush1.bf16.msra.mxu1 %v3945_v5  ;;  %v4188_v4 = vld [vmem:[#allocation3 + $0x810] sm:$0xff]  ;;  %v4191_v5 = vld [vmem:[#allocation3 + $0x828] sm:$0xff] }
 0x607   :  { %4064 = vmatprep.subr.bf16.mxu0 %v3948_v6  ;;  %4146 = vmatprep.subr.bf16.mxu1 %v3950_v7  ;;  %v4193_v6 = vld [vmem:[#allocation3 + $0x838] sm:$0xff]  ;;  %v4190_v7 = vld [vmem:[#allocation3 + $0x820] sm:$0xff] }
 0x60a   :  { %4065 = vmatpush1.bf16.msra.mxu0 %v3947_v8  ;;  %4147 = vmatpush1.bf16.msra.mxu1 %v3949_v9  ;;  %v4192_v8 = vld [vmem:[#allocation3 + $0x830] sm:$0xff]  ;;  %v4195_v9 = vld [vmem:[#allocation3 + $0x848] sm:$0xff] }
 0x60b   :  { %4066 = vmatprep.subr.bf16.mxu0 %v3952_v10  ;;  %4148 = vmatprep.subr.bf16.mxu1 %v3954_v13  ;;  %v4197_v10 = vld [vmem:[#allocation3 + $0x858] sm:$0xff]  ;;  %v4194_v13 = vld [vmem:[#allocation3 + $0x840] sm:$0xff] }
 0x60e   :  { %4067 = vmatpush1.bf16.msra.mxu0 %v3951_v18  ;;  %4149 = vmatpush1.bf16.msra.mxu1 %v3953_v45  ;;  %v4196_v18 = vld [vmem:[#allocation3 + $0x850] sm:$0xff]  ;;  %v4199_v45 = vld [vmem:[#allocation3 + $0x868] sm:$0xff] }
 0x60f   :  { %4068 = vmatprep.subr.bf16.mxu0 %v3956_v19  ;;  %4150 = vmatprep.subr.bf16.mxu1 %v3958_v40  ;;  %v4201_v19 = vld [vmem:[#allocation3 + $0x878] sm:$0xff]  ;;  %v4198_v40 = vld [vmem:[#allocation3 + $0x860] sm:$0xff] }
 0x612   :  { %4069 = vmatpush1.bf16.msra.mxu0 %v3955_v12  ;;  %4151 = vmatpush1.bf16.msra.mxu1 %v3957_v16  ;;  %v4200_v12 = vld [vmem:[#allocation3 + $0x870] sm:$0xff]  ;;  %v4203_v16 = vld [vmem:[#allocation3 + $0x888] sm:$0xff] }
 0x613   :  { %4070 = vmatprep.subr.bf16.mxu0 %v3960_v39  ;;  %4152 = vmatprep.subr.bf16.mxu1 %v3962_v2  ;;  %v4205_v39 = vld [vmem:[#allocation3 + $0x898] sm:$0xff]  ;;  %v4202_v2 = vld [vmem:[#allocation3 + $0x880] sm:$0xff] }
 0x616   :  { %4071 = vmatpush1.bf16.msra.mxu0 %v3959_v36  ;;  %4153 = vmatpush1.bf16.msra.mxu1 %v3961_v24  ;;  %v4204_v36 = vld [vmem:[#allocation3 + $0x890] sm:$0xff]  ;;  %v4207_v24 = vld [vmem:[#allocation3 + $0x8a8] sm:$0xff] }
 0x617   :  { %4072 = vmatprep.subr.bf16.mxu0 %v3964_v25  ;;  %4154 = vmatprep.subr.bf16.mxu1 %v3966_v27  ;;  %v4209_v25 = vld [vmem:[#allocation3 + $0x8b8] sm:$0xff]  ;;  %v4206_v27 = vld [vmem:[#allocation3 + $0x8a0] sm:$0xff] }
 0x61a   :  { %4073 = vmatpush1.bf16.msra.mxu0 %v3963_v28  ;;  %4155 = vmatpush1.bf16.msra.mxu1 %v3965_v15  ;;  %v4208_v28 = vld [vmem:[#allocation3 + $0x8b0] sm:$0xff]  ;;  %v4211_v15 = vld [vmem:[#allocation3 + $0x8c8] sm:$0xff] }
 0x61b   :  { %4074 = vmatprep.subr.bf16.mxu0 %v3968_v29  ;;  %4156 = vmatprep.subr.bf16.mxu1 %v3970_v30  ;;  %v4213_v29 = vld [vmem:[#allocation3 + $0x8d8] sm:$0xff]  ;;  %v4210_v30 = vld [vmem:[#allocation3 + $0x8c0] sm:$0xff] }
 0x61e   :  { %4075 = vmatpush1.bf16.msra.mxu0 %v3967_v37  ;;  %4157 = vmatpush1.bf16.msra.mxu1 %v3969_v31  ;;  %v4212_v37 = vld [vmem:[#allocation3 + $0x8d0] sm:$0xff]  ;;  %v4215_v31 = vld [vmem:[#allocation3 + $0x8e8] sm:$0xff] }
 0x61f   :  { %4076 = vmatprep.subr.bf16.mxu0 %v3972_v32  ;;  %4158 = vmatprep.subr.bf16.mxu1 %v3974_v35  ;;  %v4217_v32 = vld [vmem:[#allocation3 + $0x8f8] sm:$0xff]  ;;  %v4214_v35 = vld [vmem:[#allocation3 + $0x8e0] sm:$0xff] }
 0x622   :  { %4077 = vmatpush1.bf16.msra.mxu0 %v3971_v41  ;;  %4159 = vmatpush1.bf16.msra.mxu1 %v3973_v42  ;;  %v4216_v41 = vld [vmem:[#allocation3 + $0x8f0] sm:$0xff]  ;;  %v4219_v42 = vld [vmem:[#allocation3 + $0x908] sm:$0xff] }
 0x623   :  { %4078 = vmatprep.subr.bf16.mxu0 %v3976_v43  ;;  %4160 = vmatprep.subr.bf16.mxu1 %v3978_v44  ;;  %v4221_v43 = vld [vmem:[#allocation3 + $0x918] sm:$0xff]  ;;  %v4218_v44 = vld [vmem:[#allocation3 + $0x900] sm:$0xff] }
 0x626   :  { %4079 = vmatpush1.bf16.msra.mxu0 %v3975_v47  ;;  %4161 = vmatpush1.bf16.msra.mxu1 %v3977_v48  ;;  %v4223_v47 = vld [vmem:[#allocation3 + $0x928] sm:$0xff]  ;;  %v4225_v48 = vld [vmem:[#allocation3 + $0x938] sm:$0xff] }
 0x627   :  { %4080 = vmatprep.subr.bf16.mxu0 %v3980_v49  ;;  %4162 = vmatprep.subr.bf16.mxu1 %v3982_v50  ;;  %v4222_v49 = vld [vmem:[#allocation3 + $0x920] sm:$0xff]  ;;  %v4224_v50 = vld [vmem:[#allocation3 + $0x930] sm:$0xff] }
 0x62a   :  { %4081 = vmatpush1.bf16.msra.mxu0 %v3979_v51  ;;  %4163 = vmatpush1.bf16.msra.mxu1 %v3981_v52  ;;  %v4229_v51 = vld [vmem:[#allocation3 + $0x958] sm:$0xff]  ;;  %v4226_v52 = vld [vmem:[#allocation3 + $0x940] sm:$0xff] }
 0x62b   :  { %4082 = vmatprep.subr.bf16.mxu0 %v3984_v53  ;;  %4164 = vmatprep.subr.bf16.mxu1 %v3986_v26  ;;  %v4228_v53 = vld [vmem:[#allocation3 + $0x950] sm:$0xff]  ;;  %v4231_v26 = vld [vmem:[#allocation3 + $0x968] sm:$0xff] }
 0x62e   :  { %4083 = vmatpush1.bf16.msra.mxu0 %v3983_v55  ;;  %4165 = vmatpush1.bf16.msra.mxu1 %v3985_v56  ;;  %v4230_v55 = vld [vmem:[#allocation3 + $0x960] sm:$0xff]  ;;  %v4232_v56 = vld [vmem:[#allocation3 + $0x970] sm:$0xff] }
 0x62f   :  { %4084 = vmatprep.subr.bf16.mxu0 %v3988_v57  ;;  %4166 = vmatprep.subr.bf16.mxu1 %v3990_v58  ;;  %v4235_v57 = vld [vmem:[#allocation3 + $0x988] sm:$0xff]  ;;  %v4237_v58 = vld [vmem:[#allocation3 + $0x998] sm:$0xff] }
 0x632   :  { %4085 = vmatpush1.bf16.msra.mxu0 %v3987_v61  ;;  %4167 = vmatpush1.bf16.msra.mxu1 %v3989_v62  ;;  %v4236_v61 = vld [vmem:[#allocation3 + $0x990] sm:$0xff]  ;;  %v4239_v62 = vld [vmem:[#allocation3 + $0x9a8] sm:$0xff] }
 0x633   :  { %4336 = vmatprep.subr.bf16.mxu0 %v4187_v63  ;;  %4418 = vmatprep.subr.bf16.mxu1 %v4189_v1  ;;  %v4241_v63 = vld [vmem:[#allocation3 + $0x9b8] sm:$0xff]  ;;  %v4238_v1 = vld [vmem:[#allocation3 + $0x9a0] sm:$0xff] }
 0x635   :  { %4087 = vmatmul.mubr.bf16.vlgmr.msra.gmra.mrb[24].mxu0 %v3857_v3  ;;  %4169 = vmatmul.mubr.bf16.vlgmr.msra.gmra.mrb[24].mxu1 %v3857_v3  ;;  %v4240_v3 = vld [vmem:[#allocation3 + $0x9b0] sm:$0xff] }
 0x636   :  { %4337 = vmatpush1.bf16.msra.mxu0 %v4186_v33  ;;  %4419 = vmatpush1.bf16.msra.mxu1 %v4188_v4 }
 0x637   :  { %4338 = vmatprep.subr.bf16.mxu0 %v4191_v5  ;;  %4420 = vmatprep.subr.bf16.mxu1 %v4193_v6 }
 0x63a   :  { %4339 = vmatpush1.bf16.msra.mxu0 %v4190_v7  ;;  %4421 = vmatpush1.bf16.msra.mxu1 %v4192_v8 }
 0x63b   :  { %4340 = vmatprep.subr.bf16.mxu0 %v4195_v9  ;;  %4422 = vmatprep.subr.bf16.mxu1 %v4197_v10 }
 0x63e   :  { %4341 = vmatpush1.bf16.msra.mxu0 %v4194_v13  ;;  %4423 = vmatpush1.bf16.msra.mxu1 %v4196_v18  ;;  %v4243_v13 = vld [vmem:[#allocation3 + $0x9c8] sm:$0xff]  ;;  %v4245_v18 = vld [vmem:[#allocation3 + $0x9d8] sm:$0xff] }
 0x63f   :  { %4342 = vmatprep.subr.bf16.mxu0 %v4199_v45  ;;  %4424 = vmatprep.subr.bf16.mxu1 %v4201_v19  ;;  %v4242_v45 = vld [vmem:[#allocation3 + $0x9c0] sm:$0xff]  ;;  %v4244_v19 = vld [vmem:[#allocation3 + $0x9d0] sm:$0xff] }
 0x642   :  { %4343 = vmatpush1.bf16.msra.mxu0 %v4198_v40  ;;  %4425 = vmatpush1.bf16.msra.mxu1 %v4200_v12  ;;  %v4247_v40 = vld [vmem:[#allocation3 + $0x9e8] sm:$0xff]  ;;  %v4249_v12 = vld [vmem:[#allocation3 + $0x9f8] sm:$0xff] }
 0x643   :  { %4344 = vmatprep.subr.bf16.mxu0 %v4203_v16  ;;  %4426 = vmatprep.subr.bf16.mxu1 %v4205_v39  ;;  %v4246_v16 = vld [vmem:[#allocation3 + $0x9e0] sm:$0xff]  ;;  %v4248_v39 = vld [vmem:[#allocation3 + $0x9f0] sm:$0xff] }
 0x646   :  { %4345 = vmatpush1.bf16.msra.mxu0 %v4202_v2  ;;  %4427 = vmatpush1.bf16.msra.mxu1 %v4204_v36  ;;  %v4251_v2 = vld [vmem:[#allocation3 + $0xa08] sm:$0xff]  ;;  %v4253_v36 = vld [vmem:[#allocation3 + $0xa18] sm:$0xff] }
 0x647   :  { %4346 = vmatprep.subr.bf16.mxu0 %v4207_v24  ;;  %4428 = vmatprep.subr.bf16.mxu1 %v4209_v25  ;;  %v7073_v24 = vld [vmem:[#allocation12] sm:$0x88]  ;;  %v7075_v25 = vld [vmem:[#allocation12 + $0x8] sm:$0x88] }
 0x64a   :  { %4347 = vmatpush1.bf16.msra.mxu0 %v4206_v27  ;;  %4429 = vmatpush1.bf16.msra.mxu1 %v4208_v28  ;;  %v3993_v27 = vunpack.c.l.bf16 %v7073_v24  ;;  %v7079_v28 = vsub.s32 6, %v6923_v11 }
 0x64b   :  { %4348 = vmatprep.subr.bf16.mxu0 %v4211_v15  ;;  %4430 = vmatprep.subr.bf16.mxu1 %v4213_v29  ;;  %v3994_v15 = vunpack.c.h.bf16 %v7073_v24  ;;  %v3996_v29 = vunpack.c.h.bf16 %v7075_v25 }
 0x64e   :  { %4349 = vmatpush1.bf16.msra.mxu0 %v4210_v30  ;;  %4431 = vmatpush1.bf16.msra.mxu1 %v4212_v37  ;;  %v4000_v30 = vrot.slane %v3993_v27, %v7079_v28  ;;  %v4004_v37 = vrot.slane %v3994_v15, %v7079_v28 }
 0x64f   :  { %4350 = vmatprep.subr.bf16.mxu0 %v4215_v31  ;;  %4432 = vmatprep.subr.bf16.mxu1 %v4217_v32  ;;  %v4012_v31 = vrot.slane %v3996_v29, %v7079_v28 }
 0x652   :  { %4351 = vmatpush1.bf16.msra.mxu0 %v4214_v35  ;;  %4433 = vmatpush1.bf16.msra.mxu1 %v4216_v41 }
 0x653   :  { %4352 = vmatprep.subr.bf16.mxu0 %v4219_v42  ;;  %4434 = vmatprep.subr.bf16.mxu1 %v4221_v43 }
 0x656   :  { %4353 = vmatpush1.bf16.msra.mxu0 %v4218_v44  ;;  %4435 = vmatpush1.bf16.msra.mxu1 %v4220_v46 }
 0x657   :  { %4354 = vmatprep.subr.bf16.mxu0 %v4223_v47  ;;  %4436 = vmatprep.subr.bf16.mxu1 %v4225_v48 }
 0x65a   :  { %4355 = vmatpush1.bf16.msra.mxu0 %v4222_v49  ;;  %4437 = vmatpush1.bf16.msra.mxu1 %v4224_v50 }
 0x65b   :  { %4356 = vmatprep.subr.bf16.mxu0 %v4227_v20  ;;  %4438 = vmatprep.subr.bf16.mxu1 %v4229_v51 }
 0x65e   :  { %4357 = vmatpush1.bf16.msra.mxu0 %v4226_v52  ;;  %4439 = vmatpush1.bf16.msra.mxu1 %v4228_v53 }
 0x65f   :  { %4358 = vmatprep.subr.bf16.mxu0 %v4231_v26  ;;  %4440 = vmatprep.subr.bf16.mxu1 %v4233_v54  ;;  %v4250_v54 = vld [vmem:[#allocation3 + $0xa00] sm:$0xff] }
 0x662   :  { %4359 = vmatpush1.bf16.msra.mxu0 %v4230_v55  ;;  %4441 = vmatpush1.bf16.msra.mxu1 %v4232_v56  ;;  %v4252_v55 = vld [vmem:[#allocation3 + $0xa10] sm:$0xff] }
 0x663   :  { %4360 = vmatprep.subr.bf16.mxu0 %v4235_v57  ;;  %4442 = vmatprep.subr.bf16.mxu1 %v4237_v58  ;;  %v4255_v57 = vld [vmem:[#allocation3 + $0xa28] sm:$0xff]  ;;  %v4257_v58 = vld [vmem:[#allocation3 + $0xa38] sm:$0xff] }
 0x666   :  { %4361 = vmatpush1.bf16.msra.mxu0 %v4234_v59  ;;  %4443 = vmatpush1.bf16.msra.mxu1 %v4236_v61  ;;  %v4254_v59 = vld [vmem:[#allocation3 + $0xa20] sm:$0xff]  ;;  %v4256_v61 = vld [vmem:[#allocation3 + $0xa30] sm:$0xff] }
 0x667   :  { %4362 = vmatprep.subr.bf16.mxu0 %v4239_v62  ;;  %4444 = vmatprep.subr.bf16.mxu1 %v4241_v63  ;;  %v4259_v62 = vld [vmem:[#allocation3 + $0xa48] sm:$0xff]  ;;  %v4261_v63 = vld [vmem:[#allocation3 + $0xa58] sm:$0xff] }
 0x66a   :  { %4363 = vmatpush1.bf16.msra.mxu0 %v4238_v1  ;;  %4445 = vmatpush1.bf16.msra.mxu1 %v4240_v3  ;;  %v4258_v1 = vld [vmem:[#allocation3 + $0xa40] sm:$0xff]  ;;  %v4260_v3 = vld [vmem:[#allocation3 + $0xa50] sm:$0xff] }
 0x66b   :  { %4364 = vmatprep.subr.bf16.mxu0 %v4243_v13  ;;  %4446 = vmatprep.subr.bf16.mxu1 %v4245_v18  ;;  %v4267_v13 = vld [vmem:[#allocation3 + $0xa88] sm:$0xff]  ;;  %v4269_v18 = vld [vmem:[#allocation3 + $0xa98] sm:$0xff] }
 0x66c   :  { %v7065_v33 = vpop.f32.mrb[20].mxu0 }
 0x66d   :  { %v7067_v4 = vpop.f32.mrb[20].mxu1  ;;  %v7069_v5 = vpop.f32.mrb[21].mxu0 }
 0x66e   :  { %v7071_v6 = vpop.f32.mrb[21].mxu1  ;;  %v3762_v7 = vpop.f32.mrb[22].mxu0  ;;  %4365 = vmatpush1.bf16.msra.mxu0 %v4242_v45  ;;  %4447 = vmatpush1.bf16.msra.mxu1 %v4244_v19  ;;  %v4266_v45 = vld [vmem:[#allocation3 + $0xa80] sm:$0xff]  ;;  %v4268_v19 = vld [vmem:[#allocation3 + $0xa90] sm:$0xff] }
 0x66f   :  { %v3844_v8 = vpop.f32.mrb[22].mxu1  ;;  %v3763_v9 = vpop.f32.mrb[23].mxu0  ;;  %4366 = vmatprep.subr.bf16.mxu0 %v4247_v40  ;;  %4448 = vmatprep.subr.bf16.mxu1 %v4249_v12  ;;  %v4263_v7 = vld [vmem:[#allocation3 + $0xa68] sm:$0xff]  ;;  %v4273_v12 = vld [vmem:[#allocation3 + $0xab8] sm:$0xff] }
 0x670   :  { %v3845_v10 = vpop.f32.mrb[23].mxu1  ;;  %v4265_v8 = vld [vmem:[#allocation3 + $0xa78] sm:$0xff]  ;;  %v4262_v9 = vld [vmem:[#allocation3 + $0xa60] sm:$0xff]  ;;  %v4271_v40 = vld [vmem:[#allocation3 + $0xaa8] sm:$0xff] }
 0x671   :  { %v4264_v10 = vld [vmem:[#allocation3 + $0xa70] sm:$0xff] }
 0x672   :  { %4367 = vmatpush1.bf16.msra.mxu0 %v4246_v16  ;;  %4449 = vmatpush1.bf16.msra.mxu1 %v4248_v39  ;;  %v4270_v16 = vld [vmem:[#allocation3 + $0xaa0] sm:$0xff]  ;;  %v4272_v39 = vld [vmem:[#allocation3 + $0xab0] sm:$0xff] }
 0x673   :  { %4377 = vmatprep.subr.bf16.mxu0 %v4251_v2  ;;  %4459 = vmatprep.subr.bf16.mxu1 %v4253_v36  ;;  %v4275_v2 = vld [vmem:[#allocation3 + $0xac8] sm:$0xff]  ;;  %v4277_v36 = vld [vmem:[#allocation3 + $0xad8] sm:$0xff] }
 0x708   :  { %v4088_v32 = vpop.f32.mrb[24].mxu0  ;;  %v7092_v35 = vpop.f32.mrb[24].mxu1 }
 0x709   :  { %v5943_v41 = vadd.f32 %v4088_v32, %v4000_v30  ;;  %v4090_v42 = vpop.f32.mrb[25].mxu0  ;;  %v4172_v43 = vpop.f32.mrb[25].mxu1  ;;  %v4274_v30 = vld [vmem:[#allocation3 + $0xac0] sm:$0xff]  ;;  %v4281_v32 = vld [vmem:[#allocation3 + $0xaf8] sm:$0xff] }
 0x70a   :  { %v5944_v44 = vadd.f32 %v4090_v42, %v4004_v37  ;;  %v5946_v46 = vadd.f32 %v4172_v43, %v4012_v31  ;;  %v4092_v47 = vpop.f32.mrb[26].mxu0  ;;  %v4174_v48 = vpop.f32.mrb[26].mxu1  ;;  %v4276_v37 = vld [vmem:[#allocation3 + $0xad0] sm:$0xff]  ;;  %v4279_v31 = vld [vmem:[#allocation3 + $0xae8] sm:$0xff] }
 0x70b   :  { %v4177_v49 = vmax.f32 %v5943_v41, 0.0  ;;  %v4093_v50 = vpop.f32.mrb[27].mxu0  ;;  %v4175_v20 = vpop.f32.mrb[27].mxu1  ;;  %v4278_v41 = vld [vmem:[#allocation3 + $0xae0] sm:$0xff]  ;;  %v4280_v42 = vld [vmem:[#allocation3 + $0xaf0] sm:$0xff]  ;;  %v4283_v43 = vld [vmem:[#allocation3 + $0xb08] sm:$0xff] }
 0x70c   :  { %v4178_v51 = vmax.f32 %v5944_v44, 0.0  ;;  %v4180_v52 = vmax.f32 %v5946_v46, 0.0  ;;  %v4285_v44 = vld [vmem:[#allocation3 + $0xb18] sm:$0xff]  ;;  %v4282_v46 = vld [vmem:[#allocation3 + $0xb00] sm:$0xff]  ;;  %v4284_v47 = vld [vmem:[#allocation3 + $0xb10] sm:$0xff] }
 0x70d   :  { %v4181_v26 = vpack.c.bf16 %v4177_v49, %v4177_v49  ;;  %v4287_v48 = vld [vmem:[#allocation3 + $0xb28] sm:$0xff]  ;;  %v4289_v49 = vld [vmem:[#allocation3 + $0xb38] sm:$0xff]  ;;  %v4286_v50 = vld [vmem:[#allocation3 + $0xb20] sm:$0xff] }
 0x70e   :  { %v4182_v53 = vpack.c.bf16 %v4178_v51, %v4178_v51  ;;  %v4184_v56 = vpack.c.bf16 %v4180_v52, %v4180_v52  ;;  %v4288_v20 = vld [vmem:[#allocation3 + $0xb30] sm:$0xff]  ;;  %v4291_v51 = vld [vmem:[#allocation3 + $0xb48] sm:$0xff]  ;;  %v4293_v52 = vld [vmem:[#allocation3 + $0xb58] sm:$0xff] }
 0x710   :  { %4368 = vmatprep.mubr.bf16.mxu0 %v4182_v53  ;;  %4450 = vmatprep.mubr.bf16.mxu1 %v4182_v53  ;;  %v4290_v53 = vld [vmem:[#allocation3 + $0xb40] sm:$0xff] }
 0x711   :  { %4369 = vmatmul.mubr.bf16.vlgmr.msra.gmra.mrb[28].mxu0 %v4181_v26  ;;  %4451 = vmatmul.mubr.bf16.vlgmr.msra.gmra.mrb[28].mxu1 %v4181_v26  ;;  %v4292_v26 = vld [vmem:[#allocation3 + $0xb50] sm:$0xff] }
 0x712   :  { %4378 = vmatpush1.bf16.msra.mxu0 %v4250_v54  ;;  %4460 = vmatpush1.bf16.msra.mxu1 %v4252_v55  ;;  %v4295_v54 = vld [vmem:[#allocation3 + $0xb68] sm:$0xff]  ;;  %v4297_v55 = vld [vmem:[#allocation3 + $0xb78] sm:$0xff] }
 0x713   :  { %4409 = vmatprep.mubr.bf16.mxu0 %v4184_v56  ;;  %4491 = vmatprep.mubr.bf16.mxu1 %v4184_v56  ;;  %v4294_v56 = vld [vmem:[#allocation3 + $0xb60] sm:$0xff] }
 0x714   :  { %4379 = vmatprep.subr.bf16.mxu0 %v4255_v57  ;;  %4461 = vmatprep.subr.bf16.mxu1 %v4257_v58  ;;  %v4296_v57 = vld [vmem:[#allocation3 + $0xb70] sm:$0xff]  ;;  %v3211_v58 = vshrl.u32 %v7041_v22, 16  ;;  %v4302_v22 = vld [vmem:[#allocation3 + $0xba0] sm:$0xff] }
 0x716   :  { %4380 = vmatpush1.bf16.msra.mxu0 %v4254_v59  ;;  %4462 = vmatpush1.bf16.msra.mxu1 %v4256_v61  ;;  %v4299_v59 = vld [vmem:[#allocation3 + $0xb88] sm:$0xff]  ;;  %v4301_v61 = vld [vmem:[#allocation3 + $0xb98] sm:$0xff] }
 0x717   :  { %4381 = vmatprep.subr.bf16.mxu0 %v4259_v62  ;;  %4463 = vmatprep.subr.bf16.mxu1 %v4261_v63  ;;  %v3995_v62 = vunpack.c.l.bf16 %v7075_v25  ;;  %v4298_v63 = vld [vmem:[#allocation3 + $0xb80] sm:$0xff] }
 0x718   :  { %v4946_v25 = vld [vmem:[#allocation3 + $0xfc0] sm:$0xff] }
 0x71a   :  { %4382 = vmatpush1.bf16.msra.mxu0 %v4258_v1  ;;  %4464 = vmatpush1.bf16.msra.mxu1 %v4260_v3  ;;  %v4300_v1 = vld [vmem:[#allocation3 + $0xb90] sm:$0xff]  ;;  %v3484_v3 = vunpack.c.l.bf16 %v3211_v58  ;;  %v4530_v58 = vld [vmem:[#allocation3 + $0x4a8] sm:$0xff] }
 0x71b   :  { %4383 = vmatprep.subr.bf16.mxu0 %v4263_v7  ;;  %4465 = vmatprep.subr.bf16.mxu1 %v4265_v8  ;;  %v4303_v7 = vld [vmem:[#allocation3 + $0xba8] sm:$0xff]  ;;  %v4305_v8 = vld [vmem:[#allocation3 + $0xbb8] sm:$0xff] }
 0x71e   :  { %4384 = vmatpush1.bf16.msra.mxu0 %v4262_v9  ;;  %4466 = vmatpush1.bf16.msra.mxu1 %v4264_v10  ;;  %v4008_v9 = vrot.slane %v3995_v62, %v7079_v28  ;;  %v4304_v10 = vld [vmem:[#allocation3 + $0xbb0] sm:$0xff]  ;;  %v4313_v28 = vld [vmem:[#allocation3 + $0xbf8] sm:$0xff] }
 0x71f   :  { %4385 = vmatprep.subr.bf16.mxu0 %v4267_v13  ;;  %4467 = vmatprep.subr.bf16.mxu1 %v4269_v18  ;;  %v3510_v13 = vrot.slane %v3484_v3, %v7049_v23  ;;  %v4307_v18 = vld [vmem:[#allocation3 + $0xbc8] sm:$0xff]  ;;  %v4536_v3 = vld [vmem:[#allocation3 + $0x4d8] sm:$0xff] }
 0x722   :  { %4386 = vmatpush1.bf16.msra.mxu0 %v4266_v45  ;;  %4468 = vmatpush1.bf16.msra.mxu1 %v4268_v19  ;;  %v4309_v45 = vld [vmem:[#allocation3 + $0xbd8] sm:$0xff]  ;;  %v5945_v19 = vadd.f32 %v7092_v35, %v4008_v9  ;;  %v4538_v9 = vld [vmem:[#allocation3 + $0x4e8] sm:$0xff] }
 0x723   :  { %4387 = vmatprep.subr.bf16.mxu0 %v4271_v40  ;;  %4469 = vmatprep.subr.bf16.mxu1 %v4273_v12  ;;  %v4306_v40 = vld [vmem:[#allocation3 + $0xbc0] sm:$0xff]  ;;  %v4308_v12 = vld [vmem:[#allocation3 + $0xbd0] sm:$0xff] }
 0x726   :  { %4388 = vmatpush1.bf16.msra.mxu0 %v4270_v16  ;;  %4470 = vmatpush1.bf16.msra.mxu1 %v4272_v39  ;;  %v5940_v16 = vadd.f32 %v7069_v5, %v3510_v13  ;;  %v4311_v39 = vld [vmem:[#allocation3 + $0xbe8] sm:$0xff]  ;;  %v4511_v5 = vld [vmem:[#allocation3 + $0x410] sm:$0xff] }
 0x727   :  { %4389 = vmatprep.subr.bf16.mxu0 %v4275_v2  ;;  %4471 = vmatprep.subr.bf16.mxu1 %v4277_v36  ;;  %v4179_v2 = vmax.f32 %v5945_v19, 0.0  ;;  %v4310_v36 = vld [vmem:[#allocation3 + $0xbe0] sm:$0xff]  ;;  %v4539_v13 = vld [vmem:[#allocation3 + $0x4f0] sm:$0xff] }
 0x728   :  { %v4541_v19 = vld [vmem:[#allocation3 + $0x500] sm:$0xff] }
 0x729   :  { %v4183_v35 = vpack.c.bf16 %v4179_v2, %v4179_v2  ;;  %v4550_v2 = vld [vmem:[#allocation3 + $0x548] sm:$0xff] }
 0x72a   :  { %4390 = vmatpush1.bf16.msra.mxu0 %v4274_v30  ;;  %4472 = vmatpush1.bf16.msra.mxu1 %v4276_v37  ;;  %v4312_v30 = vld [vmem:[#allocation3 + $0xbf0] sm:$0xff]  ;;  %v3852_v37 = vmax.f32 %v5940_v16, 0.0  ;;  %v4548_v16 = vld [vmem:[#allocation3 + $0x538] sm:$0xff] }
 0x72b   :  { %4391 = vmatprep.subr.bf16.mxu0 %v4279_v31  ;;  %4473 = vmatprep.subr.bf16.mxu1 %v4281_v32  ;;  %v4510_v31 = vld [vmem:[#allocation3 + $0x408] sm:$0xff]  ;;  %v4512_v32 = vld [vmem:[#allocation3 + $0x418] sm:$0xff] }
 0x72e   :  { %4392 = vmatpush1.bf16.msra.mxu0 %v4278_v41  ;;  %4474 = vmatpush1.bf16.msra.mxu1 %v4280_v42  ;;  %v4509_v41 = vld [vmem:[#allocation3 + $0x400] sm:$0xff]  ;;  %v3860_v42 = vpack.c.bf16 %v3852_v37, %v3852_v37  ;;  %v4551_v37 = vld [vmem:[#allocation3 + $0x550] sm:$0xff] }
 0x72f   :  { %4393 = vmatprep.subr.bf16.mxu0 %v4283_v43  ;;  %4475 = vmatprep.subr.bf16.mxu1 %v4285_v44  ;;  %v4514_v43 = vld [vmem:[#allocation3 + $0x428] sm:$0xff]  ;;  %v4516_v44 = vld [vmem:[#allocation3 + $0x438] sm:$0xff] }
 0x732   :  { %4394 = vmatpush1.bf16.msra.mxu0 %v4282_v46  ;;  %4476 = vmatpush1.bf16.msra.mxu1 %v4284_v47  ;;  %v4513_v46 = vld [vmem:[#allocation3 + $0x420] sm:$0xff]  ;;  %v4515_v47 = vld [vmem:[#allocation3 + $0x430] sm:$0xff] }
 0x733   :  { %4395 = vmatprep.subr.bf16.mxu0 %v4287_v48  ;;  %4477 = vmatprep.subr.bf16.mxu1 %v4289_v49  ;;  %v4518_v48 = vld [vmem:[#allocation3 + $0x448] sm:$0xff]  ;;  %v4520_v49 = vld [vmem:[#allocation3 + $0x458] sm:$0xff] }
 0x736   :  { %4396 = vmatpush1.bf16.msra.mxu0 %v4286_v50  ;;  %4478 = vmatpush1.bf16.msra.mxu1 %v4288_v20  ;;  %v4517_v50 = vld [vmem:[#allocation3 + $0x440] sm:$0xff]  ;;  %v4519_v20 = vld [vmem:[#allocation3 + $0x450] sm:$0xff] }
 0x737   :  { %4397 = vmatprep.subr.bf16.mxu0 %v4291_v51  ;;  %4479 = vmatprep.subr.bf16.mxu1 %v4293_v52  ;;  %v4522_v51 = vld [vmem:[#allocation3 + $0x468] sm:$0xff]  ;;  %v4524_v52 = vld [vmem:[#allocation3 + $0x478] sm:$0xff] }
 0x73a   :  { %4398 = vmatpush1.bf16.msra.mxu0 %v4290_v53  ;;  %4480 = vmatpush1.bf16.msra.mxu1 %v4292_v26  ;;  %v4521_v53 = vld [vmem:[#allocation3 + $0x460] sm:$0xff]  ;;  %v4523_v26 = vld [vmem:[#allocation3 + $0x470] sm:$0xff] }
 0x73b   :  { %4399 = vmatprep.subr.bf16.mxu0 %v4295_v54  ;;  %4481 = vmatprep.subr.bf16.mxu1 %v4297_v55  ;;  %v4526_v54 = vld [vmem:[#allocation3 + $0x488] sm:$0xff]  ;;  %v4528_v55 = vld [vmem:[#allocation3 + $0x498] sm:$0xff] }
 0x73e   :  { %4400 = vmatpush1.bf16.msra.mxu0 %v4294_v56  ;;  %4482 = vmatpush1.bf16.msra.mxu1 %v4296_v57  ;;  %v4525_v56 = vld [vmem:[#allocation3 + $0x480] sm:$0xff]  ;;  %v4527_v57 = vld [vmem:[#allocation3 + $0x490] sm:$0xff] }
 0x73f   :  { %4401 = vmatprep.subr.bf16.mxu0 %v4299_v59  ;;  %4483 = vmatprep.subr.bf16.mxu1 %v4301_v61  ;;  %v4532_v59 = vld [vmem:[#allocation3 + $0x4b8] sm:$0xff]  ;;  %v4529_v61 = vld [vmem:[#allocation3 + $0x4a0] sm:$0xff] }
 0x742   :  { %4402 = vmatpush1.bf16.msra.mxu0 %v4298_v63  ;;  %4484 = vmatpush1.bf16.msra.mxu1 %v4300_v1  ;;  %v4531_v63 = vld [vmem:[#allocation3 + $0x4b0] sm:$0xff]  ;;  %v4534_v1 = vld [vmem:[#allocation3 + $0x4c8] sm:$0xff] }
 0x743   :  { %4403 = vmatprep.subr.bf16.mxu0 %v4303_v7  ;;  %4485 = vmatprep.subr.bf16.mxu1 %v4305_v8  ;;  %v4533_v7 = vld [vmem:[#allocation3 + $0x4c0] sm:$0xff]  ;;  %v4535_v8 = vld [vmem:[#allocation3 + $0x4d0] sm:$0xff] }
 0x746   :  { %4404 = vmatpush1.bf16.msra.mxu0 %v4302_v22  ;;  %4486 = vmatpush1.bf16.msra.mxu1 %v4304_v10  ;;  %v4540_v22 = vld [vmem:[#allocation3 + $0x4f8] sm:$0xff]  ;;  %v4537_v10 = vld [vmem:[#allocation3 + $0x4e0] sm:$0xff] }
 0x747   :  { %4405 = vmatprep.subr.bf16.mxu0 %v4307_v18  ;;  %4487 = vmatprep.subr.bf16.mxu1 %v4309_v45  ;;  %v4542_v18 = vld [vmem:[#allocation3 + $0x508] sm:$0xff]  ;;  %v4544_v45 = vld [vmem:[#allocation3 + $0x518] sm:$0xff] }
 0x74a   :  { %4406 = vmatpush1.bf16.msra.mxu0 %v4306_v40  ;;  %4488 = vmatpush1.bf16.msra.mxu1 %v4308_v12  ;;  %v4543_v40 = vld [vmem:[#allocation3 + $0x510] sm:$0xff]  ;;  %v4546_v12 = vld [vmem:[#allocation3 + $0x528] sm:$0xff] }
 0x74b   :  { %4407 = vmatprep.subr.bf16.mxu0 %v4311_v39  ;;  %4489 = vmatprep.subr.bf16.mxu1 %v4313_v28  ;;  %v4545_v39 = vld [vmem:[#allocation3 + $0x520] sm:$0xff]  ;;  %v4547_v28 = vld [vmem:[#allocation3 + $0x530] sm:$0xff] }
 0x74e   :  { %4408 = vmatpush1.bf16.msra.mxu0 %v4310_v36  ;;  %4490 = vmatpush1.bf16.msra.mxu1 %v4312_v30  ;;  %v4552_v36 = vld [vmem:[#allocation3 + $0x558] sm:$0xff]  ;;  %v4549_v30 = vld [vmem:[#allocation3 + $0x540] sm:$0xff] }
 0x74f   :  { %4653 = vmatprep.subr.bf16.mxu0 %v4510_v31  ;;  %4735 = vmatprep.subr.bf16.mxu1 %v4512_v32  ;;  %v4554_v31 = vld [vmem:[#allocation3 + $0x568] sm:$0xff]  ;;  %v4556_v32 = vld [vmem:[#allocation3 + $0x578] sm:$0xff] }
 0x751   :  { %4410 = vmatmul.mubr.bf16.vlgmr.msra.gmra.mrb[28].mxu0 %v4183_v35  ;;  %4492 = vmatmul.mubr.bf16.vlgmr.msra.gmra.mrb[28].mxu1 %v4183_v35  ;;  %v3208_v35 = vshrl.u32 %v7039_v21, 16 }
 0x752   :  { %4654 = vmatpush1.bf16.msra.mxu0 %v4509_v41  ;;  %4685 = vmatprep.mubr.bf16.mxu0 %v3860_v42  ;;  %v4553_v41 = vld [vmem:[#allocation3 + $0x560] sm:$0xff] }
 0x753   :  { %4736 = vmatpush1.bf16.msra.mxu1 %v4511_v5  ;;  %4767 = vmatprep.mubr.bf16.mxu1 %v3860_v42  ;;  %v4555_v42 = vld [vmem:[#allocation3 + $0x570] sm:$0xff]  ;;  %v4558_v5 = vld [vmem:[#allocation3 + $0x588] sm:$0xff] }
 0x754   :  { %4655 = vmatprep.subr.bf16.mxu0 %v4514_v43  ;;  %4737 = vmatprep.subr.bf16.mxu1 %v4516_v44  ;;  %v3217_v43 = vshrl.u32 %v7045_v17, 16  ;;  %v4560_v44 = vld [vmem:[#allocation3 + $0x598] sm:$0xff]  ;;  %v4566_v17 = vld [vmem:[#allocation3 + $0x5c8] sm:$0xff] }
 0x756   :  { %4656 = vmatpush1.bf16.msra.mxu0 %v4513_v46  ;;  %v3483_v46 = vunpack.c.l.bf16 %v3208_v35  ;;  %v4594_v35 = vld [vmem:[#allocation3 + $0x6a8] sm:$0xff] }
 0x757   :  { %4738 = vmatpush1.bf16.msra.mxu1 %v4515_v47  ;;  %4657 = vmatprep.subr.bf16.mxu0 %v4518_v48  ;;  %v4557_v47 = vld [vmem:[#allocation3 + $0x580] sm:$0xff]  ;;  %v4559_v48 = vld [vmem:[#allocation3 + $0x590] sm:$0xff] }
 0x758   :  { %4739 = vmatprep.subr.bf16.mxu1 %v4520_v49  ;;  %v4562_v49 = vld [vmem:[#allocation3 + $0x5a8] sm:$0xff]  ;;  %v3506_v21 = vrot.slane %v3483_v46, %v7049_v23  ;;  %v4597_v46 = vld [vmem:[#allocation3 + $0x6c0] sm:$0xff] }
 0x75a   :  { %4658 = vmatpush1.bf16.msra.mxu0 %v4517_v50  ;;  %v3486_v50 = vunpack.c.l.bf16 %v3217_v43  ;;  %v4598_v43 = vld [vmem:[#allocation3 + $0x6c8] sm:$0xff] }
 0x75b   :  { %4740 = vmatpush1.bf16.msra.mxu1 %v4519_v20  ;;  %4659 = vmatprep.subr.bf16.mxu0 %v4522_v51  ;;  %v4564_v20 = vld [vmem:[#allocation3 + $0x5b8] sm:$0xff]  ;;  %v4561_v51 = vld [vmem:[#allocation3 + $0x5a0] sm:$0xff] }
 0x75c   :  { %4741 = vmatprep.subr.bf16.mxu1 %v4524_v52  ;;  %v4563_v52 = vld [vmem:[#allocation3 + $0x5b0] sm:$0xff] }
 0x75e   :  { %4660 = vmatpush1.bf16.msra.mxu0 %v4521_v53  ;;  %v3518_v53 = vrot.slane %v3486_v50, %v7049_v23  ;;  %v4601_v50 = vld [vmem:[#allocation3 + $0x6e0] sm:$0xff] }
 0x75f   :  { %4742 = vmatpush1.bf16.msra.mxu1 %v4523_v26  ;;  %4661 = vmatprep.subr.bf16.mxu0 %v4526_v54  ;;  %v4568_v26 = vld [vmem:[#allocation3 + $0x5d8] sm:$0xff]  ;;  %v5939_v54 = vadd.f32 %v7065_v33, %v3506_v21  ;;  %v4606_v21 = vld [vmem:[#allocation3 + $0x708] sm:$0xff] }
 0x760   :  { %4743 = vmatprep.subr.bf16.mxu1 %v4528_v55  ;;  %v4565_v55 = vld [vmem:[#allocation3 + $0x5c0] sm:$0xff] }
 0x762   :  { %4662 = vmatpush1.bf16.msra.mxu0 %v4525_v56  ;;  %v4567_v56 = vld [vmem:[#allocation3 + $0x5d0] sm:$0xff] }
 0x763   :  { %4744 = vmatpush1.bf16.msra.mxu1 %v4527_v57  ;;  %4663 = vmatprep.subr.bf16.mxu0 %v4530_v58  ;;  %v4570_v57 = vld [vmem:[#allocation3 + $0x5e8] sm:$0xff]  ;;  %v5942_v58 = vadd.f32 %v7071_v6, %v3518_v53 }
 0x764   :  { %4745 = vmatprep.subr.bf16.mxu1 %v4532_v59  ;;  %v4572_v59 = vld [vmem:[#allocation3 + $0x5f8] sm:$0xff]  ;;  %v4578_v6 = vld [vmem:[#allocation3 + $0x628] sm:$0xff] }
 0x765   :  { %v4610_v53 = vld [vmem:[#allocation3 + $0x728] sm:$0xff] }
 0x766   :  { %4664 = vmatpush1.bf16.msra.mxu0 %v4529_v61  ;;  %v3851_v61 = vmax.f32 %v5939_v54, 0.0  ;;  %v4609_v54 = vld [vmem:[#allocation3 + $0x720] sm:$0xff] }
 0x767   :  { %4746 = vmatpush1.bf16.msra.mxu1 %v4531_v63  ;;  %4665 = vmatprep.subr.bf16.mxu0 %v4534_v1  ;;  %v4569_v63 = vld [vmem:[#allocation3 + $0x5e0] sm:$0xff]  ;;  %v4571_v1 = vld [vmem:[#allocation3 + $0x5f0] sm:$0xff] }
 0x768   :  { %4747 = vmatprep.subr.bf16.mxu1 %v4536_v3  ;;  %v4574_v3 = vld [vmem:[#allocation3 + $0x608] sm:$0xff]  ;;  %v3859_v33 = vpack.c.bf16 %v3851_v61, %v3851_v61 }
 0x769   :  { %v4618_v61 = vld [vmem:[#allocation3 + $0x768] sm:$0xff] }
 0x76a   :  { %4666 = vmatpush1.bf16.msra.mxu0 %v4533_v7  ;;  %v3854_v7 = vmax.f32 %v5942_v58, 0.0  ;;  %v4613_v58 = vld [vmem:[#allocation3 + $0x740] sm:$0xff] }
 0x76b   :  { %4748 = vmatpush1.bf16.msra.mxu1 %v4535_v8  ;;  %4667 = vmatprep.subr.bf16.mxu0 %v4538_v9  ;;  %v4576_v8 = vld [vmem:[#allocation3 + $0x618] sm:$0xff]  ;;  %v4573_v9 = vld [vmem:[#allocation3 + $0x600] sm:$0xff] }
 0x76c   :  { %4749 = vmatprep.subr.bf16.mxu1 %v4540_v22  ;;  %v4575_v22 = vld [vmem:[#allocation3 + $0x610] sm:$0xff] }
 0x76e   :  { %4668 = vmatpush1.bf16.msra.mxu0 %v4537_v10  ;;  %v3862_v10 = vpack.c.bf16 %v3854_v7, %v3854_v7  ;;  %v4619_v7 = vld [vmem:[#allocation3 + $0x770] sm:$0xff] }
 0x76f   :  { %4750 = vmatpush1.bf16.msra.mxu1 %v4539_v13  ;;  %4669 = vmatprep.subr.bf16.mxu0 %v4542_v18  ;;  %v4580_v13 = vld [vmem:[#allocation3 + $0x638] sm:$0xff]  ;;  %v4577_v18 = vld [vmem:[#allocation3 + $0x620] sm:$0xff] }
 0x770   :  { %4751 = vmatprep.subr.bf16.mxu1 %v4544_v45  ;;  %v4579_v45 = vld [vmem:[#allocation3 + $0x630] sm:$0xff] }
 0x772   :  { %4670 = vmatpush1.bf16.msra.mxu0 %v4541_v19  ;;  %v4582_v19 = vld [vmem:[#allocation3 + $0x648] sm:$0xff] }
 0x773   :  { %4752 = vmatpush1.bf16.msra.mxu1 %v4543_v40  ;;  %4671 = vmatprep.subr.bf16.mxu0 %v4546_v12  ;;  %v4584_v40 = vld [vmem:[#allocation3 + $0x658] sm:$0xff]  ;;  %v4581_v12 = vld [vmem:[#allocation3 + $0x640] sm:$0xff] }
 0x774   :  { %4753 = vmatprep.subr.bf16.mxu1 %v4548_v16  ;;  %v4583_v16 = vld [vmem:[#allocation3 + $0x650] sm:$0xff] }
 0x776   :  { %4672 = vmatpush1.bf16.msra.mxu0 %v4545_v39  ;;  %v4586_v39 = vld [vmem:[#allocation3 + $0x668] sm:$0xff] }
 0x777   :  { %4754 = vmatpush1.bf16.msra.mxu1 %v4547_v28  ;;  %4673 = vmatprep.subr.bf16.mxu0 %v4550_v2  ;;  %v4588_v28 = vld [vmem:[#allocation3 + $0x678] sm:$0xff]  ;;  %v4585_v2 = vld [vmem:[#allocation3 + $0x660] sm:$0xff] }
 0x778   :  { %4755 = vmatprep.subr.bf16.mxu1 %v4552_v36  ;;  %v4587_v36 = vld [vmem:[#allocation3 + $0x670] sm:$0xff] }
 0x77a   :  { %4674 = vmatpush1.bf16.msra.mxu0 %v4549_v30  ;;  %v4590_v30 = vld [vmem:[#allocation3 + $0x688] sm:$0xff] }
 0x77b   :  { %4756 = vmatpush1.bf16.msra.mxu1 %v4551_v37  ;;  %4675 = vmatprep.subr.bf16.mxu0 %v4554_v31  ;;  %v4592_v37 = vld [vmem:[#allocation3 + $0x698] sm:$0xff]  ;;  %v4589_v31 = vld [vmem:[#allocation3 + $0x680] sm:$0xff] }
 0x77c   :  { %4757 = vmatprep.subr.bf16.mxu1 %v4556_v32  ;;  %v4591_v32 = vld [vmem:[#allocation3 + $0x690] sm:$0xff] }
 0x77e   :  { %4676 = vmatpush1.bf16.msra.mxu0 %v4553_v41  ;;  %v4596_v41 = vld [vmem:[#allocation3 + $0x6b8] sm:$0xff] }
 0x77f   :  { %4758 = vmatpush1.bf16.msra.mxu1 %v4555_v42  ;;  %4677 = vmatprep.subr.bf16.mxu0 %v4558_v5  ;;  %v4593_v42 = vld [vmem:[#allocation3 + $0x6a0] sm:$0xff]  ;;  %v4595_v5 = vld [vmem:[#allocation3 + $0x6b0] sm:$0xff] }
 0x780   :  { %4759 = vmatprep.subr.bf16.mxu1 %v4560_v44  ;;  %v4600_v44 = vld [vmem:[#allocation3 + $0x6d8] sm:$0xff] }
 0x782   :  { %4678 = vmatpush1.bf16.msra.mxu0 %v4557_v47  ;;  %v4599_v47 = vld [vmem:[#allocation3 + $0x6d0] sm:$0xff] }
 0x783   :  { %4760 = vmatpush1.bf16.msra.mxu1 %v4559_v48  ;;  %4679 = vmatprep.subr.bf16.mxu0 %v4562_v49  ;;  %v4602_v48 = vld [vmem:[#allocation3 + $0x6e8] sm:$0xff]  ;;  %v4604_v49 = vld [vmem:[#allocation3 + $0x6f8] sm:$0xff] }
 0x784   :  { %4761 = vmatprep.subr.bf16.mxu1 %v4564_v20  ;;  %v4603_v20 = vld [vmem:[#allocation3 + $0x6f0] sm:$0xff] }
 0x786   :  { %4680 = vmatpush1.bf16.msra.mxu0 %v4561_v51  ;;  %v4608_v51 = vld [vmem:[#allocation3 + $0x718] sm:$0xff] }
 0x787   :  { %4762 = vmatpush1.bf16.msra.mxu1 %v4563_v52  ;;  %4681 = vmatprep.subr.bf16.mxu0 %v4566_v17  ;;  %v4605_v52 = vld [vmem:[#allocation3 + $0x700] sm:$0xff]  ;;  %v4607_v17 = vld [vmem:[#allocation3 + $0x710] sm:$0xff] }
 0x788   :  { %4763 = vmatprep.subr.bf16.mxu1 %v4568_v26  ;;  %v4612_v26 = vld [vmem:[#allocation3 + $0x738] sm:$0xff] }
 0x78a   :  { %4682 = vmatpush1.bf16.msra.mxu0 %v4565_v55  ;;  %v4611_v55 = vld [vmem:[#allocation3 + $0x730] sm:$0xff] }
 0x78b   :  { %4764 = vmatpush1.bf16.msra.mxu1 %v4567_v56  ;;  %4683 = vmatprep.subr.bf16.mxu0 %v4570_v57  ;;  %v4614_v56 = vld [vmem:[#allocation3 + $0x748] sm:$0xff]  ;;  %v4616_v57 = vld [vmem:[#allocation3 + $0x758] sm:$0xff] }
 0x78c   :  { %4765 = vmatprep.subr.bf16.mxu1 %v4572_v59  ;;  %v4615_v59 = vld [vmem:[#allocation3 + $0x750] sm:$0xff] }
 0x78e   :  { %4684 = vmatpush1.bf16.msra.mxu0 %v4569_v63  ;;  %v4620_v63 = vld [vmem:[#allocation3 + $0x778] sm:$0xff] }
 0x78f   :  { %4766 = vmatpush1.bf16.msra.mxu1 %v4571_v1  ;;  %4694 = vmatprep.subr.bf16.mxu0 %v4574_v3  ;;  %v3214_v1 = vshrl.u32 %v7060_v34, 16  ;;  %v4617_v3 = vld [vmem:[#allocation3 + $0x760] sm:$0xff] }
 0x790   :  { %4776 = vmatprep.subr.bf16.mxu1 %v4576_v8  ;;  %v4622_v8 = vld [vmem:[#allocation3 + $0x788] sm:$0xff]  ;;  %v4625_v34 = vld [vmem:[#allocation3 + $0x7a0] sm:$0xff] }
 0x791   :  { %4686 = vmatmul.mubr.bf16.vlgmr.msra.gmra.mrb[32].mxu0 %v3859_v33 }
 0x792   :  { %4768 = vmatmul.mubr.bf16.vlgmr.msra.gmra.mrb[32].mxu1 %v3859_v33  ;;  %4695 = vmatpush1.bf16.msra.mxu0 %v4573_v9  ;;  %v4624_v33 = vld [vmem:[#allocation3 + $0x798] sm:$0xff]  ;;  %v3485_v9 = vunpack.c.l.bf16 %v3214_v1 }
 0x793   :  { %4726 = vmatprep.mubr.bf16.mxu0 %v3862_v10  ;;  %4777 = vmatpush1.bf16.msra.mxu1 %v4575_v22  ;;  %v4621_v22 = vld [vmem:[#allocation3 + $0x780] sm:$0xff]  ;;  %v4857_v1 = vld [vmem:[#allocation3 + $0xcf8] sm:$0xff] }
 0x794   :  { %4808 = vmatprep.mubr.bf16.mxu1 %v3862_v10  ;;  %4696 = vmatprep.subr.bf16.mxu0 %v4578_v6  ;;  %v4623_v10 = vld [vmem:[#allocation3 + $0x790] sm:$0xff]  ;;  %v4626_v6 = vld [vmem:[#allocation3 + $0x7a8] sm:$0xff] }
 0x795   :  { %4778 = vmatprep.subr.bf16.mxu1 %v4580_v13  ;;  %v4628_v13 = vld [vmem:[#allocation3 + $0x7b8] sm:$0xff] }
 0x796   :  { %4697 = vmatpush1.bf16.msra.mxu0 %v4577_v18  ;;  %v3514_v18 = vrot.slane %v3485_v9, %v7049_v23  ;;  %v4633_v23 = vld [vmem:[#allocation3 + $0x7e0] sm:$0xff] }
 0x797   :  { %4779 = vmatpush1.bf16.msra.mxu1 %v4579_v45  ;;  %4698 = vmatprep.subr.bf16.mxu0 %v4582_v19  ;;  %v4627_v45 = vld [vmem:[#allocation3 + $0x7b0] sm:$0xff]  ;;  %v4630_v19 = vld [vmem:[#allocation3 + $0x7c8] sm:$0xff]  ;;  %v4858_v9 = vld [vmem:[#allocation3 + $0xd00] sm:$0xff] }
 0x798   :  { %4780 = vmatprep.subr.bf16.mxu1 %v4584_v40  ;;  %v4632_v40 = vld [vmem:[#allocation3 + $0x7d8] sm:$0xff] }
 0x79a   :  { %4699 = vmatpush1.bf16.msra.mxu0 %v4581_v12  ;;  %v5941_v12 = vadd.f32 %v7067_v4, %v3514_v18  ;;  %v4826_v4 = vld [vmem:[#allocation3 + $0xc00] sm:$0xff]  ;;  %v4864_v18 = vld [vmem:[#allocation3 + $0xd30] sm:$0xff] }
 0x79b   :  { %4781 = vmatpush1.bf16.msra.mxu1 %v4583_v16  ;;  %4700 = vmatprep.subr.bf16.mxu0 %v4586_v39  ;;  %v4629_v16 = vld [vmem:[#allocation3 + $0x7c0] sm:$0xff]  ;;  %v4631_v39 = vld [vmem:[#allocation3 + $0x7d0] sm:$0xff] }
 0x79c   :  { %4782 = vmatprep.subr.bf16.mxu1 %v4588_v28  ;;  %v4634_v28 = vld [vmem:[#allocation3 + $0x7e8] sm:$0xff] }
 0x79e   :  { %4701 = vmatpush1.bf16.msra.mxu0 %v4585_v2  ;;  %v4636_v2 = vld [vmem:[#allocation3 + $0x7f8] sm:$0xff] }
 0x79f   :  { %4783 = vmatpush1.bf16.msra.mxu1 %v4587_v36  ;;  %4702 = vmatprep.subr.bf16.mxu0 %v4590_v30  ;;  %v3853_v36 = vmax.f32 %v5941_v12, 0.0  ;;  %v4635_v30 = vld [vmem:[#allocation3 + $0x7f0] sm:$0xff]  ;;  %v4871_v12 = vld [vmem:[#allocation3 + $0xd68] sm:$0xff] }
 0x7a0   :  { %4784 = vmatprep.subr.bf16.mxu1 %v4592_v37  ;;  %v4827_v37 = vld [vmem:[#allocation3 + $0xc08] sm:$0xff] }
 0x7a2   :  { %4703 = vmatpush1.bf16.msra.mxu0 %v4589_v31  ;;  %v4829_v31 = vld [vmem:[#allocation3 + $0xc18] sm:$0xff] }
 0x7a3   :  { %4785 = vmatpush1.bf16.msra.mxu1 %v4591_v32  ;;  %4704 = vmatprep.subr.bf16.mxu0 %v4594_v35  ;;  %v3861_v32 = vpack.c.bf16 %v3853_v36, %v3853_v36  ;;  %v4828_v35 = vld [vmem:[#allocation3 + $0xc10] sm:$0xff]  ;;  %v4877_v36 = vld [vmem:[#allocation3 + $0xd98] sm:$0xff] }
 0x7a4   :  { %4786 = vmatprep.subr.bf16.mxu1 %v4596_v41  ;;  %v4831_v41 = vld [vmem:[#allocation3 + $0xc28] sm:$0xff] }
 0x7a6   :  { %4705 = vmatpush1.bf16.msra.mxu0 %v4593_v42  ;;  %v4833_v42 = vld [vmem:[#allocation3 + $0xc38] sm:$0xff] }
 0x7a7   :  { %4787 = vmatpush1.bf16.msra.mxu1 %v4595_v5  ;;  %4706 = vmatprep.subr.bf16.mxu0 %v4598_v43  ;;  %v4830_v5 = vld [vmem:[#allocation3 + $0xc20] sm:$0xff]  ;;  %v4832_v43 = vld [vmem:[#allocation3 + $0xc30] sm:$0xff] }
 0x7a8   :  { %4788 = vmatprep.subr.bf16.mxu1 %v4600_v44  ;;  %v4835_v44 = vld [vmem:[#allocation3 + $0xc48] sm:$0xff] }
 0x7aa   :  { %4707 = vmatpush1.bf16.msra.mxu0 %v4597_v46  ;;  %v4837_v46 = vld [vmem:[#allocation3 + $0xc58] sm:$0xff] }
 0x7ab   :  { %4789 = vmatpush1.bf16.msra.mxu1 %v4599_v47  ;;  %4708 = vmatprep.subr.bf16.mxu0 %v4602_v48  ;;  %v4834_v47 = vld [vmem:[#allocation3 + $0xc40] sm:$0xff]  ;;  %v4836_v48 = vld [vmem:[#allocation3 + $0xc50] sm:$0xff] }
 0x7ac   :  { %4790 = vmatprep.subr.bf16.mxu1 %v4604_v49  ;;  %v4839_v49 = vld [vmem:[#allocation3 + $0xc68] sm:$0xff] }
 0x7ae   :  { %4709 = vmatpush1.bf16.msra.mxu0 %v4601_v50  ;;  %v4841_v50 = vld [vmem:[#allocation3 + $0xc78] sm:$0xff] }
 0x7af   :  { %4791 = vmatpush1.bf16.msra.mxu1 %v4603_v20  ;;  %4710 = vmatprep.subr.bf16.mxu0 %v4606_v21  ;;  %v4838_v20 = vld [vmem:[#allocation3 + $0xc60] sm:$0xff]  ;;  %v4840_v21 = vld [vmem:[#allocation3 + $0xc70] sm:$0xff] }
 0x7b0   :  { %4792 = vmatprep.subr.bf16.mxu1 %v4608_v51  ;;  %v4843_v51 = vld [vmem:[#allocation3 + $0xc88] sm:$0xff] }
 0x7b2   :  { %4711 = vmatpush1.bf16.msra.mxu0 %v4605_v52  ;;  %v4845_v52 = vld [vmem:[#allocation3 + $0xc98] sm:$0xff] }
 0x7b3   :  { %4793 = vmatpush1.bf16.msra.mxu1 %v4607_v17  ;;  %4712 = vmatprep.subr.bf16.mxu0 %v4610_v53  ;;  %v4842_v17 = vld [vmem:[#allocation3 + $0xc80] sm:$0xff]  ;;  %v4844_v53 = vld [vmem:[#allocation3 + $0xc90] sm:$0xff] }
 0x7b4   :  { %4794 = vmatprep.subr.bf16.mxu1 %v4612_v26  ;;  %v4847_v26 = vld [vmem:[#allocation3 + $0xca8] sm:$0xff] }
 0x7b6   :  { %4713 = vmatpush1.bf16.msra.mxu0 %v4609_v54  ;;  %v4849_v54 = vld [vmem:[#allocation3 + $0xcb8] sm:$0xff] }
 0x7b7   :  { %4795 = vmatpush1.bf16.msra.mxu1 %v4611_v55  ;;  %4714 = vmatprep.subr.bf16.mxu0 %v4614_v56  ;;  %v4846_v55 = vld [vmem:[#allocation3 + $0xca0] sm:$0xff]  ;;  %v4848_v56 = vld [vmem:[#allocation3 + $0xcb0] sm:$0xff] }
 0x7b8   :  { %4796 = vmatprep.subr.bf16.mxu1 %v4616_v57  ;;  %v4851_v57 = vld [vmem:[#allocation3 + $0xcc8] sm:$0xff] }
 0x7ba   :  { %4715 = vmatpush1.bf16.msra.mxu0 %v4613_v58  ;;  %v4853_v58 = vld [vmem:[#allocation3 + $0xcd8] sm:$0xff] }
 0x7bb   :  { %4797 = vmatpush1.bf16.msra.mxu1 %v4615_v59  ;;  %4716 = vmatprep.subr.bf16.mxu0 %v4618_v61  ;;  %v4850_v59 = vld [vmem:[#allocation3 + $0xcc0] sm:$0xff]  ;;  %v4852_v61 = vld [vmem:[#allocation3 + $0xcd0] sm:$0xff] }
 0x7bc   :  { %4798 = vmatprep.subr.bf16.mxu1 %v4620_v63  ;;  %v4855_v63 = vld [vmem:[#allocation3 + $0xce8] sm:$0xff] }
 0x7be   :  { %4717 = vmatpush1.bf16.msra.mxu0 %v4617_v3  ;;  %v4854_v3 = vld [vmem:[#allocation3 + $0xce0] sm:$0xff] }
 0x7bf   :  { %4799 = vmatpush1.bf16.msra.mxu1 %v4619_v7  ;;  %4718 = vmatprep.subr.bf16.mxu0 %v4622_v8  ;;  %v4856_v7 = vld [vmem:[#allocation3 + $0xcf0] sm:$0xff]  ;;  %v4859_v8 = vld [vmem:[#allocation3 + $0xd08] sm:$0xff] }
 0x7c0   :  { %4800 = vmatprep.subr.bf16.mxu1 %v4624_v33  ;;  %v4861_v33 = vld [vmem:[#allocation3 + $0xd18] sm:$0xff] }
 0x7c2   :  { %4719 = vmatpush1.bf16.msra.mxu0 %v4621_v22  ;;  %v4860_v22 = vld [vmem:[#allocation3 + $0xd10] sm:$0xff] }
 0x7c3   :  { %4801 = vmatpush1.bf16.msra.mxu1 %v4623_v10  ;;  %4720 = vmatprep.subr.bf16.mxu0 %v4626_v6  ;;  %v4863_v10 = vld [vmem:[#allocation3 + $0xd28] sm:$0xff]  ;;  %v4865_v6 = vld [vmem:[#allocation3 + $0xd38] sm:$0xff] }
 0x7c4   :  { %4802 = vmatprep.subr.bf16.mxu1 %v4628_v13  ;;  %v4862_v13 = vld [vmem:[#allocation3 + $0xd20] sm:$0xff] }
 0x7c6   :  { %4721 = vmatpush1.bf16.msra.mxu0 %v4625_v34  ;;  %v4867_v34 = vld [vmem:[#allocation3 + $0xd48] sm:$0xff] }
 0x7c7   :  { %4803 = vmatpush1.bf16.msra.mxu1 %v4627_v45  ;;  %4722 = vmatprep.subr.bf16.mxu0 %v4630_v19  ;;  %v4869_v45 = vld [vmem:[#allocation3 + $0xd58] sm:$0xff]  ;;  %v4866_v19 = vld [vmem:[#allocation3 + $0xd40] sm:$0xff] }
 0x7c8   :  { %4804 = vmatprep.subr.bf16.mxu1 %v4632_v40  ;;  %v4868_v40 = vld [vmem:[#allocation3 + $0xd50] sm:$0xff] }
 0x7ca   :  { %4723 = vmatpush1.bf16.msra.mxu0 %v4629_v16  ;;  %v4873_v16 = vld [vmem:[#allocation3 + $0xd78] sm:$0xff] }
 0x7cb   :  { %4805 = vmatpush1.bf16.msra.mxu1 %v4631_v39  ;;  %4724 = vmatprep.subr.bf16.mxu0 %v4634_v28  ;;  %v4870_v39 = vld [vmem:[#allocation3 + $0xd60] sm:$0xff]  ;;  %v4872_v28 = vld [vmem:[#allocation3 + $0xd70] sm:$0xff] }
 0x7cc   :  { %4806 = vmatprep.subr.bf16.mxu1 %v4636_v2  ;;  %v4875_v2 = vld [vmem:[#allocation3 + $0xd88] sm:$0xff] }
 0x7ce   :  { %4725 = vmatpush1.bf16.msra.mxu0 %v4633_v23  ;;  %v4874_v23 = vld [vmem:[#allocation3 + $0xd80] sm:$0xff] }
 0x7cf   :  { %4807 = vmatpush1.bf16.msra.mxu1 %v4635_v30  ;;  %4970 = vmatprep.subr.bf16.mxu0 %v4827_v37  ;;  %v4876_v30 = vld [vmem:[#allocation3 + $0xd90] sm:$0xff]  ;;  %v4879_v37 = vld [vmem:[#allocation3 + $0xda8] sm:$0xff] }
 0x7d0   :  { %5052 = vmatprep.subr.bf16.mxu1 %v4829_v31  ;;  %v4881_v31 = vld [vmem:[#allocation3 + $0xdb8] sm:$0xff] }
 0x7d1   :  { %4727 = vmatmul.mubr.bf16.vlgmr.msra.gmra.mrb[32].mxu0 %v3861_v32 }
 0x7d2   :  { %4809 = vmatmul.mubr.bf16.vlgmr.msra.gmra.mrb[32].mxu1 %v3861_v32  ;;  %4971 = vmatpush1.bf16.msra.mxu0 %v4826_v4  ;;  %v4878_v32 = vld [vmem:[#allocation3 + $0xda0] sm:$0xff]  ;;  %v4880_v4 = vld [vmem:[#allocation3 + $0xdb0] sm:$0xff] }
 0x7d3   :  { %5053 = vmatpush1.bf16.msra.mxu1 %v4828_v35  ;;  %4972 = vmatprep.subr.bf16.mxu0 %v4831_v41 }
 0x7d4   :  { %5054 = vmatprep.subr.bf16.mxu1 %v4833_v42 }
 0x7d6   :  { %4973 = vmatpush1.bf16.msra.mxu0 %v4830_v5 }
 0x7d7   :  { %5055 = vmatpush1.bf16.msra.mxu1 %v4832_v43  ;;  %4974 = vmatprep.subr.bf16.mxu0 %v4835_v44  ;;  %v4883_v43 = vld [vmem:[#allocation3 + $0xdc8] sm:$0xff]  ;;  %v4885_v44 = vld [vmem:[#allocation3 + $0xdd8] sm:$0xff] }
 0x7d8   :  { %5056 = vmatprep.subr.bf16.mxu1 %v4837_v46 }
 0x7da   :  { %4975 = vmatpush1.bf16.msra.mxu0 %v4834_v47 }
 0x7db   :  { %5057 = vmatpush1.bf16.msra.mxu1 %v4836_v48  ;;  %4976 = vmatprep.subr.bf16.mxu0 %v4839_v49  ;;  %v4882_v48 = vld [vmem:[#allocation3 + $0xdc0] sm:$0xff]  ;;  %v4884_v49 = vld [vmem:[#allocation3 + $0xdd0] sm:$0xff] }
 0x7dc   :  { %5058 = vmatprep.subr.bf16.mxu1 %v4841_v50 }
 0x7de   :  { %4977 = vmatpush1.bf16.msra.mxu0 %v4838_v20 }
 0x7df   :  { %5059 = vmatpush1.bf16.msra.mxu1 %v4840_v21  ;;  %4978 = vmatprep.subr.bf16.mxu0 %v4843_v51  ;;  %v4887_v21 = vld [vmem:[#allocation3 + $0xde8] sm:$0xff]  ;;  %v4889_v51 = vld [vmem:[#allocation3 + $0xdf8] sm:$0xff] }
 0x7e0   :  { %5060 = vmatprep.subr.bf16.mxu1 %v4845_v52  ;;  %v4886_v52 = vld [vmem:[#allocation3 + $0xde0] sm:$0xff] }
 0x7e2   :  { %4979 = vmatpush1.bf16.msra.mxu0 %v4842_v17  ;;  %v4888_v17 = vld [vmem:[#allocation3 + $0xdf0] sm:$0xff] }
 0x7e3   :  { %5061 = vmatpush1.bf16.msra.mxu1 %v4844_v53  ;;  %4980 = vmatprep.subr.bf16.mxu0 %v4847_v26  ;;  %v4891_v53 = vld [vmem:[#allocation3 + $0xe08] sm:$0xff]  ;;  %v4893_v26 = vld [vmem:[#allocation3 + $0xe18] sm:$0xff] }
 0x7e4   :  { %5062 = vmatprep.subr.bf16.mxu1 %v4849_v54  ;;  %v7120_v54 = vsub.s32 7, %v6923_v11 }
 0x7e6   :  { %4981 = vmatpush1.bf16.msra.mxu0 %v4846_v55  ;;  %v4640_v55 = vrot.slane %v3993_v27, %v7120_v54 }
 0x7e7   :  { %5063 = vmatpush1.bf16.msra.mxu1 %v4848_v56  ;;  %4982 = vmatprep.subr.bf16.mxu0 %v4851_v57  ;;  %v4644_v56 = vrot.slane %v3994_v15, %v7120_v54  ;;  %v4652_v57 = vrot.slane %v3996_v29, %v7120_v54 }
 0x7e8   :  { %5064 = vmatprep.subr.bf16.mxu1 %v4853_v58 }
 0x7ea   :  { %4983 = vmatpush1.bf16.msra.mxu0 %v4850_v59 }
 0x7eb   :  { %5065 = vmatpush1.bf16.msra.mxu1 %v4852_v61  ;;  %4984 = vmatprep.subr.bf16.mxu0 %v4855_v63 }
 0x7ec   :  { %5066 = vmatprep.subr.bf16.mxu1 %v4857_v1 }
 0x7ee   :  { %4985 = vmatpush1.bf16.msra.mxu0 %v4854_v3 }
 0x7ef   :  { %5067 = vmatpush1.bf16.msra.mxu1 %v4856_v7  ;;  %4986 = vmatprep.subr.bf16.mxu0 %v4859_v8 }
 0x7f0   :  { %5068 = vmatprep.subr.bf16.mxu1 %v4861_v33 }
 0x7f2   :  { %4987 = vmatpush1.bf16.msra.mxu0 %v4858_v9 }
 0x7f3   :  { %5069 = vmatpush1.bf16.msra.mxu1 %v4860_v22  ;;  %4988 = vmatprep.subr.bf16.mxu0 %v4863_v10 }
 0x7f4   :  { %5070 = vmatprep.subr.bf16.mxu1 %v4865_v6  ;;  %v4890_v6 = vld [vmem:[#allocation3 + $0xe00] sm:$0xff] }
 0x7f6   :  { %4989 = vmatpush1.bf16.msra.mxu0 %v4862_v13  ;;  %v4892_v13 = vld [vmem:[#allocation3 + $0xe10] sm:$0xff] }
 0x7f7   :  { %5071 = vmatpush1.bf16.msra.mxu1 %v4864_v18  ;;  %4990 = vmatprep.subr.bf16.mxu0 %v4867_v34  ;;  %v4895_v18 = vld [vmem:[#allocation3 + $0xe28] sm:$0xff]  ;;  %v4897_v34 = vld [vmem:[#allocation3 + $0xe38] sm:$0xff] }
 0x7f8   :  { %5072 = vmatprep.subr.bf16.mxu1 %v4869_v45  ;;  %v4894_v45 = vld [vmem:[#allocation3 + $0xe20] sm:$0xff] }
 0x7fa   :  { %4991 = vmatpush1.bf16.msra.mxu0 %v4866_v19  ;;  %v4896_v19 = vld [vmem:[#allocation3 + $0xe30] sm:$0xff] }
 0x7fb   :  { %5073 = vmatpush1.bf16.msra.mxu1 %v4868_v40  ;;  %4992 = vmatprep.subr.bf16.mxu0 %v4871_v12  ;;  %v4899_v40 = vld [vmem:[#allocation3 + $0xe48] sm:$0xff]  ;;  %v4901_v12 = vld [vmem:[#allocation3 + $0xe58] sm:$0xff] }
 0x7fc   :  { %5074 = vmatprep.subr.bf16.mxu1 %v4873_v16  ;;  %v4898_v16 = vld [vmem:[#allocation3 + $0xe40] sm:$0xff] }
 0x7fe   :  { %4993 = vmatpush1.bf16.msra.mxu0 %v4870_v39  ;;  %v4900_v39 = vld [vmem:[#allocation3 + $0xe50] sm:$0xff] }
 0x7ff   :  { %5075 = vmatpush1.bf16.msra.mxu1 %v4872_v28  ;;  %4994 = vmatprep.subr.bf16.mxu0 %v4875_v2  ;;  %v4903_v28 = vld [vmem:[#allocation3 + $0xe68] sm:$0xff]  ;;  %v4905_v2 = vld [vmem:[#allocation3 + $0xe78] sm:$0xff] }
 0x800   :  { %5076 = vmatprep.subr.bf16.mxu1 %v4877_v36  ;;  %v4902_v36 = vld [vmem:[#allocation3 + $0xe60] sm:$0xff] }
 0x802   :  { %4995 = vmatpush1.bf16.msra.mxu0 %v4874_v23  ;;  %v4904_v23 = vld [vmem:[#allocation3 + $0xe70] sm:$0xff] }
 0x803   :  { %5077 = vmatpush1.bf16.msra.mxu1 %v4876_v30  ;;  %4996 = vmatprep.subr.bf16.mxu0 %v4879_v37  ;;  %v4907_v30 = vld [vmem:[#allocation3 + $0xe88] sm:$0xff]  ;;  %v4909_v37 = vld [vmem:[#allocation3 + $0xe98] sm:$0xff] }
 0x804   :  { %5078 = vmatprep.subr.bf16.mxu1 %v4881_v31  ;;  %v4906_v31 = vld [vmem:[#allocation3 + $0xe80] sm:$0xff] }
 0x806   :  { %4997 = vmatpush1.bf16.msra.mxu0 %v4878_v32  ;;  %v4908_v32 = vld [vmem:[#allocation3 + $0xe90] sm:$0xff] }
 0x807   :  { %5079 = vmatpush1.bf16.msra.mxu1 %v4880_v4  ;;  %4998 = vmatprep.subr.bf16.mxu0 %v4883_v43  ;;  %v4911_v4 = vld [vmem:[#allocation3 + $0xea8] sm:$0xff]  ;;  %v4913_v43 = vld [vmem:[#allocation3 + $0xeb8] sm:$0xff] }
 0x808   :  { %5080 = vmatprep.subr.bf16.mxu1 %v4885_v44  ;;  %v4910_v44 = vld [vmem:[#allocation3 + $0xea0] sm:$0xff] }
 0x80a   :  { %4999 = vmatpush1.bf16.msra.mxu0 %v4882_v48  ;;  %v4917_v48 = vld [vmem:[#allocation3 + $0xed8] sm:$0xff] }
 0x80b   :  { %5081 = vmatpush1.bf16.msra.mxu1 %v4884_v49  ;;  %5000 = vmatprep.subr.bf16.mxu0 %v4887_v21  ;;  %v4914_v49 = vld [vmem:[#allocation3 + $0xec0] sm:$0xff]  ;;  %v4921_v21 = vld [vmem:[#allocation3 + $0xef8] sm:$0xff] }
 0x80c   :  { %5082 = vmatprep.subr.bf16.mxu1 %v4889_v51  ;;  %v4918_v51 = vld [vmem:[#allocation3 + $0xee0] sm:$0xff] }
 0x80e   :  { %5001 = vmatpush1.bf16.msra.mxu0 %v4886_v52  ;;  %v4920_v52 = vld [vmem:[#allocation3 + $0xef0] sm:$0xff] }
 0x80f   :  { %5083 = vmatpush1.bf16.msra.mxu1 %v4888_v17  ;;  %5011 = vmatprep.subr.bf16.mxu0 %v4891_v53  ;;  %v4923_v17 = vld [vmem:[#allocation3 + $0xf08] sm:$0xff]  ;;  %v4925_v53 = vld [vmem:[#allocation3 + $0xf18] sm:$0xff] }
 0x810   :  { %5093 = vmatprep.subr.bf16.mxu1 %v4893_v26  ;;  %v4922_v26 = vld [vmem:[#allocation3 + $0xf00] sm:$0xff] }
 0x824   :  { %v7111_v35 = vpop.f32.mrb[28].mxu0  ;;  %v7113_v41 = vpop.f32.mrb[28].mxu1 }
 0x825   :  { %v7115_v42 = vpop.f32.mrb[29].mxu0  ;;  %v7117_v5 = vpop.f32.mrb[29].mxu1 }
 0x826   :  { %v4415_v46 = vpop.f32.mrb[30].mxu0  ;;  %v4497_v47 = vpop.f32.mrb[30].mxu1 }
 0x827   :  { %v4416_v50 = vpop.f32.mrb[31].mxu0  ;;  %v4498_v20 = vpop.f32.mrb[31].mxu1  ;;  %v4912_v46 = vld [vmem:[#allocation3 + $0xeb0] sm:$0xff]  ;;  %v4915_v47 = vld [vmem:[#allocation3 + $0xec8] sm:$0xff] }
 0x828   :  { %v4916_v50 = vld [vmem:[#allocation3 + $0xed0] sm:$0xff]  ;;  %v4919_v20 = vld [vmem:[#allocation3 + $0xee8] sm:$0xff] }
 0x8a4   :  { %v4728_v58 = vpop.f32.mrb[32].mxu0 }
 0x8a5   :  { %v5951_v59 = vadd.f32 %v4728_v58, %v4640_v55  ;;  %v7131_v61 = vpop.f32.mrb[32].mxu1  ;;  %v4730_v63 = vpop.f32.mrb[33].mxu0  ;;  %v4924_v55 = vld [vmem:[#allocation3 + $0xf10] sm:$0xff]  ;;  %v4926_v58 = vld [vmem:[#allocation3 + $0xf20] sm:$0xff] }
 0x8a6   :  { %v5952_v1 = vadd.f32 %v4730_v63, %v4644_v56  ;;  %v4812_v11 = vpop.f32.mrb[33].mxu1  ;;  %v4732_v3 = vpop.f32.mrb[34].mxu0  ;;  %v4927_v56 = vld [vmem:[#allocation3 + $0xf28] sm:$0xff] }
 0x8a7   :  { %v4817_v7 = vmax.f32 %v5951_v59, 0.0  ;;  %v5954_v8 = vadd.f32 %v4812_v11, %v4652_v57  ;;  %v4814_v33 = vpop.f32.mrb[34].mxu1  ;;  %v4733_v27 = vpop.f32.mrb[35].mxu0  ;;  %v4929_v57 = vld [vmem:[#allocation3 + $0xf38] sm:$0xff]  ;;  %v4928_v59 = vld [vmem:[#allocation3 + $0xf30] sm:$0xff]  ;;  %v4931_v63 = vld [vmem:[#allocation3 + $0xf48] sm:$0xff] }
 0x8a8   :  { %v4818_v9 = vmax.f32 %v5952_v1, 0.0  ;;  %v4815_v22 = vpop.f32.mrb[35].mxu1  ;;  %v4933_v1 = vld [vmem:[#allocation3 + $0xf58] sm:$0xff]  ;;  %v4930_v11 = vld [vmem:[#allocation3 + $0xf40] sm:$0xff]  ;;  %v4932_v3 = vld [vmem:[#allocation3 + $0xf50] sm:$0xff] }
 0x8a9   :  { %v4820_v24 = vmax.f32 %v5954_v8, 0.0  ;;  %v4821_v10 = vpack.c.bf16 %v4817_v7, %v4817_v7  ;;  %v4935_v7 = vld [vmem:[#allocation3 + $0xf68] sm:$0xff]  ;;  %v4937_v8 = vld [vmem:[#allocation3 + $0xf78] sm:$0xff]  ;;  %v4934_v33 = vld [vmem:[#allocation3 + $0xf60] sm:$0xff] }
 0x8aa   :  { %v4822_v15 = vpack.c.bf16 %v4818_v9, %v4818_v9  ;;  %v4936_v27 = vld [vmem:[#allocation3 + $0xf70] sm:$0xff]  ;;  %v4939_v9 = vld [vmem:[#allocation3 + $0xf88] sm:$0xff]  ;;  %v4941_v22 = vld [vmem:[#allocation3 + $0xf98] sm:$0xff] }
 0x8ab   :  { %v4824_v29 = vpack.c.bf16 %v4820_v24, %v4820_v24  ;;  %v7133_v24 = vld [vmem:[#allocation12 + $0x10] sm:$0x11] }
 0x8ac   :  { %5002 = vmatprep.mubr.bf16.mxu0 %v4822_v15  ;;  %5084 = vmatprep.mubr.bf16.mxu1 %v4822_v15  ;;  %v7135_v15 = vld [vmem:[#allocation12 + $0x18] sm:$0x11] }
 0x8ad   :  { %5003 = vmatmul.mubr.bf16.vlgmr.msra.gmra.mrb[36].mxu0 %v4821_v10  ;;  %5085 = vmatmul.mubr.bf16.vlgmr.msra.gmra.mrb[36].mxu1 %v4821_v10  ;;  %v4938_v10 = vld [vmem:[#allocation3 + $0xf80] sm:$0xff] }
 0x8ae   :  { %5012 = vmatpush1.bf16.msra.mxu0 %v4890_v6  ;;  %5094 = vmatpush1.bf16.msra.mxu1 %v4892_v13  ;;  %v4940_v6 = vld [vmem:[#allocation3 + $0xf90] sm:$0xff]  ;;  %v4317_v13 = vunpack.c.h.bf16 %v7133_v24 }
 0x8af   :  { %5043 = vmatprep.mubr.bf16.mxu0 %v4824_v29  ;;  %5125 = vmatprep.mubr.bf16.mxu1 %v4824_v29  ;;  %v4943_v29 = vld [vmem:[#allocation3 + $0xfa8] sm:$0xff] }
 0x8b0   :  { %5013 = vmatprep.subr.bf16.mxu0 %v4895_v18  ;;  %5095 = vmatprep.subr.bf16.mxu1 %v4897_v34  ;;  %v4945_v18 = vld [vmem:[#allocation3 + $0xfb8] sm:$0xff]  ;;  %v4319_v34 = vunpack.c.h.bf16 %v7135_v15 }
 0x8b2   :  { %5014 = vmatpush1.bf16.msra.mxu0 %v4894_v45  ;;  %5096 = vmatpush1.bf16.msra.mxu1 %v4896_v19  ;;  %v4648_v45 = vrot.slane %v3995_v62, %v7120_v54  ;;  %v4942_v19 = vld [vmem:[#allocation3 + $0xfa0] sm:$0xff]  ;;  %v4948_v62 = vld [vmem:[#allocation3 + $0xfd0] sm:$0xff] }
 0x8b3   :  { %5015 = vmatprep.subr.bf16.mxu0 %v4899_v40  ;;  %5097 = vmatprep.subr.bf16.mxu1 %v4901_v12  ;;  %v4944_v40 = vld [vmem:[#allocation3 + $0xfb0] sm:$0xff]  ;;  %v4327_v12 = vrot.slane %v4317_v13, %v6929_v14 }
 0x8b5   :  { %v5948_v54 = vadd.f32 %v7115_v42, %v4327_v12  ;;  %v5142_v42 = vld [vmem:[#allocation4] sm:$0xff]  ;;  %v5173_v12 = vld [vmem:[#allocation4 + $0xf8] sm:$0xff] }
 0x8b6   :  { %5016 = vmatpush1.bf16.msra.mxu0 %v4898_v16  ;;  %5098 = vmatpush1.bf16.msra.mxu1 %v4900_v39  ;;  %v4947_v16 = vld [vmem:[#allocation3 + $0xfc8] sm:$0xff]  ;;  %v4949_v39 = vld [vmem:[#allocation3 + $0xfd8] sm:$0xff] }
 0x8b7   :  { %5017 = vmatprep.subr.bf16.mxu0 %v4903_v28  ;;  %5099 = vmatprep.subr.bf16.mxu1 %v4905_v2  ;;  %v4335_v28 = vrot.slane %v4319_v34, %v6929_v14  ;;  %v5953_v2 = vadd.f32 %v7131_v61, %v4648_v45  ;;  %v5166_v61 = vld [vmem:[#allocation4 + $0xc0] sm:$0xff] }
 0x8ba   :  { %5018 = vmatpush1.bf16.msra.mxu0 %v4902_v36  ;;  %5100 = vmatpush1.bf16.msra.mxu1 %v4904_v23  ;;  %v4951_v36 = vld [vmem:[#allocation3 + $0xfe8] sm:$0xff]  ;;  %v4953_v23 = vld [vmem:[#allocation3 + $0xff8] sm:$0xff] }
 0x8bb   :  { %5019 = vmatprep.subr.bf16.mxu0 %v4907_v30  ;;  %5101 = vmatprep.subr.bf16.mxu1 %v4909_v37  ;;  %v5950_v30 = vadd.f32 %v7117_v5, %v4335_v28  ;;  %v4819_v37 = vmax.f32 %v5953_v2, 0.0  ;;  %v5165_v28 = vld [vmem:[#allocation4 + $0xb8] sm:$0xff]  ;;  %v5182_v2 = vld [vmem:[#allocation4 + $0x140] sm:$0xff] }
 0x8be   :  { %5020 = vmatpush1.bf16.msra.mxu0 %v4906_v31  ;;  %5102 = vmatpush1.bf16.msra.mxu1 %v4908_v32  ;;  %v4950_v31 = vld [vmem:[#allocation3 + $0xfe0] sm:$0xff]  ;;  %v4952_v32 = vld [vmem:[#allocation3 + $0xff0] sm:$0xff] }
 0x8bf   :  { %5021 = vmatprep.subr.bf16.mxu0 %v4911_v4  ;;  %5103 = vmatprep.subr.bf16.mxu1 %v4913_v43  ;;  %v4501_v4 = vmax.f32 %v5948_v54, 0.0  ;;  %v5150_v43 = vld [vmem:[#allocation4 + $0x40] sm:$0xff] }
 0x8c0   :  { %v5190_v54 = vld [vmem:[#allocation4 + $0x180] sm:$0xff] }
 0x8c2   :  { %5022 = vmatpush1.bf16.msra.mxu0 %v4910_v44  ;;  %5104 = vmatpush1.bf16.msra.mxu1 %v4912_v46  ;;  %v4503_v44 = vmax.f32 %v5950_v30, 0.0  ;;  %v4823_v46 = vpack.c.bf16 %v4819_v37, %v4819_v37  ;;  %v5175_v30 = vld [vmem:[#allocation4 + $0x108] sm:$0xff] }
 0x8c3   :  { %5023 = vmatprep.subr.bf16.mxu0 %v4915_v47  ;;  %5105 = vmatprep.subr.bf16.mxu1 %v4917_v48  ;;  %v4505_v47 = vpack.c.bf16 %v4501_v4, %v4501_v4  ;;  %v5158_v48 = vld [vmem:[#allocation4 + $0x80] sm:$0xff]  ;;  %v5191_v37 = vld [vmem:[#allocation4 + $0x188] sm:$0xff]  ;;  %v5176_v4 = vld [vmem:[#allocation4 + $0x110] sm:$0xff] }
 0x8c4   :  { %v4507_v5 = vpack.c.bf16 %v4503_v44, %v4503_v44  ;;  %v5201_v44 = vld [vmem:[#allocation4 + $0x1d8] sm:$0xff] }
 0x8c6   :  { %5024 = vmatpush1.bf16.msra.mxu0 %v4914_v49  ;;  %5106 = vmatpush1.bf16.msra.mxu1 %v4916_v50  ;;  %v5151_v49 = vld [vmem:[#allocation4 + $0x48] sm:$0xff] }
 0x8c7   :  { %5025 = vmatprep.subr.bf16.mxu0 %v4919_v20  ;;  %5107 = vmatprep.subr.bf16.mxu1 %v4921_v21  ;;  %v5167_v50 = vld [vmem:[#allocation4 + $0xc8] sm:$0xff] }
 0x8c8   :  { %v5143_v20 = vld [vmem:[#allocation4 + $0x8] sm:$0xff] }
 0x8c9   :  { %v5159_v21 = vld [vmem:[#allocation4 + $0x88] sm:$0xff] }
 0x8ca   :  { %5026 = vmatpush1.bf16.msra.mxu0 %v4918_v51  ;;  %5108 = vmatpush1.bf16.msra.mxu1 %v4920_v52  ;;  %v5152_v51 = vld [vmem:[#allocation4 + $0x50] sm:$0xff] }
 0x8cb   :  { %5027 = vmatprep.subr.bf16.mxu0 %v4923_v17  ;;  %5109 = vmatprep.subr.bf16.mxu1 %v4925_v53  ;;  %v5168_v52 = vld [vmem:[#allocation4 + $0xd0] sm:$0xff] }
 0x8cc   :  { %v5144_v17 = vld [vmem:[#allocation4 + $0x10] sm:$0xff] }
 0x8cd   :  { %v5160_v53 = vld [vmem:[#allocation4 + $0x90] sm:$0xff] }
 0x8ce   :  { %5028 = vmatpush1.bf16.msra.mxu0 %v4922_v26  ;;  %5110 = vmatpush1.bf16.msra.mxu1 %v4924_v55  ;;  %v5153_v26 = vld [vmem:[#allocation4 + $0x58] sm:$0xff] }
 0x8cf   :  { %5029 = vmatprep.subr.bf16.mxu0 %v4927_v56  ;;  %5111 = vmatprep.subr.bf16.mxu1 %v4929_v57  ;;  %v5169_v55 = vld [vmem:[#allocation4 + $0xd8] sm:$0xff] }
 0x8d0   :  { %v5145_v56 = vld [vmem:[#allocation4 + $0x18] sm:$0xff] }
 0x8d1   :  { %v5161_v57 = vld [vmem:[#allocation4 + $0x98] sm:$0xff] }
 0x8d2   :  { %5030 = vmatpush1.bf16.msra.mxu0 %v4926_v58  ;;  %5112 = vmatpush1.bf16.msra.mxu1 %v4928_v59  ;;  %v5154_v58 = vld [vmem:[#allocation4 + $0x60] sm:$0xff] }
 0x8d3   :  { %5031 = vmatprep.subr.bf16.mxu0 %v4931_v63  ;;  %5113 = vmatprep.subr.bf16.mxu1 %v4933_v1  ;;  %v5170_v59 = vld [vmem:[#allocation4 + $0xe0] sm:$0xff]  ;;  %v4316_v63 = vunpack.c.l.bf16 %v7133_v24 }
 0x8d4   :  { %v5146_v1 = vld [vmem:[#allocation4 + $0x20] sm:$0xff] }
 0x8d6   :  { %5032 = vmatpush1.bf16.msra.mxu0 %v4930_v11  ;;  %5114 = vmatpush1.bf16.msra.mxu1 %v4932_v3  ;;  %v4318_v11 = vunpack.c.l.bf16 %v7135_v15  ;;  %v5162_v3 = vld [vmem:[#allocation4 + $0xa0] sm:$0xff] }
 0x8d7   :  { %5033 = vmatprep.subr.bf16.mxu0 %v4935_v7  ;;  %5115 = vmatprep.subr.bf16.mxu1 %v4937_v8  ;;  %v5155_v7 = vld [vmem:[#allocation4 + $0x68] sm:$0xff] }
 0x8d8   :  { %v5171_v8 = vld [vmem:[#allocation4 + $0xe8] sm:$0xff] }
 0x8da   :  { %5034 = vmatpush1.bf16.msra.mxu0 %v4934_v33  ;;  %5116 = vmatpush1.bf16.msra.mxu1 %v4936_v27  ;;  %v4323_v33 = vrot.slane %v4316_v63, %v6929_v14  ;;  %v5147_v27 = vld [vmem:[#allocation4 + $0x28] sm:$0xff] }
 0x8db   :  { %5035 = vmatprep.subr.bf16.mxu0 %v4939_v9  ;;  %5117 = vmatprep.subr.bf16.mxu1 %v4941_v22  ;;  %v4331_v9 = vrot.slane %v4318_v11, %v6929_v14  ;;  %v5163_v22 = vld [vmem:[#allocation4 + $0xa8] sm:$0xff]  ;;  %v5149_v14 = vld [vmem:[#allocation4 + $0x38] sm:$0xff] }
 0x8dd   :  { %v5949_v45 = vadd.f32 %v7113_v41, %v4331_v9 }
 0x8de   :  { %5036 = vmatpush1.bf16.msra.mxu0 %v4938_v10  ;;  %5118 = vmatpush1.bf16.msra.mxu1 %v4940_v6  ;;  %v5156_v10 = vld [vmem:[#allocation4 + $0x70] sm:$0xff] }
 0x8df   :  { %5037 = vmatprep.subr.bf16.mxu0 %v4943_v29  ;;  %5119 = vmatprep.subr.bf16.mxu1 %v4945_v18  ;;  %v5172_v6 = vld [vmem:[#allocation4 + $0xf0] sm:$0xff]  ;;  %v5947_v29 = vadd.f32 %v7111_v35, %v4323_v33  ;;  %v4961_v33 = vrot.slane %v4317_v13, %v6952_v60 }
 0x8e0   :  { %v5148_v18 = vld [vmem:[#allocation4 + $0x30] sm:$0xff] }
 0x8e2   :  { %5038 = vmatpush1.bf16.msra.mxu0 %v4942_v19  ;;  %5120 = vmatpush1.bf16.msra.mxu1 %v4944_v40  ;;  %v5164_v19 = vld [vmem:[#allocation4 + $0xb0] sm:$0xff]  ;;  %v5157_v40 = vld [vmem:[#allocation4 + $0x78] sm:$0xff] }
 0x8e3   :  { %5039 = vmatprep.subr.bf16.mxu0 %v4947_v16  ;;  %5121 = vmatprep.subr.bf16.mxu1 %v4949_v39  ;;  %v4500_v16 = vmax.f32 %v5947_v29, 0.0  ;;  %v4502_v39 = vmax.f32 %v5949_v45, 0.0 }
 0x8e5   :  { %v4504_v35 = vpack.c.bf16 %v4500_v16, %v4500_v16  ;;  %v4506_v41 = vpack.c.bf16 %v4502_v39, %v4502_v39 }
 0x8e6   :  { %5040 = vmatpush1.bf16.msra.mxu0 %v4946_v25  ;;  %5122 = vmatpush1.bf16.msra.mxu1 %v4948_v62  ;;  %v5198_v25 = vld [vmem:[#allocation4 + $0x1c0] sm:$0xff] }
 0x8e7   :  { %5041 = vmatprep.subr.bf16.mxu0 %v4951_v36  ;;  %5123 = vmatprep.subr.bf16.mxu1 %v4953_v23  ;;  %v5174_v62 = vld [vmem:[#allocation4 + $0x100] sm:$0xff]  ;;  %v5183_v36 = vld [vmem:[#allocation4 + $0x148] sm:$0xff] }
 0x8e8   :  { %v5199_v23 = vld [vmem:[#allocation4 + $0x1c8] sm:$0xff] }
 0x8ea   :  { %5042 = vmatpush1.bf16.msra.mxu0 %v4950_v31  ;;  %5124 = vmatpush1.bf16.msra.mxu1 %v4952_v32  ;;  %v5184_v31 = vld [vmem:[#allocation4 + $0x150] sm:$0xff] }
 0x8eb   :  { %5835 = vmatprep.subr.bf16.mxu0 %v5150_v43  ;;  %5857 = vmatprep.subr.bf16.mxu1 %v5166_v61  ;;  %v5200_v32 = vld [vmem:[#allocation4 + $0x1d0] sm:$0xff]  ;;  %v5185_v61 = vld [vmem:[#allocation4 + $0x158] sm:$0xff] }
 0x8ec   :  { %v5192_v43 = vld [vmem:[#allocation4 + $0x190] sm:$0xff] }
 0x8ed   :  { %5044 = vmatmul.mubr.bf16.vlgmr.msra.gmra.mrb[36].mxu0 %v4823_v46  ;;  %5126 = vmatmul.mubr.bf16.vlgmr.msra.gmra.mrb[36].mxu1 %v4823_v46  ;;  %v5177_v46 = vld [vmem:[#allocation4 + $0x118] sm:$0xff] }
 0x8ee   :  { %5836 = vmatpush3.bf16.msra.mxu0 %v5142_v42  ;;  %5244 = vmatprep.mubr.bf16.mxu0 %v4505_v47  ;;  %v5193_v42 = vld [vmem:[#allocation4 + $0x198] sm:$0xff]  ;;  %v5186_v47 = vld [vmem:[#allocation4 + $0x160] sm:$0xff] }
 0x8ef   :  { %5858 = vmatpush3.bf16.msra.mxu1 %v5158_v48  ;;  %5284 = vmatprep.mubr.bf16.mxu1 %v4507_v5  ;;  %v5202_v48 = vld [vmem:[#allocation4 + $0x1e0] sm:$0xff] }
 0x8f0   :  { %5837 = vmatprep.subr.bf16.mxu0 %v5151_v49  ;;  %5859 = vmatprep.subr.bf16.mxu1 %v5167_v50  ;;  %v5178_v5 = vld [vmem:[#allocation4 + $0x120] sm:$0xff]  ;;  %v5187_v50 = vld [vmem:[#allocation4 + $0x168] sm:$0xff] }
 0x8f1   :  { %v5194_v49 = vld [vmem:[#allocation4 + $0x1a0] sm:$0xff] }
 0x8f2   :  { %5838 = vmatpush3.bf16.msra.mxu0 %v5143_v20  ;;  %v5203_v20 = vld [vmem:[#allocation4 + $0x1e8] sm:$0xff] }
 0x8f3   :  { %5860 = vmatpush3.bf16.msra.mxu1 %v5159_v21  ;;  %5839 = vmatprep.subr.bf16.mxu0 %v5152_v51  ;;  %v5179_v21 = vld [vmem:[#allocation4 + $0x128] sm:$0xff] }
 0x8f4   :  { %5861 = vmatprep.subr.bf16.mxu1 %v5168_v52  ;;  %v5195_v51 = vld [vmem:[#allocation4 + $0x1a8] sm:$0xff]  ;;  %v5188_v52 = vld [vmem:[#allocation4 + $0x170] sm:$0xff] }
 0x8f6   :  { %5840 = vmatpush3.bf16.msra.mxu0 %v5144_v17  ;;  %v5204_v17 = vld [vmem:[#allocation4 + $0x1f0] sm:$0xff] }
 0x8f7   :  { %5862 = vmatpush3.bf16.msra.mxu1 %v5160_v53  ;;  %5841 = vmatprep.subr.bf16.mxu0 %v5153_v26  ;;  %v5180_v53 = vld [vmem:[#allocation4 + $0x130] sm:$0xff] }
 0x8f8   :  { %5863 = vmatprep.subr.bf16.mxu1 %v5169_v55  ;;  %v5196_v26 = vld [vmem:[#allocation4 + $0x1b0] sm:$0xff]  ;;  %v5189_v55 = vld [vmem:[#allocation4 + $0x178] sm:$0xff] }
 0x8fa   :  { %5842 = vmatpush3.bf16.msra.mxu0 %v5145_v56  ;;  %v5205_v56 = vld [vmem:[#allocation4 + $0x1f8] sm:$0xff] }
 0x8fb   :  { %5864 = vmatpush3.bf16.msra.mxu1 %v5161_v57  ;;  %5843 = vmatprep.subr.bf16.mxu0 %v5154_v58  ;;  %v5181_v57 = vld [vmem:[#allocation4 + $0x138] sm:$0xff] }
 0x8fc   :  { %5865 = vmatprep.subr.bf16.mxu1 %v5170_v59  ;;  %v5197_v58 = vld [vmem:[#allocation4 + $0x1b8] sm:$0xff]  ;;  %v5372_v59 = vld [vmem:[%s7194_s1] sm:$0xff]  ;;  %s6807_s1 = smov [#allocation14]  }
 0x8fd   :  { %vm5373_vm1 = vcmp.eq.s32.totalorder %v5372_v59, 0  ;;  %vm5380_vm2 = vcmp.eq.s32.totalorder %v5372_v59, 1  ;;  %s5403_s17 = sshll.u32 %s6807_s1, 4  ;;  %s5404_s17 = int_to_ptr.vmem [resolvable:$true] %s5403_s17 }
 0x8fe   :  { %5844 = vmatpush3.bf16.msra.mxu0 %v5146_v1  ;;  %v5374_v1 = vsel %vm5373_vm1, 1, %v6793_v0  ;;  %s6750_s18 = scalar_lea.vmem %s5404_s17, 128  ;;  %p6755_p13 = scmp.lt.s32.totalorder %s5404_s17, %s5404_s17 }
 0x8ff   :  { %5866 = vmatpush3.bf16.msra.mxu1 %v5162_v3  ;;  %5845 = vmatprep.subr.bf16.mxu0 %v5155_v7  ;;  %v5381_v3 = vsel %vm5380_vm2, 1, %v6793_v0  ;;  %v4957_v7 = vrot.slane %v4316_v63, %v6952_v60  ;;  %p6751_p12 = scmp.ne.s32.totalorder %s5404_s17, %s6750_s18  ;;  %p6756_p0 = scmp.lt.s32.totalorder %s6750_s18, %s6750_s18 }
 0x900   :  { %5867 = vmatprep.subr.bf16.mxu1 %v5171_v8  ;;  %5376 = vperm.xlu0 %6635, %v5374_v1   ;;  %v4965_v8 = vrot.slane %v4318_v11, %v6952_v60 }
 0x901   :  { %p6757_p1 = por %p6756_p0, %p6755_p13 }
 0x902   :  { %5846 = vmatpush3.bf16.msra.mxu0 %v5147_v27  ;;  %v4969_v27 = vrot.slane %v4319_v34, %v6952_v60  ;;  %v5206_v34 = vld [vmem:[#allocation12 + $0x10] sm:$0x2] }
 0x903   :  { %5868 = vmatpush3.bf16.msra.mxu1 %v5163_v22  ;;  %5847 = vmatprep.subr.bf16.mxu0 %v5156_v10  ;;  %p6758_p2 = pnand %p6757_p1, %p6751_p12 }
 0x904   :  { %5869 = vmatprep.subr.bf16.mxu1 %v5172_v6  ;;  %5383 = vperm.xlu0 %6635, %v5381_v3  }
 0x906   :  { %5848 = vmatpush3.bf16.msra.mxu0 %v5148_v18 }
 0x907   :  { %5870 = vmatpush3.bf16.msra.mxu1 %v5164_v19  ;;  %5849 = vmatprep.subr.bf16.mxu0 %v5157_v40 }
 0x908   :  { %5871 = vmatprep.subr.bf16.mxu1 %v5173_v12 }
 0x90a   :  { %5850 = vmatpush3.bf16.msra.mxu0 %v5149_v14 }
 0x90b   :  { %5872 = vmatpush3.bf16.msra.mxu1 %v5165_v28  ;;  %5879 = vmatprep.subr.bf16.mxu0 %v5182_v2  ;;  %v5207_v28 = vunpack.c.l.bf16 %v5206_v34 }
 0x90c   :  { %5901 = vmatprep.subr.bf16.mxu1 %v5198_v25 }
 0x90d   :  { %5245 = vmatmul.mubr.bf16.vlgmr.msra.gmra.mrb[40].mxu0 %v4504_v35  ;;  %v5211_v25 = vrot.slane %v5207_v28, %v6975_v38 }
 0x90e   :  { %5285 = vmatmul.mubr.bf16.vlgmr.msra.gmra.mrb[40].mxu1 %v4506_v41  ;;  %5880 = vmatpush3.bf16.msra.mxu0 %v5174_v62 }
 0x90f   :  { %5902 = vmatpush3.bf16.msra.mxu1 %v5190_v54  ;;  %5881 = vmatprep.subr.bf16.mxu0 %v5183_v36 }
 0x910   :  { %5903 = vmatprep.subr.bf16.mxu1 %v5199_v23 }
 0x912   :  { %5882 = vmatpush3.bf16.msra.mxu0 %v5175_v30 }
 0x913   :  { %5904 = vmatpush3.bf16.msra.mxu1 %v5191_v37  ;;  %5883 = vmatprep.subr.bf16.mxu0 %v5184_v31 }
 0x914   :  { %5905 = vmatprep.subr.bf16.mxu1 %v5200_v32 }
 0x916   :  { %5884 = vmatpush3.bf16.msra.mxu0 %v5176_v4 }
 0x917   :  { %5906 = vmatpush3.bf16.msra.mxu1 %v5192_v43  ;;  %5885 = vmatprep.subr.bf16.mxu0 %v5185_v61 }
 0x918   :  { %5907 = vmatprep.subr.bf16.mxu1 %v5201_v44 }
 0x91a   :  { %5886 = vmatpush3.bf16.msra.mxu0 %v5177_v46 }
 0x91b   :  { %5908 = vmatpush3.bf16.msra.mxu1 %v5193_v42  ;;  %5887 = vmatprep.subr.bf16.mxu0 %v5186_v47 }
 0x91c   :  { %5909 = vmatprep.subr.bf16.mxu1 %v5202_v48 }
 0x91e   :  { %5888 = vmatpush3.bf16.msra.mxu0 %v5178_v5 }
 0x91f   :  { %5910 = vmatpush3.bf16.msra.mxu1 %v5194_v49  ;;  %5889 = vmatprep.subr.bf16.mxu0 %v5187_v50 }
 0x920   :  { %5911 = vmatprep.subr.bf16.mxu1 %v5203_v20 }
 0x922   :  { %5890 = vmatpush3.bf16.msra.mxu0 %v5179_v21 }
 0x923   :  { %5912 = vmatpush3.bf16.msra.mxu1 %v5195_v51  ;;  %5891 = vmatprep.subr.bf16.mxu0 %v5188_v52 }
 0x924   :  { %5913 = vmatprep.subr.bf16.mxu1 %v5204_v17 }
 0x926   :  { %5892 = vmatpush3.bf16.msra.mxu0 %v5180_v53 }
 0x927   :  { %5914 = vmatpush3.bf16.msra.mxu1 %v5196_v26  ;;  %5893 = vmatprep.subr.bf16.mxu0 %v5189_v55 }
 0x928   :  { %5915 = vmatprep.subr.bf16.mxu1 %v5205_v56 }
 0x92a   :  { %5894 = vmatpush3.bf16.msra.mxu0 %v5181_v57 }
 0x92b   :  { %5916 = vmatpush3.bf16.msra.mxu1 %v5197_v58 }
 0x97f   :  { %v5377_v20 = vpop.permute.xlu0 %5376 }
 0x980   :  { %vm5378_vm3 = vcmp.eq.s32.totalorder %v5377_v20, 1 }
 0x983   :  { %v5384_v52 = vpop.permute.xlu0 %5383 }
 0x984   :  { %vm5385_vm4 = vcmp.eq.s32.totalorder %v5384_v52, 1 }
 0x9c0   :  { %v5045_v9 = vpop.f32.mrb[36].mxu0  ;;  %v5127_v22 = vpop.f32.mrb[36].mxu1 }
 0x9c1   :  { %v5955_v0 = vadd.f32 %v5045_v9, %v4957_v7  ;;  %v5957_v10 = vadd.f32 %v5127_v22, %v4965_v8  ;;  %v5047_v6 = vpop.f32.mrb[37].mxu0  ;;  %v5129_v29 = vpop.f32.mrb[37].mxu1 }
 0x9c2   :  { %v5956_v18 = vadd.f32 %v5047_v6, %v4961_v33  ;;  %v5958_v63 = vadd.f32 %v5129_v29, %v4969_v27  ;;  %v5049_v45 = vpop.f32.mrb[38].mxu0  ;;  %v5131_v19 = vpop.f32.mrb[38].mxu1 }
 0x9c3   :  { %v5134_v40 = vmax.f32 %v5955_v0, 0.0  ;;  %v5136_v11 = vmax.f32 %v5957_v10, 0.0  ;;  %v5050_v12 = vpop.f32.mrb[39].mxu0  ;;  %v5132_v16 = vpop.f32.mrb[39].mxu1 }
 0x9c4   :  { %v5135_v24 = vmax.f32 %v5956_v18, 0.0  ;;  %v5137_v13 = vmax.f32 %v5958_v63, 0.0 }
 0x9c5   :  { %v5138_v15 = vpack.c.bf16 %v5134_v40, %v5134_v40  ;;  %v5140_v60 = vpack.c.bf16 %v5136_v11, %v5136_v11 }
 0x9c6   :  { %v5139_v14 = vpack.c.bf16 %v5135_v24, %v5135_v24  ;;  %v5141_v39 = vpack.c.bf16 %v5137_v13, %v5137_v13 }
 0x9c8   :  { %5324 = vmatprep.mubr.bf16.mxu0 %v5139_v14  ;;  %5364 = vmatprep.mubr.bf16.mxu1 %v5141_v39 }
 0x9c9   :  { %5325 = vmatmul.mubr.bf16.vlgmr.msra.gmra.mrb[44].mxu0 %v5138_v15  ;;  %5365 = vmatmul.mubr.bf16.vlgmr.msra.gmra.mrb[44].mxu1 %v5140_v60 }
 0x9e0   :  { %v5851_v2 = vpop.f32.mrb[40].mxu0 }
 0x9e1   :  { %v5873_v35 = vpop.f32.mrb[40].mxu1  ;;  %v5852_v62 = vpop.f32.mrb[41].mxu0 }
 0x9e2   :  { %v5853_v41 = vadd.f32 %v5852_v62, %v5851_v2  ;;  %v5874_v54 = vpop.f32.mrb[41].mxu1  ;;  %v5854_v36 = vpop.f32.mrb[42].mxu0 }
 0x9e3   :  { %v5875_v23 = vadd.f32 %v5874_v54, %v5873_v35  ;;  %v5876_v30 = vpop.f32.mrb[42].mxu1  ;;  %v5855_v37 = vpop.f32.mrb[43].mxu0 }
 0x9e4   :  { %v5247_v31 = vadd.f32 %v5853_v41, %v5211_v25  ;;  %v5877_v32 = vpop.f32.mrb[43].mxu1 }
 0x9e6   :  { %v5287_v4 = vadd.f32 %v5875_v23, %v5247_v31 }
 0xa9c   :  { %v5895_v43 = vpop.f32.mrb[44].mxu0  ;;  %v5917_v61 = vpop.f32.mrb[44].mxu1 }
 0xa9d   :  { %v5896_v44 = vpop.f32.mrb[45].mxu0  ;;  %v5918_v46 = vpop.f32.mrb[45].mxu1 }
 0xa9e   :  { %v5897_v42 = vadd.f32 %v5896_v44, %v5895_v43  ;;  %v5919_v47 = vadd.f32 %v5918_v46, %v5917_v61  ;;  %v5898_v48 = vpop.f32.mrb[46].mxu0  ;;  %v5920_v5 = vpop.f32.mrb[46].mxu1 }
 0xa9f   :  { %v5899_v38 = vpop.f32.mrb[47].mxu0  ;;  %v5921_v49 = vpop.f32.mrb[47].mxu1 }
 0xaa0   :  { %v5327_v50 = vadd.f32 %v5897_v42, %v5287_v4 }
 0xaa2   :  { %v5367_v21 = vadd.f32 %v5919_v47, %v5327_v50 }
 0xaa4   :  { %v5379_v51 = vsel %vm5378_vm3, %v5367_v21, 0.0 }
 0xaa5   :  { %5387 = vrot.lane.b32.xlu1 %v5379_v51, %s6796_s4 }
 0xb17   :  { %v5388_v17 = vpop.permute.xlu1 %5387 }
 0xb18   :  { %v5390_v53 = vsel %vm5385_vm4, %v5367_v21, %v5388_v17 }
 0xb19   :  { %5392 = vrot.lane.b32.xlu1 %v5390_v53, %s6796_s4 }
 0xb8b   :  { %v5393_v26 = vpop.permute.xlu1 %5392 }
 0xb8c   :  { %5396 = vst.msk [vmem:[#allocation14] sm:$0xff] %vm5395_vm5, %v5393_v26 }
 0xb8d   :  { %6761 = shalt.err (!%p6758_p2)
}
 0xb8e   :  { %s6762_s20 = scalar_lea.hbm %s7201_s8, 128 }
 0xb8f   :  { %p6763_p3 = scmp.ne.s32.totalorder %s7201_s8, %s6762_s20  ;;  %p6766_p4 = scmp.lt.u32.totalorder %s6762_s20, %s7201_s8 }
 0xb91   :  { %p6768_p5 = pnand %p6766_p4, %p6763_p3 }
 0xb93   :  { %6771 = shalt.err (!%p6768_p5)
}
 0xb94   :  { %5406 = dma.vmem_to_hbm [thread:$0]  %s5404_s17, 128, %s7201_s8, [#allocation8]  }
 0xb95   :  { %6784 = dma.done.wait [#allocation8], 128  }
 0xb96   :  { %6785 = vsyncadd [#allocation8], 4294967168 }
 0xb97   :  { %5410 = vsyncpa [#allocation7], 1 }
 0xb98   :  { %5411 = vsyncpa [#allocation10], 1 }
 0xb99   :  { %5412 = vsyncpa [#allocation13], 1 }
 0xb9a   :  { %5413 = vsyncpa [#allocation8], 1 }
 0xb9b   :  { %5414 = vsyncmov [#allocation5] }
 0xb9e   :  { %s5415_s27 = vpop.sfrf %5414 }
 0xb9f   :  { %p5832_p6 = scmp.ne.s32.totalorder %s5415_s27, 0 }
 0xba1   :  { %5419 = shalt.err (%p5832_p6)  }
 0xba2   :  { %5421 = vsyncmov [#allocation5 + $0x1] }
 0xba5   :  { %s5422_s29 = vpop.sfrf %5421 }
 0xba6   :  { %p5833_p7 = scmp.ne.s32.totalorder %s5422_s29, 0 }
 0xba8   :  { %5426 = shalt.err (%p5833_p7)  }
 0xba9   :  { %5428 = vsyncmov [#allocation5 + $0x2] }
 0xbac   :  { %s5429_s30 = vpop.sfrf %5428 }
 0xbad   :  { %p5834_p8 = scmp.ne.s32.totalorder %s5429_s30, 0 }
 0xbaf   :  { %5433 = shalt.err (%p5834_p8)  }

</bundles_post_ra>
